<compile_context>
chip_gen: v7x
topology: tpu7x:2x2x1
jax: 0.10.0
libtpu: 0.0.40
codegen_flags: <defaults>
</compile_context>

<pallas_src>
import functools

import jax
import jax.numpy as jnp
from jax.experimental import pallas as pl
from jax.experimental.pallas import tpu as pltpu

SUBLANE = 8
LANE = 128


# ----------------------------------------------------------------------------- kernel
def lstm_classify_kernel(x_ref,        # (T*Bp, F)   bf16, time-major, batch-padded
                         w_ih0_ref,    # (F, 4H)     bf16, g-columns pre-scaled by 2
                         w_hh0_ref,    # (H, 4H)     bf16, g-columns pre-scaled by 2
                         b0_ref,       # (1, 4H)     f32,  b_ih0+b_hh0, g pre-scaled
                         w_ih1_ref,    # (H, 4H)     bf16, g-columns pre-scaled by 2
                         w_hh1_ref,    # (H, 4H)     bf16, g-columns pre-scaled by 2
                         b1_ref,       # (1, 4H)     f32,  b_ih1+b_hh1, g pre-scaled
                         w_cls_ref,    # (H, Cp)     bf16, zero-padded to a lane tile
                         b_cls_ref,    # (1, Cp)     f32
                         out_ref,      # (Bp, Cp)    f32
                         xp_ref,       # VMEM scratch (T*Bp, 4H) f32: x@W_ih0 + b0
                         *, seq_len, batch, hidden):
    H = hidden

    # ---- one big bf16 MXU pass: layer-0 input projection for every timestep ----
    xp_ref[...] = (jnp.dot(x_ref[...], w_ih0_ref[...],
                           preferred_element_type=jnp.float32) + b0_ref[...])

    # ---- loop-invariant values hoisted out of the recurrence ----
    w_hh0 = w_hh0_ref[...]
    w_ih1 = w_ih1_ref[...]
    w_hh1 = w_hh1_ref[...]
    b1 = jnp.broadcast_to(b1_ref[...], (batch, 4 * H))        # broadcast once, not per step
    lane_idx = jax.lax.broadcasted_iota(jnp.int32, (batch, 4 * H), 1)
    g_lanes = (lane_idx >= 2 * H) & (lane_idx < 3 * H)        # the tanh ('g') gate lanes
    act_scale = jnp.where(g_lanes, 2.0, 1.0).astype(jnp.float32)
    act_shift = jnp.where(g_lanes, -1.0, 0.0).astype(jnp.float32)

    def gate_act(g):
        # PyTorch gate order [i | f | g | o].  The g-gate weights/biases were
        # pre-scaled by 2 wrapper-side, so one full-width sigmoid plus one hoisted
        # per-lane FMA gives sigmoid on i/f/o lanes and tanh (= 2*sigmoid(2z)-1,
        # exact) on g lanes — a single EUP op per gate vreg instead of two.
        return jax.nn.sigmoid(g) * act_scale + act_shift

    def step(t, carry):
        h0, c0, h1, c1 = carry                                # all f32 (batch, H)
        # --- layer 0: input projection precomputed; only the recurrent matmul left ---
        row = pl.multiple_of(t * batch, batch)                # batch == 8 -> aligned rows
        g0 = xp_ref[pl.ds(row, batch), :] + jnp.dot(
            h0.astype(jnp.bfloat16), w_hh0, preferred_element_type=jnp.float32)
        a0 = gate_act(g0)
        c0 = a0[:, H:2 * H] * c0 + a0[:, :H] * a0[:, 2 * H:3 * H]
        h0 = a0[:, 3 * H:] * jnp.tanh(c0)
        # --- layer 1: two small bf16 dots (no runtime concat -> no VMEM round-trip) ---
        g1 = (jnp.dot(h0.astype(jnp.bfloat16), w_ih1, preferred_element_type=jnp.float32)
              + jnp.dot(h1.astype(jnp.bfloat16), w_hh1, preferred_element_type=jnp.float32)
              + b1)
        a1 = gate_act(g1)
        c1 = a1[:, H:2 * H] * c1 + a1[:, :H] * a1[:, 2 * H:3 * H]
        h1 = a1[:, 3 * H:] * jnp.tanh(c1)
        return h0, c0, h1, c1

    z = jnp.zeros((batch, H), jnp.float32)
    _, _, h1, _ = jax.lax.fori_loop(0, seq_len, step, (z, z, z, z), unroll=True)

    # classifier on the last timestep's top-layer hidden state (== out[-1] in PyTorch);
    # (Bp, 128) output block -> unmasked lane-dense store.
    out_ref[...] = (jnp.dot(h1.astype(jnp.bfloat16), w_cls_ref[...],
                            preferred_element_type=jnp.float32) + b_cls_ref[...])


# ---------------------------------------------------------------------------- wrapper
def rnn_classify_forward(x, params):
    """x: (B, 1, S, S) float32 NCHW.  Returns logits (B, num_class)."""
    x = jnp.squeeze(x, axis=1)           # (B, H_img, W_img)
    x = jnp.transpose(x, (2, 0, 1))      # (T=W, B, F=H_img)  == permute(2, 0, 1)
    x = x.astype(jnp.float32)
    T, B, F = x.shape
    H = params["w_hh0"].shape[0]
    num_class = params["w_cls"].shape[1]

    # pad batch to the 8-wide sublane, classifier width to a full 128-lane tile
    Bp = ((B + SUBLANE - 1) // SUBLANE) * SUBLANE
    Cp = ((num_class + LANE - 1) // LANE) * LANE
    x_p = jnp.pad(x, ((0, 0), (0, Bp - B), (0, 0))).reshape(T * Bp, F).astype(jnp.bfloat16)

    # pre-scale the 'g' gate columns by 2 (tanh(z) == 2*sigmoid(2z) - 1); exact in bf16
    def scale_g(a):
        return a.at[..., 2 * H:3 * H].multiply(2.0)

    w_ih0 = scale_g(params["w_ih0"]).astype(jnp.bfloat16)
    w_hh0 = scale_g(params["w_hh0"]).astype(jnp.bfloat16)
    w_ih1 = scale_g(params["w_ih1"]).astype(jnp.bfloat16)
    w_hh1 = scale_g(params["w_hh1"]).astype(jnp.bfloat16)
    b0 = scale_g(params["b0"]).astype(jnp.float32)
    b1 = scale_g(params["b1"]).astype(jnp.float32)
    w_cls_p = jnp.pad(params["w_cls"], ((0, 0), (0, Cp - num_class))).astype(jnp.bfloat16)
    b_cls_p = jnp.pad(params["b_cls"], ((0, 0), (0, Cp - num_class))).astype(jnp.float32)

    kernel = functools.partial(lstm_classify_kernel,
                               seq_len=T, batch=Bp, hidden=H)
    full = lambda a: pl.BlockSpec(a.shape, lambda i, _nd=a.ndim: (0,) * _nd)

    out = pl.pallas_call(
        kernel,
        out_shape=jax.ShapeDtypeStruct((Bp, Cp), jnp.float32),
        grid_spec=pltpu.PrefetchScalarGridSpec(
            num_scalar_prefetch=0,
            grid=(1,),     # single invocation; recurrence is the in-kernel fori_loop
            in_specs=[full(x_p), full(w_ih0), full(w_hh0), full(b0),
                      full(w_ih1), full(w_hh1), full(b1),
                      full(w_cls_p), full(b_cls_p)],
            out_specs=pl.BlockSpec((Bp, Cp), lambda i: (0, 0)),
            scratch_shapes=[pltpu.VMEM((T * Bp, 4 * H), jnp.float32)],
        ),
        compiler_params=pltpu.CompilerParams(
            dimension_semantics=("arbitrary",)),
    )(x_p, w_ih0, w_hh0, b0, w_ih1, w_hh1, b1, w_cls_p, b_cls_p)
    return out[:B, :num_class]


# ----------------------------------------------------------------- params / reference
def init_params(key, in_feature, hidden, num_class):
    """PyTorch-style uniform(-1/sqrt(H), 1/sqrt(H)) init; weights pre-transposed
    to (in, out) orientation and the two LSTM biases summed (b_ih + b_hh)."""
    k = 1.0 / jnp.sqrt(jnp.float32(hidden))
    keys = jax.random.split(key, 10)
    u = lambda kk, shape: jax.random.uniform(kk, shape, jnp.float32, -k, k)
    # layer 0 (input -> hidden)
    w_ih0 = u(keys[0], (4 * hidden, in_feature))
    w_hh0 = u(keys[1], (4 * hidden, hidden))
    b0 = u(keys[2], (4 * hidden,)) + u(keys[3], (4 * hidden,))
    # layer 1 (hidden -> hidden)
    w_ih1 = u(keys[4], (4 * hidden, hidden))
    w_hh1 = u(keys[5], (4 * hidden, hidden))
    b1 = u(keys[6], (4 * hidden,)) + u(keys[7], (4 * hidden,))
    # classifier
    kc = 1.0 / jnp.sqrt(jnp.float32(hidden))
    w_cls = jax.random.uniform(keys[8], (num_class, hidden), jnp.float32, -kc, kc)
    b_cls = jax.random.uniform(keys[9], (num_class,), jnp.float32, -kc, kc)
    return {
        "w_ih0": w_ih0.T, "w_hh0": w_hh0.T, "b0": b0[None, :],
        "w_ih1": w_ih1.T, "w_hh1": w_hh1.T, "b1": b1[None, :],
        "w_cls": w_cls.T, "b_cls": b_cls[None, :],
    }


def reference_forward(x, params, matmul_dtype=jnp.float32):
    """Pure-JAX reference (same math as the PyTorch module).  With
    matmul_dtype=bfloat16 it mirrors the kernel's MXU dtype choice exactly."""
    x = jnp.transpose(jnp.squeeze(x, axis=1), (2, 0, 1)).astype(jnp.float32)
    T, B, F = x.shape
    H = params["w_hh0"].shape[0]

    def mm(a, w):
        return jnp.dot(a.astype(matmul_dtype), w.astype(matmul_dtype),
                       preferred_element_type=jnp.float32)

    def cell(x_in, h, c, w_ih, w_hh, b):
        g = mm(x_in, w_ih) + mm(h, w_hh) + b
        i, f, gg, o = (jax.nn.sigmoid(g[:, :H]), jax.nn.sigmoid(g[:, H:2 * H]),
                       jnp.tanh(g[:, 2 * H:3 * H]), jax.nn.sigmoid(g[:, 3 * H:]))
        c = f * c + i * gg
        return o * jnp.tanh(c), c

    h0 = c0 = h1 = c1 = jnp.zeros((B, H), jnp.float32)
    for t in range(T):
        h0, c0 = cell(x[t], h0, c0, params["w_ih0"], params["w_hh0"], params["b0"])
        h1, c1 = cell(h0, h1, c1, params["w_ih1"], params["w_hh1"], params["b1"])
    return mm(h1, params["w_cls"]) + params["b_cls"]


# ------------------------------------------------------------------------------- main
if __name__ == "__main__":
    # small shapes consistent with the module: square image so in_feature == seq_len
    B, C, S = 2, 1, 16          # input (B, 1, 16, 16)  -> in_feature=16, seq=16
    HIDDEN, NUM_CLASS = 32, 10

    key = jax.random.PRNGKey(0)
    kx, kp = jax.random.split(key)
    x = jax.random.normal(kx, (B, C, S, S), jnp.float32)
    params = init_params(kp, in_feature=S, hidden=HIDDEN, num_class=NUM_CLASS)

    logits = rnn_classify_forward(x, params)
    logits = jax.block_until_ready(logits)
    assert logits.shape == (B, NUM_CLASS)

    # tight check vs a reference that mirrors the kernel's bf16-MXU dtype choice
    ref_bf16 = reference_forward(x, params, matmul_dtype=jnp.bfloat16)
    assert jnp.allclose(logits, ref_bf16, atol=2e-3, rtol=2e-3), "mismatch vs bf16 reference"

    # loose sanity check vs the full-f32 reference (bf16 MXU inputs -> looser tolerance)
    ref_f32 = reference_forward(x, params, matmul_dtype=jnp.float32)
    assert jnp.allclose(logits, ref_f32, atol=1e-1, rtol=1e-1), "mismatch vs f32 reference"

    print("KERNEL_OK")
</pallas_src>

<mosaic_0001>
module attributes {stable_mosaic.version = 11 : i64} {
  func.func @lstm_classify_kernel(%arg0: i32, %arg1: memref<128x16xbf16, #tpu.memory_space<vmem>>, %arg2: memref<16x128xbf16, #tpu.memory_space<vmem>>, %arg3: memref<32x128xbf16, #tpu.memory_space<vmem>>, %arg4: memref<1x128xf32, #tpu.memory_space<vmem>>, %arg5: memref<32x128xbf16, #tpu.memory_space<vmem>>, %arg6: memref<32x128xbf16, #tpu.memory_space<vmem>>, %arg7: memref<1x128xf32, #tpu.memory_space<vmem>>, %arg8: memref<32x128xbf16, #tpu.memory_space<vmem>>, %arg9: memref<1x128xf32, #tpu.memory_space<vmem>>, %arg10: memref<8x128xf32, #tpu.memory_space<vmem>>, %arg11: memref<128x128xf32, #tpu.memory_space<vmem>>) attributes {dimension_semantics = [#tpu.dimension_semantics<arbitrary>], iteration_bounds = array<i64: 1>, scalar_prefetch = 0 : i64, scratch_operands = 1 : i64, tpu.core_type = #tpu.core_type<tc>, window_params = [{pipeline_mode = #tpu.pipeline_mode<synchronous>, transform_indices = @transform_0, window_bounds = array<i64: 128, 16>}, {pipeline_mode = #tpu.pipeline_mode<synchronous>, transform_indices = @transform_1, window_bounds = array<i64: 16, 128>}, {pipeline_mode = #tpu.pipeline_mode<synchronous>, transform_indices = @transform_2, window_bounds = array<i64: 32, 128>}, {pipeline_mode = #tpu.pipeline_mode<synchronous>, transform_indices = @transform_3, window_bounds = array<i64: 1, 128>}, {pipeline_mode = #tpu.pipeline_mode<synchronous>, transform_indices = @transform_4, window_bounds = array<i64: 32, 128>}, {pipeline_mode = #tpu.pipeline_mode<synchronous>, transform_indices = @transform_5, window_bounds = array<i64: 32, 128>}, {pipeline_mode = #tpu.pipeline_mode<synchronous>, transform_indices = @transform_6, window_bounds = array<i64: 1, 128>}, {pipeline_mode = #tpu.pipeline_mode<synchronous>, transform_indices = @transform_7, window_bounds = array<i64: 32, 128>}, {pipeline_mode = #tpu.pipeline_mode<synchronous>, transform_indices = @transform_8, window_bounds = array<i64: 1, 128>}, {pipeline_mode = #tpu.pipeline_mode<synchronous>, transform_indices = @transform_9, window_bounds = array<i64: 8, 128>}]} {
    %c0 = arith.constant 0 : index
    %c0_0 = arith.constant 0 : index
    %0 = vector.load %arg1[%c0, %c0_0] : memref<128x16xbf16, #tpu.memory_space<vmem>>, vector<128x16xbf16>
    %c0_1 = arith.constant 0 : index
    %c0_2 = arith.constant 0 : index
    %1 = vector.load %arg2[%c0_1, %c0_2] : memref<16x128xbf16, #tpu.memory_space<vmem>>, vector<16x128xbf16>
    %cst = arith.constant dense<0.000000e+00> : vector<128x128xf32>
    %2 = tpu.matmul %0, %1, %cst {dimension_numbers = #tpu.dot_dimension_numbers<[1], [0], [0], [1], [0, 0, 1, 1], [], []>} : vector<128x16xbf16>, vector<16x128xbf16>, vector<128x128xf32> -> vector<128x128xf32>
    %c0_3 = arith.constant 0 : index
    %c0_4 = arith.constant 0 : index
    %3 = vector.load %arg4[%c0_3, %c0_4] : memref<1x128xf32, #tpu.memory_space<vmem>>, vector<1x128xf32>
    %4 = vector.broadcast %3 : vector<1x128xf32> to vector<128x128xf32>
    %5 = arith.addf %2, %4 : vector<128x128xf32>
    %c0_5 = arith.constant 0 : index
    %c0_6 = arith.constant 0 : index
    %6 = vector.load %arg11[%c0_5, %c0_6] : memref<128x128xf32, #tpu.memory_space<vmem>>, vector<128x128xf32>
    tpu.vector_store %arg11[%c0_5, %c0_6], %5 {strides = array<i32>} : memref<128x128xf32, #tpu.memory_space<vmem>>, vector<128x128xf32>,
    %c0_7 = arith.constant 0 : index
    %c0_8 = arith.constant 0 : index
    %7 = vector.load %arg3[%c0_7, %c0_8] : memref<32x128xbf16, #tpu.memory_space<vmem>>, vector<32x128xbf16>
    %c0_9 = arith.constant 0 : index
    %c0_10 = arith.constant 0 : index
    %8 = vector.load %arg5[%c0_9, %c0_10] : memref<32x128xbf16, #tpu.memory_space<vmem>>, vector<32x128xbf16>
    %c0_11 = arith.constant 0 : index
    %c0_12 = arith.constant 0 : index
    %9 = vector.load %arg6[%c0_11, %c0_12] : memref<32x128xbf16, #tpu.memory_space<vmem>>, vector<32x128xbf16>
    %c0_13 = arith.constant 0 : index
    %c0_14 = arith.constant 0 : index
    %10 = vector.load %arg7[%c0_13, %c0_14] : memref<1x128xf32, #tpu.memory_space<vmem>>, vector<1x128xf32>
    %11 = vector.shape_cast %10 : vector<1x128xf32> to vector<1x128xf32>
    %12 = vector.broadcast %11 : vector<1x128xf32> to vector<8x128xf32>
    %13 = tpu.iota {dimensions = array<i32: 1>} : vector<8x128xi32>
    %c64_i32 = arith.constant 64 : i32
    %14 = vector.broadcast %c64_i32 : i32 to vector<8x128xi32>
    %15 = arith.cmpi sge, %13, %14 : vector<8x128xi32>
    %c96_i32 = arith.constant 96 : i32
    %16 = vector.broadcast %c96_i32 : i32 to vector<8x128xi32>
    %17 = arith.cmpi slt, %13, %16 : vector<8x128xi32>
    %18 = arith.andi %15, %17 : vector<8x128xi1>
    %cst_15 = arith.constant 2.000000e+00 : f32
    %cst_16 = arith.constant 1.000000e+00 : f32
    %19 = vector.broadcast %cst_15 : f32 to vector<8x128xf32>
    %20 = vector.broadcast %cst_16 : f32 to vector<8x128xf32>
    %21 = arith.select %18, %19, %20 : vector<8x128xi1>, vector<8x128xf32>
    %cst_17 = arith.constant -1.000000e+00 : f32
    %cst_18 = arith.constant 0.000000e+00 : f32
    %22 = vector.broadcast %cst_17 : f32 to vector<8x128xf32>
    %23 = vector.broadcast %cst_18 : f32 to vector<8x128xf32>
    %24 = arith.select %18, %22, %23 : vector<8x128xi1>, vector<8x128xf32>
    %cst_19 = arith.constant 0.000000e+00 : f32
    %25 = vector.broadcast %cst_19 : f32 to vector<8x32xf32>
    %c0_i32 = arith.constant 0 : i32
    %c8_i32 = arith.constant 8 : i32
    %26 = arith.muli %c0_i32, %c8_i32 : i32
    %27 = tpu.assume_multiple %26, 8 : i32
    %28 = arith.index_cast %27 : i32 to index
    %c0_20 = arith.constant 0 : index
    %29 = vector.load %arg11[%28, %c0_20] : memref<128x128xf32, #tpu.memory_space<vmem>>, vector<8x128xf32>
    %30 = arith.truncf %25 : vector<8x32xf32> to vector<8x32xbf16>
    %cst_21 = arith.constant dense<0.000000e+00> : vector<8x128xf32>
    %31 = tpu.matmul %30, %7, %cst_21 {dimension_numbers = #tpu.dot_dimension_numbers<[1], [0], [0], [1], [0, 0, 1, 1], [], []>} : vector<8x32xbf16>, vector<32x128xbf16>, vector<8x128xf32> -> vector<8x128xf32>
    %32 = arith.addf %29, %31 : vector<8x128xf32>
    %33 = arith.negf %32 : vector<8x128xf32>
    %34 = math.exp %33 : vector<8x128xf32>
    %cst_22 = arith.constant 1.000000e+00 : f32
    %35 = vector.broadcast %cst_22 : f32 to vector<8x128xf32>
    %36 = arith.addf %35, %34 : vector<8x128xf32>
    %37 = arith.divf %35, %36 : vector<8x128xf32>
    %38 = arith.mulf %37, %21 : vector<8x128xf32>
    %39 = arith.addf %38, %24 : vector<8x128xf32>
    %40 = vector.extract_strided_slice %39 {offsets = [0, 32], sizes = [8, 32], strides = [1, 1]} : vector<8x128xf32> to vector<8x32xf32>
    %41 = arith.mulf %40, %25 : vector<8x32xf32>
    %42 = vector.extract_strided_slice %39 {offsets = [0, 0], sizes = [8, 32], strides = [1, 1]} : vector<8x128xf32> to vector<8x32xf32>
    %43 = vector.extract_strided_slice %39 {offsets = [0, 64], sizes = [8, 32], strides = [1, 1]} : vector<8x128xf32> to vector<8x32xf32>
    %44 = arith.mulf %42, %43 : vector<8x32xf32>
    %45 = arith.addf %41, %44 : vector<8x32xf32>
    %46 = vector.extract_strided_slice %39 {offsets = [0, 96], sizes = [8, 32], strides = [1, 1]} : vector<8x128xf32> to vector<8x32xf32>
    %47 = math.tanh %45 : vector<8x32xf32>
    %48 = arith.mulf %46, %47 : vector<8x32xf32>
    %49 = arith.truncf %48 : vector<8x32xf32> to vector<8x32xbf16>
    %cst_23 = arith.constant dense<0.000000e+00> : vector<8x128xf32>
    %50 = tpu.matmul %49, %8, %cst_23 {dimension_numbers = #tpu.dot_dimension_numbers<[1], [0], [0], [1], [0, 0, 1, 1], [], []>} : vector<8x32xbf16>, vector<32x128xbf16>, vector<8x128xf32> -> vector<8x128xf32>
    %51 = arith.truncf %25 : vector<8x32xf32> to vector<8x32xbf16>
    %cst_24 = arith.constant dense<0.000000e+00> : vector<8x128xf32>
    %52 = tpu.matmul %51, %9, %cst_24 {dimension_numbers = #tpu.dot_dimension_numbers<[1], [0], [0], [1], [0, 0, 1, 1], [], []>} : vector<8x32xbf16>, vector<32x128xbf16>, vector<8x128xf32> -> vector<8x128xf32>
    %53 = arith.addf %50, %52 : vector<8x128xf32>
    %54 = arith.addf %53, %12 : vector<8x128xf32>
    %55 = arith.negf %54 : vector<8x128xf32>
    %56 = math.exp %55 : vector<8x128xf32>
    %cst_25 = arith.constant 1.000000e+00 : f32
    %57 = vector.broadcast %cst_25 : f32 to vector<8x128xf32>
    %58 = arith.addf %57, %56 : vector<8x128xf32>
    %59 = arith.divf %57, %58 : vector<8x128xf32>
    %60 = arith.mulf %59, %21 : vector<8x128xf32>
    %61 = arith.addf %60, %24 : vector<8x128xf32>
    %62 = vector.extract_strided_slice %61 {offsets = [0, 32], sizes = [8, 32], strides = [1, 1]} : vector<8x128xf32> to vector<8x32xf32>
    %63 = arith.mulf %62, %25 : vector<8x32xf32>
    %64 = vector.extract_strided_slice %61 {offsets = [0, 0], sizes = [8, 32], strides = [1, 1]} : vector<8x128xf32> to vector<8x32xf32>
    %65 = vector.extract_strided_slice %61 {offsets = [0, 64], sizes = [8, 32], strides = [1, 1]} : vector<8x128xf32> to vector<8x32xf32>
    %66 = arith.mulf %64, %65 : vector<8x32xf32>
    %67 = arith.addf %63, %66 : vector<8x32xf32>
    %68 = vector.extract_strided_slice %61 {offsets = [0, 96], sizes = [8, 32], strides = [1, 1]} : vector<8x128xf32> to vector<8x32xf32>
    %69 = math.tanh %67 : vector<8x32xf32>
    %70 = arith.mulf %68, %69 : vector<8x32xf32>
    %c1_i32 = arith.constant 1 : i32
    %c8_i32_26 = arith.constant 8 : i32
    %71 = arith.muli %c1_i32, %c8_i32_26 : i32
    %72 = tpu.assume_multiple %71, 8 : i32
    %73 = arith.index_cast %72 : i32 to index
    %c0_27 = arith.constant 0 : index
    %74 = vector.load %arg11[%73, %c0_27] : memref<128x128xf32, #tpu.memory_space<vmem>>, vector<8x128xf32>
    %75 = arith.truncf %48 : vector<8x32xf32> to vector<8x32xbf16>
    %cst_28 = arith.constant dense<0.000000e+00> : vector<8x128xf32>
    %76 = tpu.matmul %75, %7, %cst_28 {dimension_numbers = #tpu.dot_dimension_numbers<[1], [0], [0], [1], [0, 0, 1, 1], [], []>} : vector<8x32xbf16>, vector<32x128xbf16>, vector<8x128xf32> -> vector<8x128xf32>
    %77 = arith.addf %74, %76 : vector<8x128xf32>
    %78 = arith.negf %77 : vector<8x128xf32>
    %79 = math.exp %78 : vector<8x128xf32>
    %cst_29 = arith.constant 1.000000e+00 : f32
    %80 = vector.broadcast %cst_29 : f32 to vector<8x128xf32>
    %81 = arith.addf %80, %79 : vector<8x128xf32>
    %82 = arith.divf %80, %81 : vector<8x128xf32>
    %83 = arith.mulf %82, %21 : vector<8x128xf32>
    %84 = arith.addf %83, %24 : vector<8x128xf32>
    %85 = vector.extract_strided_slice %84 {offsets = [0, 32], sizes = [8, 32], strides = [1, 1]} : vector<8x128xf32> to vector<8x32xf32>
    %86 = arith.mulf %85, %45 : vector<8x32xf32>
    %87 = vector.extract_strided_slice %84 {offsets = [0, 0], sizes = [8, 32], strides = [1, 1]} : vector<8x128xf32> to vector<8x32xf32>
    %88 = vector.extract_strided_slice %84 {offsets = [0, 64], sizes = [8, 32], strides = [1, 1]} : vector<8x128xf32> to vector<8x32xf32>
    %89 = arith.mulf %87, %88 : vector<8x32xf32>
    %90 = arith.addf %86, %89 : vector<8x32xf32>
    %91 = vector.extract_strided_slice %84 {offsets = [0, 96], sizes = [8, 32], strides = [1, 1]} : vector<8x128xf32> to vector<8x32xf32>
    %92 = math.tanh %90 : vector<8x32xf32>
    %93 = arith.mulf %91, %92 : vector<8x32xf32>
    %94 = arith.truncf %93 : vector<8x32xf32> to vector<8x32xbf16>
    %cst_30 = arith.constant dense<0.000000e+00> : vector<8x128xf32>
    %95 = tpu.matmul %94, %8, %cst_30 {dimension_numbers = #tpu.dot_dimension_numbers<[1], [0], [0], [1], [0, 0, 1, 1], [], []>} : vector<8x32xbf16>, vector<32x128xbf16>, vector<8x128xf32> -> vector<8x128xf32>
    %96 = arith.truncf %70 : vector<8x32xf32> to vector<8x32xbf16>
    %cst_31 = arith.constant dense<0.000000e+00> : vector<8x128xf32>
    %97 = tpu.matmul %96, %9, %cst_31 {dimension_numbers = #tpu.dot_dimension_numbers<[1], [0], [0], [1], [0, 0, 1, 1], [], []>} : vector<8x32xbf16>, vector<32x128xbf16>, vector<8x128xf32> -> vector<8x128xf32>
    %98 = arith.addf %95, %97 : vector<8x128xf32>
    %99 = arith.addf %98, %12 : vector<8x128xf32>
    %100 = arith.negf %99 : vector<8x128xf32>
    %101 = math.exp %100 : vector<8x128xf32>
    %cst_32 = arith.constant 1.000000e+00 : f32
    %102 = vector.broadcast %cst_32 : f32 to vector<8x128xf32>
    %103 = arith.addf %102, %101 : vector<8x128xf32>
    %104 = arith.divf %102, %103 : vector<8x128xf32>
    %105 = arith.mulf %104, %21 : vector<8x128xf32>
    %106 = arith.addf %105, %24 : vector<8x128xf32>
    %107 = vector.extract_strided_slice %106 {offsets = [0, 32], sizes = [8, 32], strides = [1, 1]} : vector<8x128xf32> to vector<8x32xf32>
    %108 = arith.mulf %107, %67 : vector<8x32xf32>
    %109 = vector.extract_strided_slice %106 {offsets = [0, 0], sizes = [8, 32], strides = [1, 1]} : vector<8x128xf32> to vector<8x32xf32>
    %110 = vector.extract_strided_slice %106 {offsets = [0, 64], sizes = [8, 32], strides = [1, 1]} : vector<8x128xf32> to vector<8x32xf32>
    %111 = arith.mulf %109, %110 : vector<8x32xf32>
    %112 = arith.addf %108, %111 : vector<8x32xf32>
    %113 = vector.extract_strided_slice %106 {offsets = [0, 96], sizes = [8, 32], strides = [1, 1]} : vector<8x128xf32> to vector<8x32xf32>
    %114 = math.tanh %112 : vector<8x32xf32>
    %115 = arith.mulf %113, %114 : vector<8x32xf32>
    %c2_i32 = arith.constant 2 : i32
    %c8_i32_33 = arith.constant 8 : i32
    %116 = arith.muli %c2_i32, %c8_i32_33 : i32
    %117 = tpu.assume_multiple %116, 8 : i32
    %118 = arith.index_cast %117 : i32 to index
    %c0_34 = arith.constant 0 : index
    %119 = vector.load %arg11[%118, %c0_34] : memref<128x128xf32, #tpu.memory_space<vmem>>, vector<8x128xf32>
    %120 = arith.truncf %93 : vector<8x32xf32> to vector<8x32xbf16>
    %cst_35 = arith.constant dense<0.000000e+00> : vector<8x128xf32>
    %121 = tpu.matmul %120, %7, %cst_35 {dimension_numbers = #tpu.dot_dimension_numbers<[1], [0], [0], [1], [0, 0, 1, 1], [], []>} : vector<8x32xbf16>, vector<32x128xbf16>, vector<8x128xf32> -> vector<8x128xf32>
    %122 = arith.addf %119, %121 : vector<8x128xf32>
    %123 = arith.negf %122 : vector<8x128xf32>
    %124 = math.exp %123 : vector<8x128xf32>
    %cst_36 = arith.constant 1.000000e+00 : f32
    %125 = vector.broadcast %cst_36 : f32 to vector<8x128xf32>
    %126 = arith.addf %125, %124 : vector<8x128xf32>
    %127 = arith.divf %125, %126 : vector<8x128xf32>
    %128 = arith.mulf %127, %21 : vector<8x128xf32>
    %129 = arith.addf %128, %24 : vector<8x128xf32>
    %130 = vector.extract_strided_slice %129 {offsets = [0, 32], sizes = [8, 32], strides = [1, 1]} : vector<8x128xf32> to vector<8x32xf32>
    %131 = arith.mulf %130, %90 : vector<8x32xf32>
    %132 = vector.extract_strided_slice %129 {offsets = [0, 0], sizes = [8, 32], strides = [1, 1]} : vector<8x128xf32> to vector<8x32xf32>
    %133 = vector.extract_strided_slice %129 {offsets = [0, 64], sizes = [8, 32], strides = [1, 1]} : vector<8x128xf32> to vector<8x32xf32>
    %134 = arith.mulf %132, %133 : vector<8x32xf32>
    %135 = arith.addf %131, %134 : vector<8x32xf32>
    %136 = vector.extract_strided_slice %129 {offsets = [0, 96], sizes = [8, 32], strides = [1, 1]} : vector<8x128xf32> to vector<8x32xf32>
    %137 = math.tanh %135 : vector<8x32xf32>
    %138 = arith.mulf %136, %137 : vector<8x32xf32>
    %139 = arith.truncf %138 : vector<8x32xf32> to vector<8x32xbf16>
    %cst_37 = arith.constant dense<0.000000e+00> : vector<8x128xf32>
    %140 = tpu.matmul %139, %8, %cst_37 {dimension_numbers = #tpu.dot_dimension_numbers<[1], [0], [0], [1], [0, 0, 1, 1], [], []>} : vector<8x32xbf16>, vector<32x128xbf16>, vector<8x128xf32> -> vector<8x128xf32>
    %141 = arith.truncf %115 : vector<8x32xf32> to vector<8x32xbf16>
    %cst_38 = arith.constant dense<0.000000e+00> : vector<8x128xf32>
    %142 = tpu.matmul %141, %9, %cst_38 {dimension_numbers = #tpu.dot_dimension_numbers<[1], [0], [0], [1], [0, 0, 1, 1], [], []>} : vector<8x32xbf16>, vector<32x128xbf16>, vector<8x128xf32> -> vector<8x128xf32>
    %143 = arith.addf %140, %142 : vector<8x128xf32>
    %144 = arith.addf %143, %12 : vector<8x128xf32>
    %145 = arith.negf %144 : vector<8x128xf32>
    %146 = math.exp %145 : vector<8x128xf32>
    %cst_39 = arith.constant 1.000000e+00 : f32
    %147 = vector.broadcast %cst_39 : f32 to vector<8x128xf32>
    %148 = arith.addf %147, %146 : vector<8x128xf32>
    %149 = arith.divf %147, %148 : vector<8x128xf32>
    %150 = arith.mulf %149, %21 : vector<8x128xf32>
    %151 = arith.addf %150, %24 : vector<8x128xf32>
    %152 = vector.extract_strided_slice %151 {offsets = [0, 32], sizes = [8, 32], strides = [1, 1]} : vector<8x128xf32> to vector<8x32xf32>
    %153 = arith.mulf %152, %112 : vector<8x32xf32>
    %154 = vector.extract_strided_slice %151 {offsets = [0, 0], sizes = [8, 32], strides = [1, 1]} : vector<8x128xf32> to vector<8x32xf32>
    %155 = vector.extract_strided_slice %151 {offsets = [0, 64], sizes = [8, 32], strides = [1, 1]} : vector<8x128xf32> to vector<8x32xf32>
    %156 = arith.mulf %154, %155 : vector<8x32xf32>
    %157 = arith.addf %153, %156 : vector<8x32xf32>
    %158 = vector.extract_strided_slice %151 {offsets = [0, 96], sizes = [8, 32], strides = [1, 1]} : vector<8x128xf32> to vector<8x32xf32>
    %159 = math.tanh %157 : vector<8x32xf32>
    %160 = arith.mulf %158, %159 : vector<8x32xf32>
    %c3_i32 = arith.constant 3 : i32
    %c8_i32_40 = arith.constant 8 : i32
    %161 = arith.muli %c3_i32, %c8_i32_40 : i32
    %162 = tpu.assume_multiple %161, 8 : i32
    %163 = arith.index_cast %162 : i32 to index
    %c0_41 = arith.constant 0 : index
    %164 = vector.load %arg11[%163, %c0_41] : memref<128x128xf32, #tpu.memory_space<vmem>>, vector<8x128xf32>
    %165 = arith.truncf %138 : vector<8x32xf32> to vector<8x32xbf16>
    %cst_42 = arith.constant dense<0.000000e+00> : vector<8x128xf32>
    %166 = tpu.matmul %165, %7, %cst_42 {dimension_numbers = #tpu.dot_dimension_numbers<[1], [0], [0], [1], [0, 0, 1, 1], [], []>} : vector<8x32xbf16>, vector<32x128xbf16>, vector<8x128xf32> -> vector<8x128xf32>
    %167 = arith.addf %164, %166 : vector<8x128xf32>
    %168 = arith.negf %167 : vector<8x128xf32>
    %169 = math.exp %168 : vector<8x128xf32>
    %cst_43 = arith.constant 1.000000e+00 : f32
    %170 = vector.broadcast %cst_43 : f32 to vector<8x128xf32>
    %171 = arith.addf %170, %169 : vector<8x128xf32>
    %172 = arith.divf %170, %171 : vector<8x128xf32>
    %173 = arith.mulf %172, %21 : vector<8x128xf32>
    %174 = arith.addf %173, %24 : vector<8x128xf32>
    %175 = vector.extract_strided_slice %174 {offsets = [0, 32], sizes = [8, 32], strides = [1, 1]} : vector<8x128xf32> to vector<8x32xf32>
    %176 = arith.mulf %175, %135 : vector<8x32xf32>
    %177 = vector.extract_strided_slice %174 {offsets = [0, 0], sizes = [8, 32], strides = [1, 1]} : vector<8x128xf32> to vector<8x32xf32>
    %178 = vector.extract_strided_slice %174 {offsets = [0, 64], sizes = [8, 32], strides = [1, 1]} : vector<8x128xf32> to vector<8x32xf32>
    %179 = arith.mulf %177, %178 : vector<8x32xf32>
    %180 = arith.addf %176, %179 : vector<8x32xf32>
    %181 = vector.extract_strided_slice %174 {offsets = [0, 96], sizes = [8, 32], strides = [1, 1]} : vector<8x128xf32> to vector<8x32xf32>
    %182 = math.tanh %180 : vector<8x32xf32>
    %183 = arith.mulf %181, %182 : vector<8x32xf32>
    %184 = arith.truncf %183 : vector<8x32xf32> to vector<8x32xbf16>
    %cst_44 = arith.constant dense<0.000000e+00> : vector<8x128xf32>
    %185 = tpu.matmul %184, %8, %cst_44 {dimension_numbers = #tpu.dot_dimension_numbers<[1], [0], [0], [1], [0, 0, 1, 1], [], []>} : vector<8x32xbf16>, vector<32x128xbf16>, vector<8x128xf32> -> vector<8x128xf32>
    %186 = arith.truncf %160 : vector<8x32xf32> to vector<8x32xbf16>
    %cst_45 = arith.constant dense<0.000000e+00> : vector<8x128xf32>
    %187 = tpu.matmul %186, %9, %cst_45 {dimension_numbers = #tpu.dot_dimension_numbers<[1], [0], [0], [1], [0, 0, 1, 1], [], []>} : vector<8x32xbf16>, vector<32x128xbf16>, vector<8x128xf32> -> vector<8x128xf32>
    %188 = arith.addf %185, %187 : vector<8x128xf32>
    %189 = arith.addf %188, %12 : vector<8x128xf32>
    %190 = arith.negf %189 : vector<8x128xf32>
    %191 = math.exp %190 : vector<8x128xf32>
    %cst_46 = arith.constant 1.000000e+00 : f32
    %192 = vector.broadcast %cst_46 : f32 to vector<8x128xf32>
    %193 = arith.addf %192, %191 : vector<8x128xf32>
    %194 = arith.divf %192, %193 : vector<8x128xf32>
    %195 = arith.mulf %194, %21 : vector<8x128xf32>
    %196 = arith.addf %195, %24 : vector<8x128xf32>
    %197 = vector.extract_strided_slice %196 {offsets = [0, 32], sizes = [8, 32], strides = [1, 1]} : vector<8x128xf32> to vector<8x32xf32>
    %198 = arith.mulf %197, %157 : vector<8x32xf32>
    %199 = vector.extract_strided_slice %196 {offsets = [0, 0], sizes = [8, 32], strides = [1, 1]} : vector<8x128xf32> to vector<8x32xf32>
    %200 = vector.extract_strided_slice %196 {offsets = [0, 64], sizes = [8, 32], strides = [1, 1]} : vector<8x128xf32> to vector<8x32xf32>
    %201 = arith.mulf %199, %200 : vector<8x32xf32>
    %202 = arith.addf %198, %201 : vector<8x32xf32>
    %203 = vector.extract_strided_slice %196 {offsets = [0, 96], sizes = [8, 32], strides = [1, 1]} : vector<8x128xf32> to vector<8x32xf32>
    %204 = math.tanh %202 : vector<8x32xf32>
    %205 = arith.mulf %203, %204 : vector<8x32xf32>
    %c4_i32 = arith.constant 4 : i32
    %c8_i32_47 = arith.constant 8 : i32
    %206 = arith.muli %c4_i32, %c8_i32_47 : i32
    %207 = tpu.assume_multiple %206, 8 : i32
    %208 = arith.index_cast %207 : i32 to index
    %c0_48 = arith.constant 0 : index
    %209 = vector.load %arg11[%208, %c0_48] : memref<128x128xf32, #tpu.memory_space<vmem>>, vector<8x128xf32>
    %210 = arith.truncf %183 : vector<8x32xf32> to vector<8x32xbf16>
    %cst_49 = arith.constant dense<0.000000e+00> : vector<8x128xf32>
    %211 = tpu.matmul %210, %7, %cst_49 {dimension_numbers = #tpu.dot_dimension_numbers<[1], [0], [0], [1], [0, 0, 1, 1], [], []>} : vector<8x32xbf16>, vector<32x128xbf16>, vector<8x128xf32> -> vector<8x128xf32>
    %212 = arith.addf %209, %211 : vector<8x128xf32>
    %213 = arith.negf %212 : vector<8x128xf32>
    %214 = math.exp %213 : vector<8x128xf32>
    %cst_50 = arith.constant 1.000000e+00 : f32
    %215 = vector.broadcast %cst_50 : f32 to vector<8x128xf32>
    %216 = arith.addf %215, %214 : vector<8x128xf32>
    %217 = arith.divf %215, %216 : vector<8x128xf32>
    %218 = arith.mulf %217, %21 : vector<8x128xf32>
    %219 = arith.addf %218, %24 : vector<8x128xf32>
    %220 = vector.extract_strided_slice %219 {offsets = [0, 32], sizes = [8, 32], strides = [1, 1]} : vector<8x128xf32> to vector<8x32xf32>
    %221 = arith.mulf %220, %180 : vector<8x32xf32>
    %222 = vector.extract_strided_slice %219 {offsets = [0, 0], sizes = [8, 32], strides = [1, 1]} : vector<8x128xf32> to vector<8x32xf32>
    %223 = vector.extract_strided_slice %219 {offsets = [0, 64], sizes = [8, 32], strides = [1, 1]} : vector<8x128xf32> to vector<8x32xf32>
    %224 = arith.mulf %222, %223 : vector<8x32xf32>
    %225 = arith.addf %221, %224 : vector<8x32xf32>
    %226 = vector.extract_strided_slice %219 {offsets = [0, 96], sizes = [8, 32], strides = [1, 1]} : vector<8x128xf32> to vector<8x32xf32>
    %227 = math.tanh %225 : vector<8x32xf32>
    %228 = arith.mulf %226, %227 : vector<8x32xf32>
    %229 = arith.truncf %228 : vector<8x32xf32> to vector<8x32xbf16>
    %cst_51 = arith.constant dense<0.000000e+00> : vector<8x128xf32>
    %230 = tpu.matmul %229, %8, %cst_51 {dimension_numbers = #tpu.dot_dimension_numbers<[1], [0], [0], [1], [0, 0, 1, 1], [], []>} : vector<8x32xbf16>, vector<32x128xbf16>, vector<8x128xf32> -> vector<8x128xf32>
    %231 = arith.truncf %205 : vector<8x32xf32> to vector<8x32xbf16>
    %cst_52 = arith.constant dense<0.000000e+00> : vector<8x128xf32>
    %232 = tpu.matmul %231, %9, %cst_52 {dimension_numbers = #tpu.dot_dimension_numbers<[1], [0], [0], [1], [0, 0, 1, 1], [], []>} : vector<8x32xbf16>, vector<32x128xbf16>, vector<8x128xf32> -> vector<8x128xf32>
    %233 = arith.addf %230, %232 : vector<8x128xf32>
    %234 = arith.addf %233, %12 : vector<8x128xf32>
    %235 = arith.negf %234 : vector<8x128xf32>
    %236 = math.exp %235 : vector<8x128xf32>
    %cst_53 = arith.constant 1.000000e+00 : f32
    %237 = vector.broadcast %cst_53 : f32 to vector<8x128xf32>
    %238 = arith.addf %237, %236 : vector<8x128xf32>
    %239 = arith.divf %237, %238 : vector<8x128xf32>
    %240 = arith.mulf %239, %21 : vector<8x128xf32>
    %241 = arith.addf %240, %24 : vector<8x128xf32>
    %242 = vector.extract_strided_slice %241 {offsets = [0, 32], sizes = [8, 32], strides = [1, 1]} : vector<8x128xf32> to vector<8x32xf32>
    %243 = arith.mulf %242, %202 : vector<8x32xf32>
    %244 = vector.extract_strided_slice %241 {offsets = [0, 0], sizes = [8, 32], strides = [1, 1]} : vector<8x128xf32> to vector<8x32xf32>
    %245 = vector.extract_strided_slice %241 {offsets = [0, 64], sizes = [8, 32], strides = [1, 1]} : vector<8x128xf32> to vector<8x32xf32>
    %246 = arith.mulf %244, %245 : vector<8x32xf32>
    %247 = arith.addf %243, %246 : vector<8x32xf32>
    %248 = vector.extract_strided_slice %241 {offsets = [0, 96], sizes = [8, 32], strides = [1, 1]} : vector<8x128xf32> to vector<8x32xf32>
    %249 = math.tanh %247 : vector<8x32xf32>
    %250 = arith.mulf %248, %249 : vector<8x32xf32>
    %c5_i32 = arith.constant 5 : i32
    %c8_i32_54 = arith.constant 8 : i32
    %251 = arith.muli %c5_i32, %c8_i32_54 : i32
    %252 = tpu.assume_multiple %251, 8 : i32
    %253 = arith.index_cast %252 : i32 to index
    %c0_55 = arith.constant 0 : index
    %254 = vector.load %arg11[%253, %c0_55] : memref<128x128xf32, #tpu.memory_space<vmem>>, vector<8x128xf32>
    %255 = arith.truncf %228 : vector<8x32xf32> to vector<8x32xbf16>
    %cst_56 = arith.constant dense<0.000000e+00> : vector<8x128xf32>
    %256 = tpu.matmul %255, %7, %cst_56 {dimension_numbers = #tpu.dot_dimension_numbers<[1], [0], [0], [1], [0, 0, 1, 1], [], []>} : vector<8x32xbf16>, vector<32x128xbf16>, vector<8x128xf32> -> vector<8x128xf32>
    %257 = arith.addf %254, %256 : vector<8x128xf32>
    %258 = arith.negf %257 : vector<8x128xf32>
    %259 = math.exp %258 : vector<8x128xf32>
    %cst_57 = arith.constant 1.000000e+00 : f32
    %260 = vector.broadcast %cst_57 : f32 to vector<8x128xf32>
    %261 = arith.addf %260, %259 : vector<8x128xf32>
    %262 = arith.divf %260, %261 : vector<8x128xf32>
    %263 = arith.mulf %262, %21 : vector<8x128xf32>
    %264 = arith.addf %263, %24 : vector<8x128xf32>
    %265 = vector.extract_strided_slice %264 {offsets = [0, 32], sizes = [8, 32], strides = [1, 1]} : vector<8x128xf32> to vector<8x32xf32>
    %266 = arith.mulf %265, %225 : vector<8x32xf32>
    %267 = vector.extract_strided_slice %264 {offsets = [0, 0], sizes = [8, 32], strides = [1, 1]} : vector<8x128xf32> to vector<8x32xf32>
    %268 = vector.extract_strided_slice %264 {offsets = [0, 64], sizes = [8, 32], strides = [1, 1]} : vector<8x128xf32> to vector<8x32xf32>
    %269 = arith.mulf %267, %268 : vector<8x32xf32>
    %270 = arith.addf %266, %269 : vector<8x32xf32>
    %271 = vector.extract_strided_slice %264 {offsets = [0, 96], sizes = [8, 32], strides = [1, 1]} : vector<8x128xf32> to vector<8x32xf32>
    %272 = math.tanh %270 : vector<8x32xf32>
    %273 = arith.mulf %271, %272 : vector<8x32xf32>
    %274 = arith.truncf %273 : vector<8x32xf32> to vector<8x32xbf16>
    %cst_58 = arith.constant dense<0.000000e+00> : vector<8x128xf32>
    %275 = tpu.matmul %274, %8, %cst_58 {dimension_numbers = #tpu.dot_dimension_numbers<[1], [0], [0], [1], [0, 0, 1, 1], [], []>} : vector<8x32xbf16>, vector<32x128xbf16>, vector<8x128xf32> -> vector<8x128xf32>
    %276 = arith.truncf %250 : vector<8x32xf32> to vector<8x32xbf16>
    %cst_59 = arith.constant dense<0.000000e+00> : vector<8x128xf32>
    %277 = tpu.matmul %276, %9, %cst_59 {dimension_numbers = #tpu.dot_dimension_numbers<[1], [0], [0], [1], [0, 0, 1, 1], [], []>} : vector<8x32xbf16>, vector<32x128xbf16>, vector<8x128xf32> -> vector<8x128xf32>
    %278 = arith.addf %275, %277 : vector<8x128xf32>
    %279 = arith.addf %278, %12 : vector<8x128xf32>
    %280 = arith.negf %279 : vector<8x128xf32>
    %281 = math.exp %280 : vector<8x128xf32>
    %cst_60 = arith.constant 1.000000e+00 : f32
    %282 = vector.broadcast %cst_60 : f32 to vector<8x128xf32>
    %283 = arith.addf %282, %281 : vector<8x128xf32>
    %284 = arith.divf %282, %283 : vector<8x128xf32>
    %285 = arith.mulf %284, %21 : vector<8x128xf32>
    %286 = arith.addf %285, %24 : vector<8x128xf32>
    %287 = vector.extract_strided_slice %286 {offsets = [0, 32], sizes = [8, 32], strides = [1, 1]} : vector<8x128xf32> to vector<8x32xf32>
    %288 = arith.mulf %287, %247 : vector<8x32xf32>
    %289 = vector.extract_strided_slice %286 {offsets = [0, 0], sizes = [8, 32], strides = [1, 1]} : vector<8x128xf32> to vector<8x32xf32>
    %290 = vector.extract_strided_slice %286 {offsets = [0, 64], sizes = [8, 32], strides = [1, 1]} : vector<8x128xf32> to vector<8x32xf32>
    %291 = arith.mulf %289, %290 : vector<8x32xf32>
    %292 = arith.addf %288, %291 : vector<8x32xf32>
    %293 = vector.extract_strided_slice %286 {offsets = [0, 96], sizes = [8, 32], strides = [1, 1]} : vector<8x128xf32> to vector<8x32xf32>
    %294 = math.tanh %292 : vector<8x32xf32>
    %295 = arith.mulf %293, %294 : vector<8x32xf32>
    %c6_i32 = arith.constant 6 : i32
    %c8_i32_61 = arith.constant 8 : i32
    %296 = arith.muli %c6_i32, %c8_i32_61 : i32
    %297 = tpu.assume_multiple %296, 8 : i32
    %298 = arith.index_cast %297 : i32 to index
    %c0_62 = arith.constant 0 : index
    %299 = vector.load %arg11[%298, %c0_62] : memref<128x128xf32, #tpu.memory_space<vmem>>, vector<8x128xf32>
    %300 = arith.truncf %273 : vector<8x32xf32> to vector<8x32xbf16>
    %cst_63 = arith.constant dense<0.000000e+00> : vector<8x128xf32>
    %301 = tpu.matmul %300, %7, %cst_63 {dimension_numbers = #tpu.dot_dimension_numbers<[1], [0], [0], [1], [0, 0, 1, 1], [], []>} : vector<8x32xbf16>, vector<32x128xbf16>, vector<8x128xf32> -> vector<8x128xf32>
    %302 = arith.addf %299, %301 : vector<8x128xf32>
    %303 = arith.negf %302 : vector<8x128xf32>
    %304 = math.exp %303 : vector<8x128xf32>
    %cst_64 = arith.constant 1.000000e+00 : f32
    %305 = vector.broadcast %cst_64 : f32 to vector<8x128xf32>
    %306 = arith.addf %305, %304 : vector<8x128xf32>
    %307 = arith.divf %305, %306 : vector<8x128xf32>
    %308 = arith.mulf %307, %21 : vector<8x128xf32>
    %309 = arith.addf %308, %24 : vector<8x128xf32>
    %310 = vector.extract_strided_slice %309 {offsets = [0, 32], sizes = [8, 32], strides = [1, 1]} : vector<8x128xf32> to vector<8x32xf32>
    %311 = arith.mulf %310, %270 : vector<8x32xf32>
    %312 = vector.extract_strided_slice %309 {offsets = [0, 0], sizes = [8, 32], strides = [1, 1]} : vector<8x128xf32> to vector<8x32xf32>
    %313 = vector.extract_strided_slice %309 {offsets = [0, 64], sizes = [8, 32], strides = [1, 1]} : vector<8x128xf32> to vector<8x32xf32>
    %314 = arith.mulf %312, %313 : vector<8x32xf32>
    %315 = arith.addf %311, %314 : vector<8x32xf32>
    %316 = vector.extract_strided_slice %309 {offsets = [0, 96], sizes = [8, 32], strides = [1, 1]} : vector<8x128xf32> to vector<8x32xf32>
    %317 = math.tanh %315 : vector<8x32xf32>
    %318 = arith.mulf %316, %317 : vector<8x32xf32>
    %319 = arith.truncf %318 : vector<8x32xf32> to vector<8x32xbf16>
    %cst_65 = arith.constant dense<0.000000e+00> : vector<8x128xf32>
    %320 = tpu.matmul %319, %8, %cst_65 {dimension_numbers = #tpu.dot_dimension_numbers<[1], [0], [0], [1], [0, 0, 1, 1], [], []>} : vector<8x32xbf16>, vector<32x128xbf16>, vector<8x128xf32> -> vector<8x128xf32>
    %321 = arith.truncf %295 : vector<8x32xf32> to vector<8x32xbf16>
    %cst_66 = arith.constant dense<0.000000e+00> : vector<8x128xf32>
    %322 = tpu.matmul %321, %9, %cst_66 {dimension_numbers = #tpu.dot_dimension_numbers<[1], [0], [0], [1], [0, 0, 1, 1], [], []>} : vector<8x32xbf16>, vector<32x128xbf16>, vector<8x128xf32> -> vector<8x128xf32>
    %323 = arith.addf %320, %322 : vector<8x128xf32>
    %324 = arith.addf %323, %12 : vector<8x128xf32>
    %325 = arith.negf %324 : vector<8x128xf32>
    %326 = math.exp %325 : vector<8x128xf32>
    %cst_67 = arith.constant 1.000000e+00 : f32
    %327 = vector.broadcast %cst_67 : f32 to vector<8x128xf32>
    %328 = arith.addf %327, %326 : vector<8x128xf32>
    %329 = arith.divf %327, %328 : vector<8x128xf32>
    %330 = arith.mulf %329, %21 : vector<8x128xf32>
    %331 = arith.addf %330, %24 : vector<8x128xf32>
    %332 = vector.extract_strided_slice %331 {offsets = [0, 32], sizes = [8, 32], strides = [1, 1]} : vector<8x128xf32> to vector<8x32xf32>
    %333 = arith.mulf %332, %292 : vector<8x32xf32>
    %334 = vector.extract_strided_slice %331 {offsets = [0, 0], sizes = [8, 32], strides = [1, 1]} : vector<8x128xf32> to vector<8x32xf32>
    %335 = vector.extract_strided_slice %331 {offsets = [0, 64], sizes = [8, 32], strides = [1, 1]} : vector<8x128xf32> to vector<8x32xf32>
    %336 = arith.mulf %334, %335 : vector<8x32xf32>
    %337 = arith.addf %333, %336 : vector<8x32xf32>
    %338 = vector.extract_strided_slice %331 {offsets = [0, 96], sizes = [8, 32], strides = [1, 1]} : vector<8x128xf32> to vector<8x32xf32>
    %339 = math.tanh %337 : vector<8x32xf32>
    %340 = arith.mulf %338, %339 : vector<8x32xf32>
    %c7_i32 = arith.constant 7 : i32
    %c8_i32_68 = arith.constant 8 : i32
    %341 = arith.muli %c7_i32, %c8_i32_68 : i32
    %342 = tpu.assume_multiple %341, 8 : i32
    %343 = arith.index_cast %342 : i32 to index
    %c0_69 = arith.constant 0 : index
    %344 = vector.load %arg11[%343, %c0_69] : memref<128x128xf32, #tpu.memory_space<vmem>>, vector<8x128xf32>
    %345 = arith.truncf %318 : vector<8x32xf32> to vector<8x32xbf16>
    %cst_70 = arith.constant dense<0.000000e+00> : vector<8x128xf32>
    %346 = tpu.matmul %345, %7, %cst_70 {dimension_numbers = #tpu.dot_dimension_numbers<[1], [0], [0], [1], [0, 0, 1, 1], [], []>} : vector<8x32xbf16>, vector<32x128xbf16>, vector<8x128xf32> -> vector<8x128xf32>
    %347 = arith.addf %344, %346 : vector<8x128xf32>
    %348 = arith.negf %347 : vector<8x128xf32>
    %349 = math.exp %348 : vector<8x128xf32>
    %cst_71 = arith.constant 1.000000e+00 : f32
    %350 = vector.broadcast %cst_71 : f32 to vector<8x128xf32>
    %351 = arith.addf %350, %349 : vector<8x128xf32>
    %352 = arith.divf %350, %351 : vector<8x128xf32>
    %353 = arith.mulf %352, %21 : vector<8x128xf32>
    %354 = arith.addf %353, %24 : vector<8x128xf32>
    %355 = vector.extract_strided_slice %354 {offsets = [0, 32], sizes = [8, 32], strides = [1, 1]} : vector<8x128xf32> to vector<8x32xf32>
    %356 = arith.mulf %355, %315 : vector<8x32xf32>
    %357 = vector.extract_strided_slice %354 {offsets = [0, 0], sizes = [8, 32], strides = [1, 1]} : vector<8x128xf32> to vector<8x32xf32>
    %358 = vector.extract_strided_slice %354 {offsets = [0, 64], sizes = [8, 32], strides = [1, 1]} : vector<8x128xf32> to vector<8x32xf32>
    %359 = arith.mulf %357, %358 : vector<8x32xf32>
    %360 = arith.addf %356, %359 : vector<8x32xf32>
    %361 = vector.extract_strided_slice %354 {offsets = [0, 96], sizes = [8, 32], strides = [1, 1]} : vector<8x128xf32> to vector<8x32xf32>
    %362 = math.tanh %360 : vector<8x32xf32>
    %363 = arith.mulf %361, %362 : vector<8x32xf32>
    %364 = arith.truncf %363 : vector<8x32xf32> to vector<8x32xbf16>
    %cst_72 = arith.constant dense<0.000000e+00> : vector<8x128xf32>
    %365 = tpu.matmul %364, %8, %cst_72 {dimension_numbers = #tpu.dot_dimension_numbers<[1], [0], [0], [1], [0, 0, 1, 1], [], []>} : vector<8x32xbf16>, vector<32x128xbf16>, vector<8x128xf32> -> vector<8x128xf32>
    %366 = arith.truncf %340 : vector<8x32xf32> to vector<8x32xbf16>
    %cst_73 = arith.constant dense<0.000000e+00> : vector<8x128xf32>
    %367 = tpu.matmul %366, %9, %cst_73 {dimension_numbers = #tpu.dot_dimension_numbers<[1], [0], [0], [1], [0, 0, 1, 1], [], []>} : vector<8x32xbf16>, vector<32x128xbf16>, vector<8x128xf32> -> vector<8x128xf32>
    %368 = arith.addf %365, %367 : vector<8x128xf32>
    %369 = arith.addf %368, %12 : vector<8x128xf32>
    %370 = arith.negf %369 : vector<8x128xf32>
    %371 = math.exp %370 : vector<8x128xf32>
    %cst_74 = arith.constant 1.000000e+00 : f32
    %372 = vector.broadcast %cst_74 : f32 to vector<8x128xf32>
    %373 = arith.addf %372, %371 : vector<8x128xf32>
    %374 = arith.divf %372, %373 : vector<8x128xf32>
    %375 = arith.mulf %374, %21 : vector<8x128xf32>
    %376 = arith.addf %375, %24 : vector<8x128xf32>
    %377 = vector.extract_strided_slice %376 {offsets = [0, 32], sizes = [8, 32], strides = [1, 1]} : vector<8x128xf32> to vector<8x32xf32>
    %378 = arith.mulf %377, %337 : vector<8x32xf32>
    %379 = vector.extract_strided_slice %376 {offsets = [0, 0], sizes = [8, 32], strides = [1, 1]} : vector<8x128xf32> to vector<8x32xf32>
    %380 = vector.extract_strided_slice %376 {offsets = [0, 64], sizes = [8, 32], strides = [1, 1]} : vector<8x128xf32> to vector<8x32xf32>
    %381 = arith.mulf %379, %380 : vector<8x32xf32>
    %382 = arith.addf %378, %381 : vector<8x32xf32>
    %383 = vector.extract_strided_slice %376 {offsets = [0, 96], sizes = [8, 32], strides = [1, 1]} : vector<8x128xf32> to vector<8x32xf32>
    %384 = math.tanh %382 : vector<8x32xf32>
    %385 = arith.mulf %383, %384 : vector<8x32xf32>
    %c8_i32_75 = arith.constant 8 : i32
    %c8_i32_76 = arith.constant 8 : i32
    %386 = arith.muli %c8_i32_75, %c8_i32_76 : i32
    %387 = tpu.assume_multiple %386, 8 : i32
    %388 = arith.index_cast %387 : i32 to index
    %c0_77 = arith.constant 0 : index
    %389 = vector.load %arg11[%388, %c0_77] : memref<128x128xf32, #tpu.memory_space<vmem>>, vector<8x128xf32>
    %390 = arith.truncf %363 : vector<8x32xf32> to vector<8x32xbf16>
    %cst_78 = arith.constant dense<0.000000e+00> : vector<8x128xf32>
    %391 = tpu.matmul %390, %7, %cst_78 {dimension_numbers = #tpu.dot_dimension_numbers<[1], [0], [0], [1], [0, 0, 1, 1], [], []>} : vector<8x32xbf16>, vector<32x128xbf16>, vector<8x128xf32> -> vector<8x128xf32>
    %392 = arith.addf %389, %391 : vector<8x128xf32>
    %393 = arith.negf %392 : vector<8x128xf32>
    %394 = math.exp %393 : vector<8x128xf32>
    %cst_79 = arith.constant 1.000000e+00 : f32
    %395 = vector.broadcast %cst_79 : f32 to vector<8x128xf32>
    %396 = arith.addf %395, %394 : vector<8x128xf32>
    %397 = arith.divf %395, %396 : vector<8x128xf32>
    %398 = arith.mulf %397, %21 : vector<8x128xf32>
    %399 = arith.addf %398, %24 : vector<8x128xf32>
    %400 = vector.extract_strided_slice %399 {offsets = [0, 32], sizes = [8, 32], strides = [1, 1]} : vector<8x128xf32> to vector<8x32xf32>
    %401 = arith.mulf %400, %360 : vector<8x32xf32>
    %402 = vector.extract_strided_slice %399 {offsets = [0, 0], sizes = [8, 32], strides = [1, 1]} : vector<8x128xf32> to vector<8x32xf32>
    %403 = vector.extract_strided_slice %399 {offsets = [0, 64], sizes = [8, 32], strides = [1, 1]} : vector<8x128xf32> to vector<8x32xf32>
    %404 = arith.mulf %402, %403 : vector<8x32xf32>
    %405 = arith.addf %401, %404 : vector<8x32xf32>
    %406 = vector.extract_strided_slice %399 {offsets = [0, 96], sizes = [8, 32], strides = [1, 1]} : vector<8x128xf32> to vector<8x32xf32>
    %407 = math.tanh %405 : vector<8x32xf32>
    %408 = arith.mulf %406, %407 : vector<8x32xf32>
    %409 = arith.truncf %408 : vector<8x32xf32> to vector<8x32xbf16>
    %cst_80 = arith.constant dense<0.000000e+00> : vector<8x128xf32>
    %410 = tpu.matmul %409, %8, %cst_80 {dimension_numbers = #tpu.dot_dimension_numbers<[1], [0], [0], [1], [0, 0, 1, 1], [], []>} : vector<8x32xbf16>, vector<32x128xbf16>, vector<8x128xf32> -> vector<8x128xf32>
    %411 = arith.truncf %385 : vector<8x32xf32> to vector<8x32xbf16>
    %cst_81 = arith.constant dense<0.000000e+00> : vector<8x128xf32>
    %412 = tpu.matmul %411, %9, %cst_81 {dimension_numbers = #tpu.dot_dimension_numbers<[1], [0], [0], [1], [0, 0, 1, 1], [], []>} : vector<8x32xbf16>, vector<32x128xbf16>, vector<8x128xf32> -> vector<8x128xf32>
    %413 = arith.addf %410, %412 : vector<8x128xf32>
    %414 = arith.addf %413, %12 : vector<8x128xf32>
    %415 = arith.negf %414 : vector<8x128xf32>
    %416 = math.exp %415 : vector<8x128xf32>
    %cst_82 = arith.constant 1.000000e+00 : f32
    %417 = vector.broadcast %cst_82 : f32 to vector<8x128xf32>
    %418 = arith.addf %417, %416 : vector<8x128xf32>
    %419 = arith.divf %417, %418 : vector<8x128xf32>
    %420 = arith.mulf %419, %21 : vector<8x128xf32>
    %421 = arith.addf %420, %24 : vector<8x128xf32>
    %422 = vector.extract_strided_slice %421 {offsets = [0, 32], sizes = [8, 32], strides = [1, 1]} : vector<8x128xf32> to vector<8x32xf32>
    %423 = arith.mulf %422, %382 : vector<8x32xf32>
    %424 = vector.extract_strided_slice %421 {offsets = [0, 0], sizes = [8, 32], strides = [1, 1]} : vector<8x128xf32> to vector<8x32xf32>
    %425 = vector.extract_strided_slice %421 {offsets = [0, 64], sizes = [8, 32], strides = [1, 1]} : vector<8x128xf32> to vector<8x32xf32>
    %426 = arith.mulf %424, %425 : vector<8x32xf32>
    %427 = arith.addf %423, %426 : vector<8x32xf32>
    %428 = vector.extract_strided_slice %421 {offsets = [0, 96], sizes = [8, 32], strides = [1, 1]} : vector<8x128xf32> to vector<8x32xf32>
    %429 = math.tanh %427 : vector<8x32xf32>
    %430 = arith.mulf %428, %429 : vector<8x32xf32>
    %c9_i32 = arith.constant 9 : i32
    %c8_i32_83 = arith.constant 8 : i32
    %431 = arith.muli %c9_i32, %c8_i32_83 : i32
    %432 = tpu.assume_multiple %431, 8 : i32
    %433 = arith.index_cast %432 : i32 to index
    %c0_84 = arith.constant 0 : index
    %434 = vector.load %arg11[%433, %c0_84] : memref<128x128xf32, #tpu.memory_space<vmem>>, vector<8x128xf32>
    %435 = arith.truncf %408 : vector<8x32xf32> to vector<8x32xbf16>
    %cst_85 = arith.constant dense<0.000000e+00> : vector<8x128xf32>
    %436 = tpu.matmul %435, %7, %cst_85 {dimension_numbers = #tpu.dot_dimension_numbers<[1], [0], [0], [1], [0, 0, 1, 1], [], []>} : vector<8x32xbf16>, vector<32x128xbf16>, vector<8x128xf32> -> vector<8x128xf32>
    %437 = arith.addf %434, %436 : vector<8x128xf32>
    %438 = arith.negf %437 : vector<8x128xf32>
    %439 = math.exp %438 : vector<8x128xf32>
    %cst_86 = arith.constant 1.000000e+00 : f32
    %440 = vector.broadcast %cst_86 : f32 to vector<8x128xf32>
    %441 = arith.addf %440, %439 : vector<8x128xf32>
    %442 = arith.divf %440, %441 : vector<8x128xf32>
    %443 = arith.mulf %442, %21 : vector<8x128xf32>
    %444 = arith.addf %443, %24 : vector<8x128xf32>
    %445 = vector.extract_strided_slice %444 {offsets = [0, 32], sizes = [8, 32], strides = [1, 1]} : vector<8x128xf32> to vector<8x32xf32>
    %446 = arith.mulf %445, %405 : vector<8x32xf32>
    %447 = vector.extract_strided_slice %444 {offsets = [0, 0], sizes = [8, 32], strides = [1, 1]} : vector<8x128xf32> to vector<8x32xf32>
    %448 = vector.extract_strided_slice %444 {offsets = [0, 64], sizes = [8, 32], strides = [1, 1]} : vector<8x128xf32> to vector<8x32xf32>
    %449 = arith.mulf %447, %448 : vector<8x32xf32>
    %450 = arith.addf %446, %449 : vector<8x32xf32>
    %451 = vector.extract_strided_slice %444 {offsets = [0, 96], sizes = [8, 32], strides = [1, 1]} : vector<8x128xf32> to vector<8x32xf32>
    %452 = math.tanh %450 : vector<8x32xf32>
    %453 = arith.mulf %451, %452 : vector<8x32xf32>
    %454 = arith.truncf %453 : vector<8x32xf32> to vector<8x32xbf16>
    %cst_87 = arith.constant dense<0.000000e+00> : vector<8x128xf32>
    %455 = tpu.matmul %454, %8, %cst_87 {dimension_numbers = #tpu.dot_dimension_numbers<[1], [0], [0], [1], [0, 0, 1, 1], [], []>} : vector<8x32xbf16>, vector<32x128xbf16>, vector<8x128xf32> -> vector<8x128xf32>
    %456 = arith.truncf %430 : vector<8x32xf32> to vector<8x32xbf16>
    %cst_88 = arith.constant dense<0.000000e+00> : vector<8x128xf32>
    %457 = tpu.matmul %456, %9, %cst_88 {dimension_numbers = #tpu.dot_dimension_numbers<[1], [0], [0], [1], [0, 0, 1, 1], [], []>} : vector<8x32xbf16>, vector<32x128xbf16>, vector<8x128xf32> -> vector<8x128xf32>
    %458 = arith.addf %455, %457 : vector<8x128xf32>
    %459 = arith.addf %458, %12 : vector<8x128xf32>
    %460 = arith.negf %459 : vector<8x128xf32>
    %461 = math.exp %460 : vector<8x128xf32>
    %cst_89 = arith.constant 1.000000e+00 : f32
    %462 = vector.broadcast %cst_89 : f32 to vector<8x128xf32>
    %463 = arith.addf %462, %461 : vector<8x128xf32>
    %464 = arith.divf %462, %463 : vector<8x128xf32>
    %465 = arith.mulf %464, %21 : vector<8x128xf32>
    %466 = arith.addf %465, %24 : vector<8x128xf32>
    %467 = vector.extract_strided_slice %466 {offsets = [0, 32], sizes = [8, 32], strides = [1, 1]} : vector<8x128xf32> to vector<8x32xf32>
    %468 = arith.mulf %467, %427 : vector<8x32xf32>
    %469 = vector.extract_strided_slice %466 {offsets = [0, 0], sizes = [8, 32], strides = [1, 1]} : vector<8x128xf32> to vector<8x32xf32>
    %470 = vector.extract_strided_slice %466 {offsets = [0, 64], sizes = [8, 32], strides = [1, 1]} : vector<8x128xf32> to vector<8x32xf32>
    %471 = arith.mulf %469, %470 : vector<8x32xf32>
    %472 = arith.addf %468, %471 : vector<8x32xf32>
    %473 = vector.extract_strided_slice %466 {offsets = [0, 96], sizes = [8, 32], strides = [1, 1]} : vector<8x128xf32> to vector<8x32xf32>
    %474 = math.tanh %472 : vector<8x32xf32>
    %475 = arith.mulf %473, %474 : vector<8x32xf32>
    %c10_i32 = arith.constant 10 : i32
    %c8_i32_90 = arith.constant 8 : i32
    %476 = arith.muli %c10_i32, %c8_i32_90 : i32
    %477 = tpu.assume_multiple %476, 8 : i32
    %478 = arith.index_cast %477 : i32 to index
    %c0_91 = arith.constant 0 : index
    %479 = vector.load %arg11[%478, %c0_91] : memref<128x128xf32, #tpu.memory_space<vmem>>, vector<8x128xf32>
    %480 = arith.truncf %453 : vector<8x32xf32> to vector<8x32xbf16>
    %cst_92 = arith.constant dense<0.000000e+00> : vector<8x128xf32>
    %481 = tpu.matmul %480, %7, %cst_92 {dimension_numbers = #tpu.dot_dimension_numbers<[1], [0], [0], [1], [0, 0, 1, 1], [], []>} : vector<8x32xbf16>, vector<32x128xbf16>, vector<8x128xf32> -> vector<8x128xf32>
    %482 = arith.addf %479, %481 : vector<8x128xf32>
    %483 = arith.negf %482 : vector<8x128xf32>
    %484 = math.exp %483 : vector<8x128xf32>
    %cst_93 = arith.constant 1.000000e+00 : f32
    %485 = vector.broadcast %cst_93 : f32 to vector<8x128xf32>
    %486 = arith.addf %485, %484 : vector<8x128xf32>
    %487 = arith.divf %485, %486 : vector<8x128xf32>
    %488 = arith.mulf %487, %21 : vector<8x128xf32>
    %489 = arith.addf %488, %24 : vector<8x128xf32>
    %490 = vector.extract_strided_slice %489 {offsets = [0, 32], sizes = [8, 32], strides = [1, 1]} : vector<8x128xf32> to vector<8x32xf32>
    %491 = arith.mulf %490, %450 : vector<8x32xf32>
    %492 = vector.extract_strided_slice %489 {offsets = [0, 0], sizes = [8, 32], strides = [1, 1]} : vector<8x128xf32> to vector<8x32xf32>
    %493 = vector.extract_strided_slice %489 {offsets = [0, 64], sizes = [8, 32], strides = [1, 1]} : vector<8x128xf32> to vector<8x32xf32>
    %494 = arith.mulf %492, %493 : vector<8x32xf32>
    %495 = arith.addf %491, %494 : vector<8x32xf32>
    %496 = vector.extract_strided_slice %489 {offsets = [0, 96], sizes = [8, 32], strides = [1, 1]} : vector<8x128xf32> to vector<8x32xf32>
    %497 = math.tanh %495 : vector<8x32xf32>
    %498 = arith.mulf %496, %497 : vector<8x32xf32>
    %499 = arith.truncf %498 : vector<8x32xf32> to vector<8x32xbf16>
    %cst_94 = arith.constant dense<0.000000e+00> : vector<8x128xf32>
    %500 = tpu.matmul %499, %8, %cst_94 {dimension_numbers = #tpu.dot_dimension_numbers<[1], [0], [0], [1], [0, 0, 1, 1], [], []>} : vector<8x32xbf16>, vector<32x128xbf16>, vector<8x128xf32> -> vector<8x128xf32>
    %501 = arith.truncf %475 : vector<8x32xf32> to vector<8x32xbf16>
    %cst_95 = arith.constant dense<0.000000e+00> : vector<8x128xf32>
    %502 = tpu.matmul %501, %9, %cst_95 {dimension_numbers = #tpu.dot_dimension_numbers<[1], [0], [0], [1], [0, 0, 1, 1], [], []>} : vector<8x32xbf16>, vector<32x128xbf16>, vector<8x128xf32> -> vector<8x128xf32>
    %503 = arith.addf %500, %502 : vector<8x128xf32>
    %504 = arith.addf %503, %12 : vector<8x128xf32>
    %505 = arith.negf %504 : vector<8x128xf32>
    %506 = math.exp %505 : vector<8x128xf32>
    %cst_96 = arith.constant 1.000000e+00 : f32
    %507 = vector.broadcast %cst_96 : f32 to vector<8x128xf32>
    %508 = arith.addf %507, %506 : vector<8x128xf32>
    %509 = arith.divf %507, %508 : vector<8x128xf32>
    %510 = arith.mulf %509, %21 : vector<8x128xf32>
    %511 = arith.addf %510, %24 : vector<8x128xf32>
    %512 = vector.extract_strided_slice %511 {offsets = [0, 32], sizes = [8, 32], strides = [1, 1]} : vector<8x128xf32> to vector<8x32xf32>
    %513 = arith.mulf %512, %472 : vector<8x32xf32>
    %514 = vector.extract_strided_slice %511 {offsets = [0, 0], sizes = [8, 32], strides = [1, 1]} : vector<8x128xf32> to vector<8x32xf32>
    %515 = vector.extract_strided_slice %511 {offsets = [0, 64], sizes = [8, 32], strides = [1, 1]} : vector<8x128xf32> to vector<8x32xf32>
    %516 = arith.mulf %514, %515 : vector<8x32xf32>
    %517 = arith.addf %513, %516 : vector<8x32xf32>
    %518 = vector.extract_strided_slice %511 {offsets = [0, 96], sizes = [8, 32], strides = [1, 1]} : vector<8x128xf32> to vector<8x32xf32>
    %519 = math.tanh %517 : vector<8x32xf32>
    %520 = arith.mulf %518, %519 : vector<8x32xf32>
    %c11_i32 = arith.constant 11 : i32
    %c8_i32_97 = arith.constant 8 : i32
    %521 = arith.muli %c11_i32, %c8_i32_97 : i32
    %522 = tpu.assume_multiple %521, 8 : i32
    %523 = arith.index_cast %522 : i32 to index
    %c0_98 = arith.constant 0 : index
    %524 = vector.load %arg11[%523, %c0_98] : memref<128x128xf32, #tpu.memory_space<vmem>>, vector<8x128xf32>
    %525 = arith.truncf %498 : vector<8x32xf32> to vector<8x32xbf16>
    %cst_99 = arith.constant dense<0.000000e+00> : vector<8x128xf32>
    %526 = tpu.matmul %525, %7, %cst_99 {dimension_numbers = #tpu.dot_dimension_numbers<[1], [0], [0], [1], [0, 0, 1, 1], [], []>} : vector<8x32xbf16>, vector<32x128xbf16>, vector<8x128xf32> -> vector<8x128xf32>
    %527 = arith.addf %524, %526 : vector<8x128xf32>
    %528 = arith.negf %527 : vector<8x128xf32>
    %529 = math.exp %528 : vector<8x128xf32>
    %cst_100 = arith.constant 1.000000e+00 : f32
    %530 = vector.broadcast %cst_100 : f32 to vector<8x128xf32>
    %531 = arith.addf %530, %529 : vector<8x128xf32>
    %532 = arith.divf %530, %531 : vector<8x128xf32>
    %533 = arith.mulf %532, %21 : vector<8x128xf32>
    %534 = arith.addf %533, %24 : vector<8x128xf32>
    %535 = vector.extract_strided_slice %534 {offsets = [0, 32], sizes = [8, 32], strides = [1, 1]} : vector<8x128xf32> to vector<8x32xf32>
    %536 = arith.mulf %535, %495 : vector<8x32xf32>
    %537 = vector.extract_strided_slice %534 {offsets = [0, 0], sizes = [8, 32], strides = [1, 1]} : vector<8x128xf32> to vector<8x32xf32>
    %538 = vector.extract_strided_slice %534 {offsets = [0, 64], sizes = [8, 32], strides = [1, 1]} : vector<8x128xf32> to vector<8x32xf32>
    %539 = arith.mulf %537, %538 : vector<8x32xf32>
    %540 = arith.addf %536, %539 : vector<8x32xf32>
    %541 = vector.extract_strided_slice %534 {offsets = [0, 96], sizes = [8, 32], strides = [1, 1]} : vector<8x128xf32> to vector<8x32xf32>
    %542 = math.tanh %540 : vector<8x32xf32>
    %543 = arith.mulf %541, %542 : vector<8x32xf32>
    %544 = arith.truncf %543 : vector<8x32xf32> to vector<8x32xbf16>
    %cst_101 = arith.constant dense<0.000000e+00> : vector<8x128xf32>
    %545 = tpu.matmul %544, %8, %cst_101 {dimension_numbers = #tpu.dot_dimension_numbers<[1], [0], [0], [1], [0, 0, 1, 1], [], []>} : vector<8x32xbf16>, vector<32x128xbf16>, vector<8x128xf32> -> vector<8x128xf32>
    %546 = arith.truncf %520 : vector<8x32xf32> to vector<8x32xbf16>
    %cst_102 = arith.constant dense<0.000000e+00> : vector<8x128xf32>
    %547 = tpu.matmul %546, %9, %cst_102 {dimension_numbers = #tpu.dot_dimension_numbers<[1], [0], [0], [1], [0, 0, 1, 1], [], []>} : vector<8x32xbf16>, vector<32x128xbf16>, vector<8x128xf32> -> vector<8x128xf32>
    %548 = arith.addf %545, %547 : vector<8x128xf32>
    %549 = arith.addf %548, %12 : vector<8x128xf32>
    %550 = arith.negf %549 : vector<8x128xf32>
    %551 = math.exp %550 : vector<8x128xf32>
    %cst_103 = arith.constant 1.000000e+00 : f32
    %552 = vector.broadcast %cst_103 : f32 to vector<8x128xf32>
    %553 = arith.addf %552, %551 : vector<8x128xf32>
    %554 = arith.divf %552, %553 : vector<8x128xf32>
    %555 = arith.mulf %554, %21 : vector<8x128xf32>
    %556 = arith.addf %555, %24 : vector<8x128xf32>
    %557 = vector.extract_strided_slice %556 {offsets = [0, 32], sizes = [8, 32], strides = [1, 1]} : vector<8x128xf32> to vector<8x32xf32>
    %558 = arith.mulf %557, %517 : vector<8x32xf32>
    %559 = vector.extract_strided_slice %556 {offsets = [0, 0], sizes = [8, 32], strides = [1, 1]} : vector<8x128xf32> to vector<8x32xf32>
    %560 = vector.extract_strided_slice %556 {offsets = [0, 64], sizes = [8, 32], strides = [1, 1]} : vector<8x128xf32> to vector<8x32xf32>
    %561 = arith.mulf %559, %560 : vector<8x32xf32>
    %562 = arith.addf %558, %561 : vector<8x32xf32>
    %563 = vector.extract_strided_slice %556 {offsets = [0, 96], sizes = [8, 32], strides = [1, 1]} : vector<8x128xf32> to vector<8x32xf32>
    %564 = math.tanh %562 : vector<8x32xf32>
    %565 = arith.mulf %563, %564 : vector<8x32xf32>
    %c12_i32 = arith.constant 12 : i32
    %c8_i32_104 = arith.constant 8 : i32
    %566 = arith.muli %c12_i32, %c8_i32_104 : i32
    %567 = tpu.assume_multiple %566, 8 : i32
    %568 = arith.index_cast %567 : i32 to index
    %c0_105 = arith.constant 0 : index
    %569 = vector.load %arg11[%568, %c0_105] : memref<128x128xf32, #tpu.memory_space<vmem>>, vector<8x128xf32>
    %570 = arith.truncf %543 : vector<8x32xf32> to vector<8x32xbf16>
    %cst_106 = arith.constant dense<0.000000e+00> : vector<8x128xf32>
    %571 = tpu.matmul %570, %7, %cst_106 {dimension_numbers = #tpu.dot_dimension_numbers<[1], [0], [0], [1], [0, 0, 1, 1], [], []>} : vector<8x32xbf16>, vector<32x128xbf16>, vector<8x128xf32> -> vector<8x128xf32>
    %572 = arith.addf %569, %571 : vector<8x128xf32>
    %573 = arith.negf %572 : vector<8x128xf32>
    %574 = math.exp %573 : vector<8x128xf32>
    %cst_107 = arith.constant 1.000000e+00 : f32
    %575 = vector.broadcast %cst_107 : f32 to vector<8x128xf32>
    %576 = arith.addf %575, %574 : vector<8x128xf32>
    %577 = arith.divf %575, %576 : vector<8x128xf32>
    %578 = arith.mulf %577, %21 : vector<8x128xf32>
    %579 = arith.addf %578, %24 : vector<8x128xf32>
    %580 = vector.extract_strided_slice %579 {offsets = [0, 32], sizes = [8, 32], strides = [1, 1]} : vector<8x128xf32> to vector<8x32xf32>
    %581 = arith.mulf %580, %540 : vector<8x32xf32>
    %582 = vector.extract_strided_slice %579 {offsets = [0, 0], sizes = [8, 32], strides = [1, 1]} : vector<8x128xf32> to vector<8x32xf32>
    %583 = vector.extract_strided_slice %579 {offsets = [0, 64], sizes = [8, 32], strides = [1, 1]} : vector<8x128xf32> to vector<8x32xf32>
    %584 = arith.mulf %582, %583 : vector<8x32xf32>
    %585 = arith.addf %581, %584 : vector<8x32xf32>
    %586 = vector.extract_strided_slice %579 {offsets = [0, 96], sizes = [8, 32], strides = [1, 1]} : vector<8x128xf32> to vector<8x32xf32>
    %587 = math.tanh %585 : vector<8x32xf32>
    %588 = arith.mulf %586, %587 : vector<8x32xf32>
    %589 = arith.truncf %588 : vector<8x32xf32> to vector<8x32xbf16>
    %cst_108 = arith.constant dense<0.000000e+00> : vector<8x128xf32>
    %590 = tpu.matmul %589, %8, %cst_108 {dimension_numbers = #tpu.dot_dimension_numbers<[1], [0], [0], [1], [0, 0, 1, 1], [], []>} : vector<8x32xbf16>, vector<32x128xbf16>, vector<8x128xf32> -> vector<8x128xf32>
    %591 = arith.truncf %565 : vector<8x32xf32> to vector<8x32xbf16>
    %cst_109 = arith.constant dense<0.000000e+00> : vector<8x128xf32>
    %592 = tpu.matmul %591, %9, %cst_109 {dimension_numbers = #tpu.dot_dimension_numbers<[1], [0], [0], [1], [0, 0, 1, 1], [], []>} : vector<8x32xbf16>, vector<32x128xbf16>, vector<8x128xf32> -> vector<8x128xf32>
    %593 = arith.addf %590, %592 : vector<8x128xf32>
    %594 = arith.addf %593, %12 : vector<8x128xf32>
    %595 = arith.negf %594 : vector<8x128xf32>
    %596 = math.exp %595 : vector<8x128xf32>
    %cst_110 = arith.constant 1.000000e+00 : f32
    %597 = vector.broadcast %cst_110 : f32 to vector<8x128xf32>
    %598 = arith.addf %597, %596 : vector<8x128xf32>
    %599 = arith.divf %597, %598 : vector<8x128xf32>
    %600 = arith.mulf %599, %21 : vector<8x128xf32>
    %601 = arith.addf %600, %24 : vector<8x128xf32>
    %602 = vector.extract_strided_slice %601 {offsets = [0, 32], sizes = [8, 32], strides = [1, 1]} : vector<8x128xf32> to vector<8x32xf32>
    %603 = arith.mulf %602, %562 : vector<8x32xf32>
    %604 = vector.extract_strided_slice %601 {offsets = [0, 0], sizes = [8, 32], strides = [1, 1]} : vector<8x128xf32> to vector<8x32xf32>
    %605 = vector.extract_strided_slice %601 {offsets = [0, 64], sizes = [8, 32], strides = [1, 1]} : vector<8x128xf32> to vector<8x32xf32>
    %606 = arith.mulf %604, %605 : vector<8x32xf32>
    %607 = arith.addf %603, %606 : vector<8x32xf32>
    %608 = vector.extract_strided_slice %601 {offsets = [0, 96], sizes = [8, 32], strides = [1, 1]} : vector<8x128xf32> to vector<8x32xf32>
    %609 = math.tanh %607 : vector<8x32xf32>
    %610 = arith.mulf %608, %609 : vector<8x32xf32>
    %c13_i32 = arith.constant 13 : i32
    %c8_i32_111 = arith.constant 8 : i32
    %611 = arith.muli %c13_i32, %c8_i32_111 : i32
    %612 = tpu.assume_multiple %611, 8 : i32
    %613 = arith.index_cast %612 : i32 to index
    %c0_112 = arith.constant 0 : index
    %614 = vector.load %arg11[%613, %c0_112] : memref<128x128xf32, #tpu.memory_space<vmem>>, vector<8x128xf32>
    %615 = arith.truncf %588 : vector<8x32xf32> to vector<8x32xbf16>
    %cst_113 = arith.constant dense<0.000000e+00> : vector<8x128xf32>
    %616 = tpu.matmul %615, %7, %cst_113 {dimension_numbers = #tpu.dot_dimension_numbers<[1], [0], [0], [1], [0, 0, 1, 1], [], []>} : vector<8x32xbf16>, vector<32x128xbf16>, vector<8x128xf32> -> vector<8x128xf32>
    %617 = arith.addf %614, %616 : vector<8x128xf32>
    %618 = arith.negf %617 : vector<8x128xf32>
    %619 = math.exp %618 : vector<8x128xf32>
    %cst_114 = arith.constant 1.000000e+00 : f32
    %620 = vector.broadcast %cst_114 : f32 to vector<8x128xf32>
    %621 = arith.addf %620, %619 : vector<8x128xf32>
    %622 = arith.divf %620, %621 : vector<8x128xf32>
    %623 = arith.mulf %622, %21 : vector<8x128xf32>
    %624 = arith.addf %623, %24 : vector<8x128xf32>
    %625 = vector.extract_strided_slice %624 {offsets = [0, 32], sizes = [8, 32], strides = [1, 1]} : vector<8x128xf32> to vector<8x32xf32>
    %626 = arith.mulf %625, %585 : vector<8x32xf32>
    %627 = vector.extract_strided_slice %624 {offsets = [0, 0], sizes = [8, 32], strides = [1, 1]} : vector<8x128xf32> to vector<8x32xf32>
    %628 = vector.extract_strided_slice %624 {offsets = [0, 64], sizes = [8, 32], strides = [1, 1]} : vector<8x128xf32> to vector<8x32xf32>
    %629 = arith.mulf %627, %628 : vector<8x32xf32>
    %630 = arith.addf %626, %629 : vector<8x32xf32>
    %631 = vector.extract_strided_slice %624 {offsets = [0, 96], sizes = [8, 32], strides = [1, 1]} : vector<8x128xf32> to vector<8x32xf32>
    %632 = math.tanh %630 : vector<8x32xf32>
    %633 = arith.mulf %631, %632 : vector<8x32xf32>
    %634 = arith.truncf %633 : vector<8x32xf32> to vector<8x32xbf16>
    %cst_115 = arith.constant dense<0.000000e+00> : vector<8x128xf32>
    %635 = tpu.matmul %634, %8, %cst_115 {dimension_numbers = #tpu.dot_dimension_numbers<[1], [0], [0], [1], [0, 0, 1, 1], [], []>} : vector<8x32xbf16>, vector<32x128xbf16>, vector<8x128xf32> -> vector<8x128xf32>
    %636 = arith.truncf %610 : vector<8x32xf32> to vector<8x32xbf16>
    %cst_116 = arith.constant dense<0.000000e+00> : vector<8x128xf32>
    %637 = tpu.matmul %636, %9, %cst_116 {dimension_numbers = #tpu.dot_dimension_numbers<[1], [0], [0], [1], [0, 0, 1, 1], [], []>} : vector<8x32xbf16>, vector<32x128xbf16>, vector<8x128xf32> -> vector<8x128xf32>
    %638 = arith.addf %635, %637 : vector<8x128xf32>
    %639 = arith.addf %638, %12 : vector<8x128xf32>
    %640 = arith.negf %639 : vector<8x128xf32>
    %641 = math.exp %640 : vector<8x128xf32>
    %cst_117 = arith.constant 1.000000e+00 : f32
    %642 = vector.broadcast %cst_117 : f32 to vector<8x128xf32>
    %643 = arith.addf %642, %641 : vector<8x128xf32>
    %644 = arith.divf %642, %643 : vector<8x128xf32>
    %645 = arith.mulf %644, %21 : vector<8x128xf32>
    %646 = arith.addf %645, %24 : vector<8x128xf32>
    %647 = vector.extract_strided_slice %646 {offsets = [0, 32], sizes = [8, 32], strides = [1, 1]} : vector<8x128xf32> to vector<8x32xf32>
    %648 = arith.mulf %647, %607 : vector<8x32xf32>
    %649 = vector.extract_strided_slice %646 {offsets = [0, 0], sizes = [8, 32], strides = [1, 1]} : vector<8x128xf32> to vector<8x32xf32>
    %650 = vector.extract_strided_slice %646 {offsets = [0, 64], sizes = [8, 32], strides = [1, 1]} : vector<8x128xf32> to vector<8x32xf32>
    %651 = arith.mulf %649, %650 : vector<8x32xf32>
    %652 = arith.addf %648, %651 : vector<8x32xf32>
    %653 = vector.extract_strided_slice %646 {offsets = [0, 96], sizes = [8, 32], strides = [1, 1]} : vector<8x128xf32> to vector<8x32xf32>
    %654 = math.tanh %652 : vector<8x32xf32>
    %655 = arith.mulf %653, %654 : vector<8x32xf32>
    %c14_i32 = arith.constant 14 : i32
    %c8_i32_118 = arith.constant 8 : i32
    %656 = arith.muli %c14_i32, %c8_i32_118 : i32
    %657 = tpu.assume_multiple %656, 8 : i32
    %658 = arith.index_cast %657 : i32 to index
    %c0_119 = arith.constant 0 : index
    %659 = vector.load %arg11[%658, %c0_119] : memref<128x128xf32, #tpu.memory_space<vmem>>, vector<8x128xf32>
    %660 = arith.truncf %633 : vector<8x32xf32> to vector<8x32xbf16>
    %cst_120 = arith.constant dense<0.000000e+00> : vector<8x128xf32>
    %661 = tpu.matmul %660, %7, %cst_120 {dimension_numbers = #tpu.dot_dimension_numbers<[1], [0], [0], [1], [0, 0, 1, 1], [], []>} : vector<8x32xbf16>, vector<32x128xbf16>, vector<8x128xf32> -> vector<8x128xf32>
    %662 = arith.addf %659, %661 : vector<8x128xf32>
    %663 = arith.negf %662 : vector<8x128xf32>
    %664 = math.exp %663 : vector<8x128xf32>
    %cst_121 = arith.constant 1.000000e+00 : f32
    %665 = vector.broadcast %cst_121 : f32 to vector<8x128xf32>
    %666 = arith.addf %665, %664 : vector<8x128xf32>
    %667 = arith.divf %665, %666 : vector<8x128xf32>
    %668 = arith.mulf %667, %21 : vector<8x128xf32>
    %669 = arith.addf %668, %24 : vector<8x128xf32>
    %670 = vector.extract_strided_slice %669 {offsets = [0, 32], sizes = [8, 32], strides = [1, 1]} : vector<8x128xf32> to vector<8x32xf32>
    %671 = arith.mulf %670, %630 : vector<8x32xf32>
    %672 = vector.extract_strided_slice %669 {offsets = [0, 0], sizes = [8, 32], strides = [1, 1]} : vector<8x128xf32> to vector<8x32xf32>
    %673 = vector.extract_strided_slice %669 {offsets = [0, 64], sizes = [8, 32], strides = [1, 1]} : vector<8x128xf32> to vector<8x32xf32>
    %674 = arith.mulf %672, %673 : vector<8x32xf32>
    %675 = arith.addf %671, %674 : vector<8x32xf32>
    %676 = vector.extract_strided_slice %669 {offsets = [0, 96], sizes = [8, 32], strides = [1, 1]} : vector<8x128xf32> to vector<8x32xf32>
    %677 = math.tanh %675 : vector<8x32xf32>
    %678 = arith.mulf %676, %677 : vector<8x32xf32>
    %679 = arith.truncf %678 : vector<8x32xf32> to vector<8x32xbf16>
    %cst_122 = arith.constant dense<0.000000e+00> : vector<8x128xf32>
    %680 = tpu.matmul %679, %8, %cst_122 {dimension_numbers = #tpu.dot_dimension_numbers<[1], [0], [0], [1], [0, 0, 1, 1], [], []>} : vector<8x32xbf16>, vector<32x128xbf16>, vector<8x128xf32> -> vector<8x128xf32>
    %681 = arith.truncf %655 : vector<8x32xf32> to vector<8x32xbf16>
    %cst_123 = arith.constant dense<0.000000e+00> : vector<8x128xf32>
    %682 = tpu.matmul %681, %9, %cst_123 {dimension_numbers = #tpu.dot_dimension_numbers<[1], [0], [0], [1], [0, 0, 1, 1], [], []>} : vector<8x32xbf16>, vector<32x128xbf16>, vector<8x128xf32> -> vector<8x128xf32>
    %683 = arith.addf %680, %682 : vector<8x128xf32>
    %684 = arith.addf %683, %12 : vector<8x128xf32>
    %685 = arith.negf %684 : vector<8x128xf32>
    %686 = math.exp %685 : vector<8x128xf32>
    %cst_124 = arith.constant 1.000000e+00 : f32
    %687 = vector.broadcast %cst_124 : f32 to vector<8x128xf32>
    %688 = arith.addf %687, %686 : vector<8x128xf32>
    %689 = arith.divf %687, %688 : vector<8x128xf32>
    %690 = arith.mulf %689, %21 : vector<8x128xf32>
    %691 = arith.addf %690, %24 : vector<8x128xf32>
    %692 = vector.extract_strided_slice %691 {offsets = [0, 32], sizes = [8, 32], strides = [1, 1]} : vector<8x128xf32> to vector<8x32xf32>
    %693 = arith.mulf %692, %652 : vector<8x32xf32>
    %694 = vector.extract_strided_slice %691 {offsets = [0, 0], sizes = [8, 32], strides = [1, 1]} : vector<8x128xf32> to vector<8x32xf32>
    %695 = vector.extract_strided_slice %691 {offsets = [0, 64], sizes = [8, 32], strides = [1, 1]} : vector<8x128xf32> to vector<8x32xf32>
    %696 = arith.mulf %694, %695 : vector<8x32xf32>
    %697 = arith.addf %693, %696 : vector<8x32xf32>
    %698 = vector.extract_strided_slice %691 {offsets = [0, 96], sizes = [8, 32], strides = [1, 1]} : vector<8x128xf32> to vector<8x32xf32>
    %699 = math.tanh %697 : vector<8x32xf32>
    %700 = arith.mulf %698, %699 : vector<8x32xf32>
    %c15_i32 = arith.constant 15 : i32
    %c8_i32_125 = arith.constant 8 : i32
    %701 = arith.muli %c15_i32, %c8_i32_125 : i32
    %702 = tpu.assume_multiple %701, 8 : i32
    %703 = arith.index_cast %702 : i32 to index
    %c0_126 = arith.constant 0 : index
    %704 = vector.load %arg11[%703, %c0_126] : memref<128x128xf32, #tpu.memory_space<vmem>>, vector<8x128xf32>
    %705 = arith.truncf %678 : vector<8x32xf32> to vector<8x32xbf16>
    %cst_127 = arith.constant dense<0.000000e+00> : vector<8x128xf32>
    %706 = tpu.matmul %705, %7, %cst_127 {dimension_numbers = #tpu.dot_dimension_numbers<[1], [0], [0], [1], [0, 0, 1, 1], [], []>} : vector<8x32xbf16>, vector<32x128xbf16>, vector<8x128xf32> -> vector<8x128xf32>
    %707 = arith.addf %704, %706 : vector<8x128xf32>
    %708 = arith.negf %707 : vector<8x128xf32>
    %709 = math.exp %708 : vector<8x128xf32>
    %cst_128 = arith.constant 1.000000e+00 : f32
    %710 = vector.broadcast %cst_128 : f32 to vector<8x128xf32>
    %711 = arith.addf %710, %709 : vector<8x128xf32>
    %712 = arith.divf %710, %711 : vector<8x128xf32>
    %713 = arith.mulf %712, %21 : vector<8x128xf32>
    %714 = arith.addf %713, %24 : vector<8x128xf32>
    %715 = vector.extract_strided_slice %714 {offsets = [0, 32], sizes = [8, 32], strides = [1, 1]} : vector<8x128xf32> to vector<8x32xf32>
    %716 = arith.mulf %715, %675 : vector<8x32xf32>
    %717 = vector.extract_strided_slice %714 {offsets = [0, 0], sizes = [8, 32], strides = [1, 1]} : vector<8x128xf32> to vector<8x32xf32>
    %718 = vector.extract_strided_slice %714 {offsets = [0, 64], sizes = [8, 32], strides = [1, 1]} : vector<8x128xf32> to vector<8x32xf32>
    %719 = arith.mulf %717, %718 : vector<8x32xf32>
    %720 = arith.addf %716, %719 : vector<8x32xf32>
    %721 = vector.extract_strided_slice %714 {offsets = [0, 96], sizes = [8, 32], strides = [1, 1]} : vector<8x128xf32> to vector<8x32xf32>
    %722 = math.tanh %720 : vector<8x32xf32>
    %723 = arith.mulf %721, %722 : vector<8x32xf32>
    %724 = arith.truncf %723 : vector<8x32xf32> to vector<8x32xbf16>
    %cst_129 = arith.constant dense<0.000000e+00> : vector<8x128xf32>
    %725 = tpu.matmul %724, %8, %cst_129 {dimension_numbers = #tpu.dot_dimension_numbers<[1], [0], [0], [1], [0, 0, 1, 1], [], []>} : vector<8x32xbf16>, vector<32x128xbf16>, vector<8x128xf32> -> vector<8x128xf32>
    %726 = arith.truncf %700 : vector<8x32xf32> to vector<8x32xbf16>
    %cst_130 = arith.constant dense<0.000000e+00> : vector<8x128xf32>
    %727 = tpu.matmul %726, %9, %cst_130 {dimension_numbers = #tpu.dot_dimension_numbers<[1], [0], [0], [1], [0, 0, 1, 1], [], []>} : vector<8x32xbf16>, vector<32x128xbf16>, vector<8x128xf32> -> vector<8x128xf32>
    %728 = arith.addf %725, %727 : vector<8x128xf32>
    %729 = arith.addf %728, %12 : vector<8x128xf32>
    %730 = arith.negf %729 : vector<8x128xf32>
    %731 = math.exp %730 : vector<8x128xf32>
    %cst_131 = arith.constant 1.000000e+00 : f32
    %732 = vector.broadcast %cst_131 : f32 to vector<8x128xf32>
    %733 = arith.addf %732, %731 : vector<8x128xf32>
    %734 = arith.divf %732, %733 : vector<8x128xf32>
    %735 = arith.mulf %734, %21 : vector<8x128xf32>
    %736 = arith.addf %735, %24 : vector<8x128xf32>
    %737 = vector.extract_strided_slice %736 {offsets = [0, 32], sizes = [8, 32], strides = [1, 1]} : vector<8x128xf32> to vector<8x32xf32>
    %738 = arith.mulf %737, %697 : vector<8x32xf32>
    %739 = vector.extract_strided_slice %736 {offsets = [0, 0], sizes = [8, 32], strides = [1, 1]} : vector<8x128xf32> to vector<8x32xf32>
    %740 = vector.extract_strided_slice %736 {offsets = [0, 64], sizes = [8, 32], strides = [1, 1]} : vector<8x128xf32> to vector<8x32xf32>
    %741 = arith.mulf %739, %740 : vector<8x32xf32>
    %742 = arith.addf %738, %741 : vector<8x32xf32>
    %743 = vector.extract_strided_slice %736 {offsets = [0, 96], sizes = [8, 32], strides = [1, 1]} : vector<8x128xf32> to vector<8x32xf32>
    %744 = math.tanh %742 : vector<8x32xf32>
    %745 = arith.mulf %743, %744 : vector<8x32xf32>
    %c16_i32 = arith.constant 16 : i32
    %746 = arith.truncf %745 : vector<8x32xf32> to vector<8x32xbf16>
    %c0_132 = arith.constant 0 : index
    %c0_133 = arith.constant 0 : index
    %747 = vector.load %arg8[%c0_132, %c0_133] : memref<32x128xbf16, #tpu.memory_space<vmem>>, vector<32x128xbf16>
    %cst_134 = arith.constant dense<0.000000e+00> : vector<8x128xf32>
    %748 = tpu.matmul %746, %747, %cst_134 {dimension_numbers = #tpu.dot_dimension_numbers<[1], [0], [0], [1], [0, 0, 1, 1], [], []>} : vector<8x32xbf16>, vector<32x128xbf16>, vector<8x128xf32> -> vector<8x128xf32>
    %c0_135 = arith.constant 0 : index
    %c0_136 = arith.constant 0 : index
    %749 = vector.load %arg9[%c0_135, %c0_136] : memref<1x128xf32, #tpu.memory_space<vmem>>, vector<1x128xf32>
    %750 = vector.broadcast %749 : vector<1x128xf32> to vector<8x128xf32>
    %751 = arith.addf %748, %750 : vector<8x128xf32>
    %c0_137 = arith.constant 0 : index
    %c0_138 = arith.constant 0 : index
    %752 = vector.load %arg10[%c0_137, %c0_138] : memref<8x128xf32, #tpu.memory_space<vmem>>, vector<8x128xf32>
    tpu.vector_store %arg10[%c0_137, %c0_138], %751 {strides = array<i32>} : memref<8x128xf32, #tpu.memory_space<vmem>>, vector<8x128xf32>,
    return
  }
  func.func @transform_0(%arg0: i32) -> (i32, i32) {
    %c0_i32 = arith.constant 0 : i32
    %c0_i32_0 = arith.constant 0 : i32
    %c0_i32_1 = arith.constant 0 : i32
    return %c0_i32, %c0_i32_0 : i32, i32
  }
  func.func @transform_1(%arg0: i32) -> (i32, i32) {
    %c0_i32 = arith.constant 0 : i32
    %c0_i32_0 = arith.constant 0 : i32
    %c0_i32_1 = arith.constant 0 : i32
    return %c0_i32, %c0_i32_0 : i32, i32
  }
  func.func @transform_2(%arg0: i32) -> (i32, i32) {
    %c0_i32 = arith.constant 0 : i32
    %c0_i32_0 = arith.constant 0 : i32
    %c0_i32_1 = arith.constant 0 : i32
    return %c0_i32, %c0_i32_0 : i32, i32
  }
  func.func @transform_3(%arg0: i32) -> (i32, i32) {
    %c0_i32 = arith.constant 0 : i32
    %c0_i32_0 = arith.constant 0 : i32
    %c0_i32_1 = arith.constant 0 : i32
    return %c0_i32, %c0_i32_0 : i32, i32
  }
  func.func @transform_4(%arg0: i32) -> (i32, i32) {
    %c0_i32 = arith.constant 0 : i32
    %c0_i32_0 = arith.constant 0 : i32
    %c0_i32_1 = arith.constant 0 : i32
    return %c0_i32, %c0_i32_0 : i32, i32
  }
  func.func @transform_5(%arg0: i32) -> (i32, i32) {
    %c0_i32 = arith.constant 0 : i32
    %c0_i32_0 = arith.constant 0 : i32
    %c0_i32_1 = arith.constant 0 : i32
    return %c0_i32, %c0_i32_0 : i32, i32
  }
  func.func @transform_6(%arg0: i32) -> (i32, i32) {
    %c0_i32 = arith.constant 0 : i32
    %c0_i32_0 = arith.constant 0 : i32
    %c0_i32_1 = arith.constant 0 : i32
    return %c0_i32, %c0_i32_0 : i32, i32
  }
  func.func @transform_7(%arg0: i32) -> (i32, i32) {
    %c0_i32 = arith.constant 0 : i32
    %c0_i32_0 = arith.constant 0 : i32
    %c0_i32_1 = arith.constant 0 : i32
    return %c0_i32, %c0_i32_0 : i32, i32
  }
  func.func @transform_8(%arg0: i32) -> (i32, i32) {
    %c0_i32 = arith.constant 0 : i32
    %c0_i32_0 = arith.constant 0 : i32
    %c0_i32_1 = arith.constant 0 : i32
    return %c0_i32, %c0_i32_0 : i32, i32
  }
  func.func @transform_9(%arg0: i32) -> (i32, i32) {
    %c0_i32 = arith.constant 0 : i32
    %c0_i32_0 = arith.constant 0 : i32
    %c0_i32_1 = arith.constant 0 : i32
    return %c0_i32, %c0_i32_0 : i32, i32
  }
}

</mosaic_0001>

<bundles_post_ra>
// kernel: tpu_custom_call.1
= control target key start
LH: loop header
LB: loop body
LE: loop exit
PB: predicated region body
PF: predicated region fallthrough
CT: control target
= control target key end

     0   :  { %v4323_v1 = vmov 0.0   ;;  %vm105_vm0 = vcmask 130048   ;;  %vm4324_vm1 = vmmov 0   ;;  %v4325_v6 = vmov 0   ;;  %s5285_s0 = inlined_call_operand.vmem [shape: bf16[128,16], index: 0, kind: input, shape index: {}]   ;;  %s5286_s1 = inlined_call_operand.vmem [shape: bf16[16,128], index: 1, kind: input, shape index: {}]   ;;  %s5287_s2 = inlined_call_operand.vmem [shape: bf16[32,128], index: 2, kind: input, shape index: {}]   ;;  %s5288_s3 = inlined_call_operand.vmem [shape: f32[1,128], index: 3, kind: input, shape index: {}]   ;;  %s5289_s4 = inlined_call_operand.vmem [shape: bf16[32,128], index: 4, kind: input, shape index: {}]   ;;  %s5290_s5 = inlined_call_operand.vmem [shape: bf16[32,128], index: 5, kind: input, shape index: {}]   ;;  %s5291_s6 = inlined_call_operand.vmem [shape: f32[1,128], index: 6, kind: input, shape index: {}]   ;;  %s5292_s7 = inlined_call_operand.vmem [shape: bf16[32,128], index: 7, kind: input, shape index: {}]   ;;  %s5293_s8 = inlined_call_operand.vmem [shape: f32[1,128], index: 8, kind: input, shape index: {}]   ;;  %s5294_s9 = inlined_call_operand.hbm [shape: f32[8,128], index: 9, kind: output, shape index: {}]  }
   0x1   :  { %v4074_v0 = vld [vmem:[%s5286_s1] sm:$0xff]   ;;  %3675 = vmatprep.subr.bf16.mxu1 %v4323_v1  ;;  %v4077_v4 = vld [vmem:[%s5285_s0 + $0x8] sm:$0xff]   ;;  %3679 = vmatprep.mubr.msk.bf16.mxu1 %vm4324_vm1, %v4323_v1 }
   0x2   :  { %v4387_v2 = vld [vmem:[%s5287_s2] sm:$0xff]   ;;  %3657 = vmatprep.subr.bf16.mxu0 %v4074_v0  ;;  %v4401_v5 = vld [vmem:[%s5287_s2 + $0x8] sm:$0xff]  }
   0x3   :  { %v4076_v3 = vld [vmem:[%s5285_s0] sm:$0xff]   ;;  %3676 = vmatpush3.bf16.msra.mxu1 %v4387_v2  ;;  %3658 = vmatpush3.bf16.msra.mxu0 %v4074_v0 }
   0x4   :  { %3659 = vmatprep.mubr.msk.bf16.mxu0 %vm105_vm0, %v4076_v3  ;;  %3677 = vmatprep.subr.bf16.mxu1 %v4323_v1 }
   0x5   :  { %3707 = vmatprep.subr.bf16.mxu0 %v4323_v1 }
   0x6   :  { %3660 = vmatmul.mubr.msk.bf16.vlgmr.msra.gmra.mrb[0].mxu0 %vm105_vm0, %v4077_v4 }
   0x7   :  { %3678 = vmatpush3.bf16.msra.mxu1 %v4401_v5 }
   0x8   :  { %3683 = vmatprep.subr.bf16.mxu1 %v4323_v1 }
   0xa   :  { %3680 = vmatmul.mubr.bf16.vlgmr.msra.gmra.mrb[0].mxu1 %v4325_v6 }
   0xb   :  { %3687 = vmatprep.mubr.msk.bf16.mxu1 %vm4324_vm1, %v4323_v1 }
   0xc   :  { %14 = vsyncpa [#allocation4], 0  ;;  %v4414_v7 = vld [vmem:[%s5288_s3] ss:$0 sm:$0xff]  ;;  %v262_v19 = vlaneseq  ;;  %v4326_v23 = vmov 1.0   ;;  %s4327_s20 = smov 64  }
   0xd   :  { %s4328_s21 = smov 32   ;;  %v4438_v34 = vld [vmem:[%s5290_s5] sm:$0xff]   ;;  %v4444_v35 = vld [vmem:[%s5290_s5 + $0x8] sm:$0xff]   ;;  %vm282_vm5 = vcmask 261120   ;;  %s4329_s14 = smov [#allocation3]  }
   0xe   :  { %v263_v22 = vand.u32 127, %v262_v19  ;;  %3684 = vmatpush3.bf16.msra.mxu1 %v4438_v34  ;;  %3708 = vmatpush3.bf16.msra.mxu0 %v4438_v34  ;;  %v4453_v36 = vld [vmem:[%s5289_s4] sm:$0xff]   ;;  %v4463_v38 = vld [vmem:[%s5289_s4 + $0x8] sm:$0xff]  }
   0xf   :  { %3685 = vmatprep.subr.bf16.mxu1 %v4323_v1  ;;  %3709 = vmatprep.subr.bf16.mxu0 %v4323_v1  ;;  %v4488_v47 = vld [vmem:[%s5291_s6] ss:$0 sm:$0xff] }
  0x10   :  { %vm264_vm2 = vcmp.ge.s32.totalorder %v263_v22, 64  ;;  %vm265_vm3 = vcmp.lt.s32.totalorder %v263_v22, 96 }
  0x11   :  { %vm266_vm4 = vmand %vm264_vm2, %vm265_vm3 }
  0x12   :  { %v4423_v24 = vsel %vm266_vm4, 2.0, %v4326_v23  ;;  %v4426_v26 = vsel %vm266_vm4, -1.0, %v4323_v1  ;;  %3686 = vmatpush3.bf16.msra.mxu1 %v4444_v35  ;;  %3710 = vmatpush3.bf16.msra.mxu0 %v4444_v35 }
  0x13   :  { %3691 = vmatprep.subr.bf16.mxu1 %v4323_v1  ;;  %3723 = vmatprep.subr.bf16.mxu0 %v4323_v1 }
  0x15   :  { %3688 = vmatmul.mubr.bf16.vlgmr.msra.gmra.mrb[4].mxu1 %v4325_v6 }
  0x16   :  { %3692 = vmatpush3.bf16.msra.mxu1 %v4453_v36  ;;  %3695 = vmatprep.mubr.msk.bf16.mxu1 %vm4324_vm1, %v4323_v1 }
  0x17   :  { %3693 = vmatprep.subr.bf16.mxu1 %v4323_v1 }
  0x1a   :  { %3694 = vmatpush3.bf16.msra.mxu1 %v4463_v38 }
  0x1b   :  { %3699 = vmatprep.subr.bf16.mxu1 %v4323_v1 }
  0xd9   :  { %v4416_v8 = vpop.f32.mrb[0].mxu0 }
  0xda   :  { %v164_v9 = vpop.f32.mrb[1].mxu0 }
  0xdb   :  { %v165_v10 = vadd.f32 %v4414_v7, %v164_v9  ;;  %v4419_v11 = vpop.f32.mrb[2].mxu0 }
  0xdc   :  { %v4421_v12 = vpop.f32.mrb[3].mxu0 }
  0xdd   :  { %v320_v13 = vpop.f32.mrb[0].mxu1  ;;  %v168_v55 = vadd.f32 %v4414_v7, %v4421_v12 }
  0xde   :  { %v326_v14 = vadd.f32 %v320_v13, %v165_v10  ;;  %v3681_v15 = vpop.f32.mrb[1].mxu1 }
  0xdf   :  { %v323_v16 = vpop.f32.mrb[2].mxu1 }
  0xe0   :  { %v3415_v17 = vmul.f32 -1.442695, %v326_v14  ;;  %v3682_v18 = vpop.f32.mrb[3].mxu1 }
  0xe2   :  { %4091 = vpow2.f32 %v3415_v17 }
  0xe8   :  { %v399_v42 = vpop.f32.mrb[4].mxu1 }
  0xe9   :  { %v3689_v43 = vpop.f32.mrb[5].mxu1 }
  0xea   :  { %v402_v44 = vpop.f32.mrb[6].mxu1 }
  0xeb   :  { %v3690_v45 = vpop.f32.mrb[7].mxu1 }
  0xec   :  { %v4092_v20 = vpop.eup %4091 }
  0xed   :  { %v330_v21 = vadd.f32 1.0, %v4092_v20 }
  0xef   :  { %4093 = vrcp.f32 %v330_v21 }
  0xf9   :  { %v4094_v25 = vpop.eup %4093 }
  0xfa   :  { %v333_v27 = vmul.f32 %v4094_v25, %v4423_v24  ;;  %v4083_v25 = vld [vmem:[%s5285_s0 + $0x10] sm:$0xff]  }
  0xfb   :  { %3663 = vmatprep.mubr.msk.bf16.mxu0 %vm105_vm0, %v4083_v25 }
  0xfc   :  { %v334_v28 = vadd.f32 %v333_v27, %v4426_v26  ;;  %v4084_v27 = vld [vmem:[%s5285_s0 + $0x18] sm:$0xff]  }
  0xfd   :  { %3664 = vmatmul.mubr.msk.bf16.gmra.mrb[4].mxu0 %vm105_vm0, %v4084_v27 }
  0xfe   :  { %337 = vrot.lane.b32.xlu0 %v334_v28, %s4327_s20  ;;  %v335_v31 = vmul.f32 0.0, %v334_v28 }
 0x170   :  { %v338_v29 = vpop.permute.xlu0 %337 }
 0x171   :  { %v340_v30 = vmul.f32 %v338_v29, %v334_v28 }
 0x173   :  { %342 = vrot.lane.b32.xlu0 %v340_v30, %s4328_s21  ;;  %v4086_v30 = vld [vmem:[%s5285_s0 + $0x28] sm:$0xff]  }
 0x1d0   :  { %v4538_v44 = vpop.f32.mrb[4].mxu0 }
 0x1d1   :  { %v4540_v45 = vpop.f32.mrb[5].mxu0 }
 0x1e5   :  { %v343_v32 = vpop.permute.xlu0 %342 }
 0x1e6   :  { %v4432_v33 = vadd.f32 %v343_v32, %v335_v31  ;;  %v4087_v32 = vld [vmem:[%s5285_s0 + $0x30] sm:$0xff]  }
 0x1e8   :  { %4095 = vtanh.f32 %v4432_v33 }
 0x1f2   :  { %v4096_v37 = vpop.eup %4095 }
 0x1f3   :  { %348 = vrot.lane.b32.xlu1 %v4096_v37, %s4327_s20 }
 0x265   :  { %v349_v39 = vpop.permute.xlu1 %348 }
 0x266   :  { %v351_v40 = vmul.f32 %v349_v39, %v334_v28  ;;  %v4085_v28 = vld [vmem:[%s5285_s0 + $0x20] sm:$0xff]  }
 0x267   :  { %3667 = vmatprep.mubr.msk.bf16.mxu0 %vm105_vm0, %v4085_v28 }
 0x268   :  { %v352_v41 = vpack.c.bf16 %v351_v40, %v351_v40  ;;  %3668 = vmatmul.mubr.msk.bf16.gmra.mrb[8].mxu0 %vm105_vm0, %v4086_v30 }
 0x269   :  { %3671 = vmatprep.mubr.msk.bf16.mxu0 %vm105_vm0, %v4087_v32 }
 0x26a   :  { %406 = vrot.lane.b32.xlu1 %v352_v41, %s4328_s21 }
 0x2dc   :  { %v407_v46 = vpop.permute.xlu1 %406 }
 0x2dd   :  { %3696 = vmatmul.mubr.msk.bf16.vlgmr.msra.gmra.mrb[8].mxu1 %vm282_vm5, %v407_v46 }
 0x2de   :  { %3700 = vmatpush3.bf16.msra.mxu1 %v4387_v2  ;;  %3703 = vmatprep.mubr.msk.bf16.mxu1 %vm4324_vm1, %v4323_v1 }
 0x2df   :  { %3701 = vmatprep.subr.bf16.mxu1 %v4323_v1 }
 0x2e2   :  { %3702 = vmatpush3.bf16.msra.mxu1 %v4401_v5 }
 0x2e3   :  { %3715 = vmatprep.subr.bf16.mxu1 %v4323_v1 }
 0x2e5   :  { %3704 = vmatmul.mubr.msk.bf16.vlgmr.msra.gmra.mrb[12].mxu1 %vm282_vm5, %v407_v46  ;;  %v4542_v46 = vpop.f32.mrb[6].mxu0 }
 0x2e6   :  { %3716 = vmatpush3.bf16.msra.mxu1 %v4453_v36  ;;  %3719 = vmatprep.mubr.msk.bf16.mxu1 %vm4324_vm1, %v4323_v1 }
 0x2e7   :  { %3717 = vmatprep.subr.bf16.mxu1 %v4323_v1 }
 0x2ea   :  { %3718 = vmatpush3.bf16.msra.mxu1 %v4463_v38 }
 0x2eb   :  { %3731 = vmatprep.subr.bf16.mxu1 %v4323_v1 }
 0x3b0   :  { %v457_v48 = vpop.f32.mrb[8].mxu1 }
 0x3b1   :  { %v458_v49 = vadd.f32 %v457_v48, %v399_v42  ;;  %v3697_v50 = vpop.f32.mrb[9].mxu1  ;;  %v4544_v48 = vpop.f32.mrb[7].mxu0 }
 0x3b2   :  { %v460_v51 = vpop.f32.mrb[10].mxu1 }
 0x3b3   :  { %v463_v52 = vadd.f32 %v4488_v47, %v458_v49  ;;  %v3698_v53 = vpop.f32.mrb[11].mxu1  ;;  %v4546_v49 = vpop.f32.mrb[8].mxu0 }
 0x3b4   :  { %v4548_v50 = vpop.f32.mrb[9].mxu0 }
 0x3b5   :  { %v3421_v54 = vmul.f32 -1.442695, %v463_v52  ;;  %v4550_v51 = vpop.f32.mrb[10].mxu0 }
 0x3b6   :  { %v4552_v52 = vpop.f32.mrb[11].mxu0 }
 0x3b7   :  { %4097 = vpow2.f32 %v3421_v54 }
 0x3b8   :  { %v525_v56 = vpop.f32.mrb[12].mxu1 }
 0x3b9   :  { %v531_v57 = vadd.f32 %v525_v56, %v168_v55  ;;  %v3705_v58 = vpop.f32.mrb[13].mxu1 }
 0x3ba   :  { %v528_v59 = vpop.f32.mrb[14].mxu1 }
 0x3bb   :  { %v3423_v60 = vmul.f32 -1.442695, %v531_v57  ;;  %v3706_v61 = vpop.f32.mrb[15].mxu1 }
 0x3bd   :  { %4099 = vpow2.f32 %v3423_v60 }
 0x3c1   :  { %v4098_v62 = vpop.eup %4097 }
 0x3c2   :  { %v467_v63 = vadd.f32 1.0, %v4098_v62 }
 0x3c4   :  { %4101 = vrcp.f32 %v467_v63 }
 0x3c7   :  { %v4100_v0 = vpop.eup %4099 }
 0x3c8   :  { %v535_v3 = vadd.f32 1.0, %v4100_v0  ;;  %v173_v0 = vadd.f32 %v4416_v8, %v4414_v7 }
 0x3ca   :  { %4103 = vrcp.f32 %v535_v3 }
 0x3ce   :  { %v4102_v4 = vpop.eup %4101 }
 0x3cf   :  { %v470_v6 = vmul.f32 %v4102_v4, %v4423_v24 }
 0x3d1   :  { %v471_v9 = vadd.f32 %v470_v6, %v4426_v26 }
 0x3d3   :  { %474 = vrot.lane.b32.xlu0 %v471_v9, %s4327_s20  ;;  %v472_v18 = vmul.f32 0.0, %v471_v9 }
 0x3d4   :  { %v4104_v10 = vpop.eup %4103 }
 0x3d5   :  { %v538_v12 = vmul.f32 %v4104_v10, %v4423_v24 }
 0x3d7   :  { %v539_v13 = vadd.f32 %v538_v12, %v4426_v26 }
 0x3d9   :  { %542 = vrot.lane.b32.xlu1 %v539_v13, %s4327_s20  ;;  %v540_v21 = vmul.f32 %v539_v13, %v4432_v33  ;;  %v4088_v33 = vld [vmem:[%s5285_s0 + $0x38] sm:$0xff]  }
 0x3da   :  { %3672 = vmatmul.mubr.msk.bf16.gmra.mrb[12].mxu0 %vm105_vm0, %v4088_v33 }
 0x3db   :  { %3711 = vmatprep.mubr.msk.bf16.mxu0 %vm4324_vm1, %v4323_v1 }
 0x445   :  { %v475_v14 = vpop.permute.xlu0 %474 }
 0x446   :  { %v477_v15 = vmul.f32 %v475_v14, %v471_v9 }
 0x448   :  { %479 = vrot.lane.b32.xlu0 %v477_v15, %s4328_s21 }
 0x44b   :  { %v543_v16 = vpop.permute.xlu1 %542 }
 0x44c   :  { %v545_v17 = vmul.f32 %v543_v16, %v539_v13 }
 0x44e   :  { %547 = vrot.lane.b32.xlu1 %v545_v17, %s4328_s21 }
 0x4ad   :  { %v4554_v53 = vpop.f32.mrb[12].mxu0 }
 0x4ae   :  { %v4556_v54 = vpop.f32.mrb[13].mxu0 }
 0x4af   :  { %v4558_v55 = vpop.f32.mrb[14].mxu0 }
 0x4b0   :  { %v4560_v56 = vpop.f32.mrb[15].mxu0 }
 0x4ba   :  { %v480_v19 = vpop.permute.xlu0 %479 }
 0x4bb   :  { %v4501_v20 = vadd.f32 %v480_v19, %v472_v18 }
 0x4bd   :  { %4105 = vtanh.f32 %v4501_v20 }
 0x4c0   :  { %v548_v22 = vpop.permute.xlu1 %547 }
 0x4c1   :  { %v4505_v23 = vadd.f32 %v548_v22, %v540_v21 }
 0x4c3   :  { %4107 = vtanh.f32 %v4505_v23 }
 0x4c7   :  { %v4106_v29 = vpop.eup %4105 }
 0x4c8   :  { %485 = vrot.lane.b32.xlu0 %v4106_v29, %s4327_s20 }
 0x4cd   :  { %v4108_v31 = vpop.eup %4107 }
 0x4ce   :  { %553 = vrot.lane.b32.xlu1 %v4108_v31, %s4327_s20 }
 0x53a   :  { %v486_v37 = vpop.permute.xlu0 %485 }
 0x53b   :  { %v488_v39 = vmul.f32 %v486_v37, %v471_v9 }
 0x53d   :  { %v558_v40 = vpack.c.bf16 %v488_v39, %v488_v39 }
 0x53f   :  { %560 = vrot.lane.b32.xlu0 %v558_v40, %s4328_s21 }
 0x540   :  { %v554_v41 = vpop.permute.xlu1 %553 }
 0x541   :  { %v556_v42 = vmul.f32 %v554_v41, %v539_v13 }
 0x543   :  { %v557_v43 = vpack.c.bf16 %v556_v42, %v556_v42 }
 0x545   :  { %606 = vrot.lane.b32.xlu1 %v557_v43, %s4328_s21 }
 0x5b1   :  { %v561_v57 = vpop.permute.xlu0 %560 }
 0x5b2   :  { %3712 = vmatmul.mubr.msk.bf16.vlgmr.msra.gmra.mrb[16].mxu0 %vm282_vm5, %v561_v57 }
 0x5b3   :  { %3724 = vmatpush3.bf16.msra.mxu0 %v4387_v2  ;;  %3727 = vmatprep.mubr.msk.bf16.mxu0 %vm4324_vm1, %v4323_v1 }
 0x5b4   :  { %3725 = vmatprep.subr.bf16.mxu0 %v4323_v1 }
 0x5b7   :  { %3726 = vmatpush3.bf16.msra.mxu0 %v4401_v5  ;;  %v607_v58 = vpop.permute.xlu1 %606 }
 0x5b8   :  { %3720 = vmatmul.mubr.msk.bf16.vlgmr.msra.gmra.mrb[16].mxu1 %vm282_vm5, %v607_v58  ;;  %3739 = vmatprep.subr.bf16.mxu0 %v4323_v1 }
 0x5b9   :  { %3732 = vmatpush3.bf16.msra.mxu1 %v4438_v34  ;;  %3735 = vmatprep.mubr.msk.bf16.mxu1 %vm4324_vm1, %v4323_v1 }
 0x5ba   :  { %3728 = vmatmul.mubr.msk.bf16.vlgmr.msra.gmra.mrb[20].mxu0 %vm282_vm5, %v607_v58  ;;  %3733 = vmatprep.subr.bf16.mxu1 %v4323_v1 }
 0x5bb   :  { %3740 = vmatpush3.bf16.msra.mxu0 %v4453_v36  ;;  %3743 = vmatprep.mubr.msk.bf16.mxu0 %vm4324_vm1, %v4323_v1 }
 0x5bc   :  { %3741 = vmatprep.subr.bf16.mxu0 %v4323_v1 }
 0x5bd   :  { %3734 = vmatpush3.bf16.msra.mxu1 %v4444_v35 }
 0x5be   :  { %3747 = vmatprep.subr.bf16.mxu1 %v4323_v1 }
 0x5bf   :  { %3742 = vmatpush3.bf16.msra.mxu0 %v4463_v38 }
 0x5c0   :  { %3755 = vmatprep.subr.bf16.mxu0 %v4323_v1 }
 0x685   :  { %v599_v59 = vpop.f32.mrb[16].mxu0 }
 0x686   :  { %v3713_v60 = vpop.f32.mrb[17].mxu0 }
 0x687   :  { %v602_v61 = vpop.f32.mrb[18].mxu0 }
 0x688   :  { %v3714_v62 = vpop.f32.mrb[19].mxu0 }
 0x68b   :  { %v645_v63 = vpop.f32.mrb[16].mxu1 }
 0x68c   :  { %v646_v3 = vadd.f32 %v645_v63, %v599_v59  ;;  %v3721_v4 = vpop.f32.mrb[17].mxu1 }
 0x68d   :  { %v648_v6 = vpop.f32.mrb[18].mxu1  ;;  %v713_v9 = vpop.f32.mrb[20].mxu0 }
 0x68e   :  { %v651_v10 = vadd.f32 %v4488_v47, %v646_v3  ;;  %v719_v12 = vadd.f32 %v713_v9, %v173_v0  ;;  %v3722_v13 = vpop.f32.mrb[19].mxu1  ;;  %v3729_v14 = vpop.f32.mrb[21].mxu0 }
 0x68f   :  { %v716_v15 = vpop.f32.mrb[22].mxu0 }
 0x690   :  { %v3426_v16 = vmul.f32 -1.442695, %v651_v10  ;;  %v3428_v17 = vmul.f32 -1.442695, %v719_v12  ;;  %v3730_v18 = vpop.f32.mrb[23].mxu0 }
 0x692   :  { %4109 = vpow2.f32 %v3426_v16 }
 0x693   :  { %4111 = vpow2.f32 %v3428_v17 }
 0x69c   :  { %v4110_v19 = vpop.eup %4109 }
 0x69d   :  { %v4112_v21 = vpop.eup %4111  ;;  %v655_v22 = vadd.f32 1.0, %v4110_v19 }
 0x69e   :  { %v723_v25 = vadd.f32 1.0, %v4112_v21  ;;  %v176_v21 = vadd.f32 %v4419_v11, %v4414_v7 }
 0x69f   :  { %4113 = vrcp.f32 %v655_v22 }
 0x6a0   :  { %4115 = vrcp.f32 %v723_v25 }
 0x6a9   :  { %v4114_v8 = vpop.eup %4113 }
 0x6aa   :  { %v4116_v27 = vpop.eup %4115  ;;  %v658_v28 = vmul.f32 %v4114_v8, %v4423_v24 }
 0x6ab   :  { %v726_v29 = vmul.f32 %v4116_v27, %v4423_v24 }
 0x6ac   :  { %v659_v30 = vadd.f32 %v658_v28, %v4426_v26 }
 0x6ad   :  { %v727_v31 = vadd.f32 %v726_v29, %v4426_v26 }
 0x6ae   :  { %662 = vrot.lane.b32.xlu0 %v659_v30, %s4327_s20  ;;  %v660_v40 = vmul.f32 %v659_v30, %v4501_v20 }
 0x6af   :  { %730 = vrot.lane.b32.xlu1 %v727_v31, %s4327_s20  ;;  %v728_v41 = vmul.f32 %v727_v31, %v4505_v23 }
 0x720   :  { %v663_v32 = vpop.permute.xlu0 %662 }
 0x721   :  { %v731_v33 = vpop.permute.xlu1 %730  ;;  %v665_v37 = vmul.f32 %v663_v32, %v659_v30 }
 0x722   :  { %v733_v39 = vmul.f32 %v731_v33, %v727_v31 }
 0x723   :  { %667 = vrot.lane.b32.xlu0 %v665_v37, %s4328_s21 }
 0x724   :  { %735 = vrot.lane.b32.xlu1 %v733_v39, %s4328_s21 }
 0x795   :  { %v668_v42 = vpop.permute.xlu0 %667 }
 0x796   :  { %v736_v43 = vpop.permute.xlu1 %735  ;;  %v4596_v57 = vadd.f32 %v668_v42, %v660_v40 }
 0x797   :  { %v4598_v58 = vadd.f32 %v736_v43, %v728_v41 }
 0x798   :  { %4117 = vtanh.f32 %v4596_v57 }
 0x799   :  { %4119 = vtanh.f32 %v4598_v58 }
 0x7a2   :  { %v4118_v59 = vpop.eup %4117 }
 0x7a3   :  { %v4120_v60 = vpop.eup %4119  ;;  %673 = vrot.lane.b32.xlu0 %v4118_v59, %s4327_s20 }
 0x7a4   :  { %741 = vrot.lane.b32.xlu1 %v4120_v60, %s4327_s20 }
 0x815   :  { %v674_v61 = vpop.permute.xlu0 %673 }
 0x816   :  { %v742_v20 = vpop.permute.xlu1 %741  ;;  %v676_v62 = vmul.f32 %v674_v61, %v659_v30 }
 0x817   :  { %v744_v23 = vmul.f32 %v742_v20, %v727_v31 }
 0x818   :  { %v746_v63 = vpack.c.bf16 %v676_v62, %v676_v62 }
 0x819   :  { %v745_v0 = vpack.c.bf16 %v744_v23, %v744_v23 }
 0x81a   :  { %748 = vrot.lane.b32.xlu0 %v746_v63, %s4328_s21 }
 0x81b   :  { %794 = vrot.lane.b32.xlu1 %v745_v0, %s4328_s21 }
 0x88c   :  { %v749_v3 = vpop.permute.xlu0 %748 }
 0x88d   :  { %v795_v4 = vpop.permute.xlu1 %794  ;;  %3736 = vmatmul.mubr.msk.bf16.vlgmr.msra.gmra.mrb[20].mxu1 %vm282_vm5, %v749_v3 }
 0x88e   :  { %3744 = vmatmul.mubr.msk.bf16.vlgmr.msra.gmra.mrb[24].mxu0 %vm282_vm5, %v795_v4  ;;  %3748 = vmatpush3.bf16.msra.mxu1 %v4387_v2 }
 0x88f   :  { %3749 = vmatprep.subr.bf16.mxu1 %v4323_v1  ;;  %3751 = vmatprep.mubr.msk.bf16.mxu1 %vm4324_vm1, %v4323_v1 }
 0x890   :  { %3756 = vmatpush3.bf16.msra.mxu0 %v4438_v34  ;;  %3759 = vmatprep.mubr.msk.bf16.mxu0 %vm4324_vm1, %v4323_v1 }
 0x891   :  { %3757 = vmatprep.subr.bf16.mxu0 %v4323_v1 }
 0x892   :  { %3750 = vmatpush3.bf16.msra.mxu1 %v4401_v5 }
 0x893   :  { %3763 = vmatprep.subr.bf16.mxu1 %v4323_v1 }
 0x894   :  { %3758 = vmatpush3.bf16.msra.mxu0 %v4444_v35 }
 0x895   :  { %3752 = vmatmul.mubr.msk.bf16.vlgmr.msra.gmra.mrb[24].mxu1 %vm282_vm5, %v795_v4  ;;  %3771 = vmatprep.subr.bf16.mxu0 %v4323_v1 }
 0x896   :  { %3764 = vmatpush3.bf16.msra.mxu1 %v4453_v36  ;;  %3767 = vmatprep.mubr.msk.bf16.mxu1 %vm4324_vm1, %v4323_v1 }
 0x897   :  { %3765 = vmatprep.subr.bf16.mxu1 %v4323_v1 }
 0x89a   :  { %3766 = vmatpush3.bf16.msra.mxu1 %v4463_v38 }
 0x89b   :  { %3779 = vmatprep.subr.bf16.mxu1 %v4323_v1 }
 0x960   :  { %v787_v6 = vpop.f32.mrb[20].mxu1 }
 0x961   :  { %v833_v9 = vpop.f32.mrb[24].mxu0  ;;  %v3737_v10 = vpop.f32.mrb[21].mxu1 }
 0x962   :  { %v834_v12 = vadd.f32 %v833_v9, %v787_v6  ;;  %v3745_v13 = vpop.f32.mrb[25].mxu0  ;;  %v790_v14 = vpop.f32.mrb[22].mxu1 }
 0x963   :  { %v836_v15 = vpop.f32.mrb[26].mxu0  ;;  %v3738_v16 = vpop.f32.mrb[23].mxu1 }
 0x964   :  { %v839_v17 = vadd.f32 %v4488_v47, %v834_v12  ;;  %v3746_v18 = vpop.f32.mrb[27].mxu0 }
 0x966   :  { %v3431_v19 = vmul.f32 -1.442695, %v839_v17 }
 0x968   :  { %4121 = vpow2.f32 %v3431_v19  ;;  %v901_v22 = vpop.f32.mrb[24].mxu1 }
 0x969   :  { %v907_v25 = vadd.f32 %v901_v22, %v176_v21  ;;  %v3753_v8 = vpop.f32.mrb[25].mxu1 }
 0x96a   :  { %v904_v27 = vpop.f32.mrb[26].mxu1  ;;  %v181_v8 = vadd.f32 %v4414_v7, %v4540_v45 }
 0x96b   :  { %v3433_v28 = vmul.f32 -1.442695, %v907_v25  ;;  %v3754_v29 = vpop.f32.mrb[27].mxu1 }
 0x96d   :  { %4123 = vpow2.f32 %v3433_v28 }
 0x972   :  { %v4122_v30 = vpop.eup %4121 }
 0x973   :  { %v843_v31 = vadd.f32 1.0, %v4122_v30 }
 0x975   :  { %4125 = vrcp.f32 %v843_v31 }
 0x977   :  { %v4124_v32 = vpop.eup %4123 }
 0x978   :  { %v911_v33 = vadd.f32 1.0, %v4124_v32 }
 0x97a   :  { %4127 = vrcp.f32 %v911_v33 }
 0x97f   :  { %v4126_v37 = vpop.eup %4125 }
 0x980   :  { %v846_v39 = vmul.f32 %v4126_v37, %v4423_v24 }
 0x982   :  { %v847_v40 = vadd.f32 %v846_v39, %v4426_v26 }
 0x984   :  { %v4128_v11 = vpop.eup %4127  ;;  %850 = vrot.lane.b32.xlu0 %v847_v40, %s4327_s20  ;;  %v848_v20 = vmul.f32 %v847_v40, %v4596_v57 }
 0x985   :  { %v914_v41 = vmul.f32 %v4128_v11, %v4423_v24 }
 0x987   :  { %v915_v42 = vadd.f32 %v914_v41, %v4426_v26 }
 0x989   :  { %918 = vrot.lane.b32.xlu1 %v915_v42, %s4327_s20  ;;  %v916_v63 = vmul.f32 %v915_v42, %v4598_v58 }
 0x9f6   :  { %v851_v43 = vpop.permute.xlu0 %850 }
 0x9f7   :  { %v853_v59 = vmul.f32 %v851_v43, %v847_v40 }
 0x9f9   :  { %855 = vrot.lane.b32.xlu0 %v853_v59, %s4328_s21 }
 0x9fb   :  { %v919_v60 = vpop.permute.xlu1 %918 }
 0x9fc   :  { %v921_v61 = vmul.f32 %v919_v60, %v915_v42 }
 0x9fe   :  { %923 = vrot.lane.b32.xlu1 %v921_v61, %s4328_s21 }
 0xa6b   :  { %v856_v62 = vpop.permute.xlu0 %855 }
 0xa6c   :  { %v4639_v23 = vadd.f32 %v856_v62, %v848_v20 }
 0xa6e   :  { %4129 = vtanh.f32 %v4639_v23 }
 0xa70   :  { %v924_v0 = vpop.permute.xlu1 %923 }
 0xa71   :  { %v4643_v3 = vadd.f32 %v924_v0, %v916_v63 }
 0xa73   :  { %4131 = vtanh.f32 %v4643_v3 }
 0xa78   :  { %v4130_v4 = vpop.eup %4129 }
 0xa79   :  { %861 = vrot.lane.b32.xlu0 %v4130_v4, %s4327_s20 }
 0xa7d   :  { %v4132_v6 = vpop.eup %4131 }
 0xa7e   :  { %929 = vrot.lane.b32.xlu1 %v4132_v6, %s4327_s20 }
 0xaeb   :  { %v862_v9 = vpop.permute.xlu0 %861 }
 0xaec   :  { %v864_v57 = vmul.f32 %v862_v9, %v847_v40 }
 0xaee   :  { %v934_v10 = vpack.c.bf16 %v864_v57, %v864_v57 }
 0xaf0   :  { %936 = vrot.lane.b32.xlu0 %v934_v10, %s4328_s21  ;;  %v930_v12 = vpop.permute.xlu1 %929 }
 0xaf1   :  { %v932_v13 = vmul.f32 %v930_v12, %v915_v42 }
 0xaf3   :  { %v933_v14 = vpack.c.bf16 %v932_v13, %v932_v13 }
 0xaf5   :  { %982 = vrot.lane.b32.xlu1 %v933_v14, %s4328_s21 }
 0xb62   :  { %v937_v58 = vpop.permute.xlu0 %936 }
 0xb63   :  { %3760 = vmatmul.mubr.msk.bf16.vlgmr.msra.gmra.mrb[28].mxu0 %vm282_vm5, %v937_v58 }
 0xb64   :  { %3772 = vmatpush3.bf16.msra.mxu0 %v4387_v2  ;;  %3775 = vmatprep.mubr.msk.bf16.mxu0 %vm4324_vm1, %v4323_v1 }
 0xb65   :  { %3773 = vmatprep.subr.bf16.mxu0 %v4323_v1 }
 0xb67   :  { %v983_v15 = vpop.permute.xlu1 %982 }
 0xb68   :  { %3774 = vmatpush3.bf16.msra.mxu0 %v4401_v5  ;;  %3768 = vmatmul.mubr.msk.bf16.vlgmr.msra.gmra.mrb[28].mxu1 %vm282_vm5, %v983_v15 }
 0xb69   :  { %3780 = vmatpush3.bf16.msra.mxu1 %v4438_v34  ;;  %3787 = vmatprep.subr.bf16.mxu0 %v4323_v1 }
 0xb6a   :  { %3781 = vmatprep.subr.bf16.mxu1 %v4323_v1  ;;  %3783 = vmatprep.mubr.msk.bf16.mxu1 %vm4324_vm1, %v4323_v1 }
 0xb6b   :  { %3776 = vmatmul.mubr.msk.bf16.vlgmr.msra.gmra.mrb[32].mxu0 %vm282_vm5, %v983_v15 }
 0xb6c   :  { %3788 = vmatpush3.bf16.msra.mxu0 %v4453_v36  ;;  %3791 = vmatprep.mubr.msk.bf16.mxu0 %vm4324_vm1, %v4323_v1 }
 0xb6d   :  { %3782 = vmatpush3.bf16.msra.mxu1 %v4444_v35  ;;  %3789 = vmatprep.subr.bf16.mxu0 %v4323_v1 }
 0xb6e   :  { %3795 = vmatprep.subr.bf16.mxu1 %v4323_v1 }
 0xb70   :  { %3790 = vmatpush3.bf16.msra.mxu0 %v4463_v38 }
 0xb71   :  { %3803 = vmatprep.subr.bf16.mxu0 %v4323_v1 }
 0xc36   :  { %v975_v16 = vpop.f32.mrb[28].mxu0 }
 0xc37   :  { %v3761_v17 = vpop.f32.mrb[29].mxu0 }
 0xc38   :  { %v978_v18 = vpop.f32.mrb[30].mxu0 }
 0xc39   :  { %v3762_v19 = vpop.f32.mrb[31].mxu0 }
 0xc3b   :  { %v1021_v21 = vpop.f32.mrb[28].mxu1 }
 0xc3c   :  { %v1022_v22 = vadd.f32 %v1021_v21, %v975_v16  ;;  %v3769_v25 = vpop.f32.mrb[29].mxu1 }
 0xc3d   :  { %v1024_v27 = vpop.f32.mrb[30].mxu1 }
 0xc3e   :  { %v1027_v28 = vadd.f32 %v4488_v47, %v1022_v22  ;;  %v1089_v29 = vpop.f32.mrb[32].mxu0  ;;  %v3770_v30 = vpop.f32.mrb[31].mxu1 }
 0xc3f   :  { %v1095_v31 = vadd.f32 %v1089_v29, %v181_v8  ;;  %v3777_v32 = vpop.f32.mrb[33].mxu0 }
 0xc40   :  { %v3436_v33 = vmul.f32 -1.442695, %v1027_v28  ;;  %v1092_v37 = vpop.f32.mrb[34].mxu0 }
 0xc41   :  { %v3438_v39 = vmul.f32 -1.442695, %v1095_v31  ;;  %v3778_v40 = vpop.f32.mrb[35].mxu0  ;;  %v184_v37 = vadd.f32 %v4414_v7, %v4544_v48 }
 0xc42   :  { %4133 = vpow2.f32 %v3436_v33 }
 0xc43   :  { %4135 = vpow2.f32 %v3438_v39 }
 0xc4c   :  { %v4134_v11 = vpop.eup %4133 }
 0xc4d   :  { %v4136_v41 = vpop.eup %4135  ;;  %v1031_v42 = vadd.f32 1.0, %v4134_v11 }
 0xc4e   :  { %v1099_v43 = vadd.f32 1.0, %v4136_v41 }
 0xc4f   :  { %4137 = vrcp.f32 %v1031_v42 }
 0xc50   :  { %4139 = vrcp.f32 %v1099_v43 }
 0xc59   :  { %v4138_v45 = vpop.eup %4137 }
 0xc5a   :  { %v4140_v59 = vpop.eup %4139  ;;  %v1034_v60 = vmul.f32 %v4138_v45, %v4423_v24 }
 0xc5b   :  { %v1102_v61 = vmul.f32 %v4140_v59, %v4423_v24 }
 0xc5c   :  { %v1035_v20 = vadd.f32 %v1034_v60, %v4426_v26 }
 0xc5d   :  { %v1103_v62 = vadd.f32 %v1102_v61, %v4426_v26 }
 0xc5e   :  { %1038 = vrot.lane.b32.xlu0 %v1035_v20, %s4327_s20  ;;  %v1036_v9 = vmul.f32 %v1035_v20, %v4639_v23 }
 0xc5f   :  { %1106 = vrot.lane.b32.xlu1 %v1103_v62, %s4327_s20  ;;  %v1104_v57 = vmul.f32 %v1103_v62, %v4643_v3 }
 0xcd0   :  { %v1039_v63 = vpop.permute.xlu0 %1038 }
 0xcd1   :  { %v1107_v0 = vpop.permute.xlu1 %1106  ;;  %v1041_v4 = vmul.f32 %v1039_v63, %v1035_v20 }
 0xcd2   :  { %v1109_v6 = vmul.f32 %v1107_v0, %v1103_v62 }
 0xcd3   :  { %1043 = vrot.lane.b32.xlu0 %v1041_v4, %s4328_s21 }
 0xcd4   :  { %1111 = vrot.lane.b32.xlu1 %v1109_v6, %s4328_s21 }
 0xd45   :  { %v1044_v10 = vpop.permute.xlu0 %1043 }
 0xd46   :  { %v1112_v12 = vpop.permute.xlu1 %1111  ;;  %v4684_v13 = vadd.f32 %v1044_v10, %v1036_v9 }
 0xd47   :  { %v4686_v14 = vadd.f32 %v1112_v12, %v1104_v57 }
 0xd48   :  { %4141 = vtanh.f32 %v4684_v13 }
 0xd49   :  { %4143 = vtanh.f32 %v4686_v14 }
 0xd52   :  { %v4142_v58 = vpop.eup %4141 }
 0xd53   :  { %v4144_v15 = vpop.eup %4143  ;;  %1049 = vrot.lane.b32.xlu0 %v4142_v58, %s4327_s20 }
 0xd54   :  { %1117 = vrot.lane.b32.xlu1 %v4144_v15, %s4327_s20 }
 0xdc5   :  { %v1050_v16 = vpop.permute.xlu0 %1049 }
 0xdc6   :  { %v1118_v23 = vpop.permute.xlu1 %1117  ;;  %v1052_v17 = vmul.f32 %v1050_v16, %v1035_v20 }
 0xdc7   :  { %v1120_v3 = vmul.f32 %v1118_v23, %v1103_v62 }
 0xdc8   :  { %v1122_v18 = vpack.c.bf16 %v1052_v17, %v1052_v17 }
 0xdc9   :  { %v1121_v19 = vpack.c.bf16 %v1120_v3, %v1120_v3 }
 0xdca   :  { %1124 = vrot.lane.b32.xlu0 %v1122_v18, %s4328_s21 }
 0xdcb   :  { %1170 = vrot.lane.b32.xlu1 %v1121_v19, %s4328_s21 }
 0xe3c   :  { %v1125_v21 = vpop.permute.xlu0 %1124 }
 0xe3d   :  { %v1171_v22 = vpop.permute.xlu1 %1170  ;;  %3784 = vmatmul.mubr.msk.bf16.vlgmr.msra.gmra.mrb[32].mxu1 %vm282_vm5, %v1125_v21 }
 0xe3e   :  { %3792 = vmatmul.mubr.msk.bf16.vlgmr.msra.gmra.mrb[36].mxu0 %vm282_vm5, %v1171_v22  ;;  %3796 = vmatpush3.bf16.msra.mxu1 %v4387_v2 }
 0xe3f   :  { %3797 = vmatprep.subr.bf16.mxu1 %v4323_v1  ;;  %3799 = vmatprep.mubr.msk.bf16.mxu1 %vm4324_vm1, %v4323_v1 }
 0xe40   :  { %3804 = vmatpush3.bf16.msra.mxu0 %v4438_v34  ;;  %3807 = vmatprep.mubr.msk.bf16.mxu0 %vm4324_vm1, %v4323_v1 }
 0xe41   :  { %3805 = vmatprep.subr.bf16.mxu0 %v4323_v1 }
 0xe42   :  { %3798 = vmatpush3.bf16.msra.mxu1 %v4401_v5 }
 0xe43   :  { %3811 = vmatprep.subr.bf16.mxu1 %v4323_v1 }
 0xe44   :  { %3806 = vmatpush3.bf16.msra.mxu0 %v4444_v35 }
 0xe45   :  { %3800 = vmatmul.mubr.msk.bf16.vlgmr.msra.gmra.mrb[36].mxu1 %vm282_vm5, %v1171_v22  ;;  %3819 = vmatprep.subr.bf16.mxu0 %v4323_v1 }
 0xe46   :  { %3812 = vmatpush3.bf16.msra.mxu1 %v4453_v36  ;;  %3815 = vmatprep.mubr.msk.bf16.mxu1 %vm4324_vm1, %v4323_v1 }
 0xe47   :  { %3813 = vmatprep.subr.bf16.mxu1 %v4323_v1 }
 0xe4a   :  { %3814 = vmatpush3.bf16.msra.mxu1 %v4463_v38 }
 0xe4b   :  { %3827 = vmatprep.subr.bf16.mxu1 %v4323_v1 }
 0xf10   :  { %v1163_v2 = vpop.f32.mrb[32].mxu1 }
 0xf11   :  { %v1209_v5 = vpop.f32.mrb[36].mxu0  ;;  %v3785_v25 = vpop.f32.mrb[33].mxu1 }
 0xf12   :  { %v1210_v8 = vadd.f32 %v1209_v5, %v1163_v2  ;;  %v3793_v27 = vpop.f32.mrb[37].mxu0  ;;  %v1166_v28 = vpop.f32.mrb[34].mxu1  ;;  %v4742_v25 = vld [vmem:[%s5287_s2] sm:$0xff]  }
 0xf13   :  { %v1212_v29 = vpop.f32.mrb[38].mxu0  ;;  %v3786_v30 = vpop.f32.mrb[35].mxu1  ;;  %v4751_v27 = vld [vmem:[%s5287_s2 + $0x8] sm:$0xff]  }
 0xf14   :  { %v1215_v31 = vadd.f32 %v4488_v47, %v1210_v8  ;;  %v3794_v32 = vpop.f32.mrb[39].mxu0 }
 0xf16   :  { %v3441_v33 = vmul.f32 -1.442695, %v1215_v31 }
 0xf18   :  { %4145 = vpow2.f32 %v3441_v33  ;;  %v1277_v39 = vpop.f32.mrb[36].mxu1  ;;  %v189_v33 = vadd.f32 %v4538_v44, %v4414_v7 }
 0xf19   :  { %v1283_v40 = vadd.f32 %v1277_v39, %v184_v37  ;;  %v3801_v11 = vpop.f32.mrb[37].mxu1 }
 0xf1a   :  { %v1280_v41 = vpop.f32.mrb[38].mxu1 }
 0xf1b   :  { %v3443_v42 = vmul.f32 -1.442695, %v1283_v40  ;;  %v3802_v43 = vpop.f32.mrb[39].mxu1 }
 0xf1d   :  { %4147 = vpow2.f32 %v3443_v42 }
 0xf22   :  { %v4146_v45 = vpop.eup %4145 }
 0xf23   :  { %v1219_v59 = vadd.f32 1.0, %v4146_v45 }
 0xf25   :  { %4149 = vrcp.f32 %v1219_v59 }
 0xf27   :  { %v4148_v60 = vpop.eup %4147 }
 0xf28   :  { %v1287_v61 = vadd.f32 1.0, %v4148_v60 }
 0xf2a   :  { %4151 = vrcp.f32 %v1287_v61 }
 0xf2f   :  { %v4150_v20 = vpop.eup %4149 }
 0xf30   :  { %v1222_v62 = vmul.f32 %v4150_v20, %v4423_v24 }
 0xf32   :  { %v1223_v63 = vadd.f32 %v1222_v62, %v4426_v26 }
 0xf34   :  { %v4152_v48 = vpop.eup %4151  ;;  %1226 = vrot.lane.b32.xlu0 %v1223_v63, %s4327_s20  ;;  %v1224_v12 = vmul.f32 %v1223_v63, %v4684_v13 }
 0xf35   :  { %v1290_v0 = vmul.f32 %v4152_v48, %v4423_v24 }
 0xf37   :  { %v1291_v4 = vadd.f32 %v1290_v0, %v4426_v26 }
 0xf39   :  { %1294 = vrot.lane.b32.xlu1 %v1291_v4, %s4327_s20  ;;  %v1292_v16 = vmul.f32 %v1291_v4, %v4686_v14 }
 0xfa6   :  { %v1227_v6 = vpop.permute.xlu0 %1226 }
 0xfa7   :  { %v1229_v9 = vmul.f32 %v1227_v6, %v1223_v63 }
 0xfa9   :  { %1231 = vrot.lane.b32.xlu0 %v1229_v9, %s4328_s21 }
 0xfab   :  { %v1295_v57 = vpop.permute.xlu1 %1294 }
 0xfac   :  { %v1297_v10 = vmul.f32 %v1295_v57, %v1291_v4 }
 0xfae   :  { %1299 = vrot.lane.b32.xlu1 %v1297_v10, %s4328_s21 }
0x101b   :  { %v1232_v58 = vpop.permute.xlu0 %1231 }
0x101c   :  { %v4727_v15 = vadd.f32 %v1232_v58, %v1224_v12 }
0x101e   :  { %4153 = vtanh.f32 %v4727_v15 }
0x1020   :  { %v1300_v23 = vpop.permute.xlu1 %1299 }
0x1021   :  { %v4731_v17 = vadd.f32 %v1300_v23, %v1292_v16 }
0x1023   :  { %4155 = vtanh.f32 %v4731_v17 }
0x1028   :  { %v4154_v3 = vpop.eup %4153 }
0x1029   :  { %1237 = vrot.lane.b32.xlu0 %v4154_v3, %s4327_s20 }
0x102d   :  { %v4156_v18 = vpop.eup %4155 }
0x102e   :  { %1305 = vrot.lane.b32.xlu1 %v4156_v18, %s4327_s20 }
0x109b   :  { %v1238_v19 = vpop.permute.xlu0 %1237 }
0x109c   :  { %v1240_v13 = vmul.f32 %v1238_v19, %v1223_v63 }
0x109e   :  { %v1310_v21 = vpack.c.bf16 %v1240_v13, %v1240_v13 }
0x10a0   :  { %1312 = vrot.lane.b32.xlu0 %v1310_v21, %s4328_s21  ;;  %v1306_v22 = vpop.permute.xlu1 %1305 }
0x10a1   :  { %v1308_v2 = vmul.f32 %v1306_v22, %v1291_v4 }
0x10a3   :  { %v1309_v5 = vpack.c.bf16 %v1308_v2, %v1308_v2 }
0x10a5   :  { %1358 = vrot.lane.b32.xlu1 %v1309_v5, %s4328_s21 }
0x1112   :  { %v1313_v14 = vpop.permute.xlu0 %1312 }
0x1113   :  { %3808 = vmatmul.mubr.msk.bf16.vlgmr.msra.gmra.mrb[40].mxu0 %vm282_vm5, %v1313_v14 }
0x1114   :  { %3820 = vmatpush3.bf16.msra.mxu0 %v4742_v25  ;;  %3823 = vmatprep.mubr.msk.bf16.mxu0 %vm4324_vm1, %v4323_v1 }
0x1115   :  { %3821 = vmatprep.subr.bf16.mxu0 %v4323_v1 }
0x1117   :  { %v1359_v8 = vpop.permute.xlu1 %1358 }
0x1118   :  { %3822 = vmatpush3.bf16.msra.mxu0 %v4751_v27  ;;  %3816 = vmatmul.mubr.msk.bf16.vlgmr.msra.gmra.mrb[40].mxu1 %vm282_vm5, %v1359_v8 }
0x1119   :  { %3828 = vmatpush3.bf16.msra.mxu1 %v4438_v34  ;;  %3835 = vmatprep.subr.bf16.mxu0 %v4323_v1 }
0x111a   :  { %3829 = vmatprep.subr.bf16.mxu1 %v4323_v1  ;;  %3831 = vmatprep.mubr.msk.bf16.mxu1 %vm4324_vm1, %v4323_v1 }
0x111b   :  { %3824 = vmatmul.mubr.msk.bf16.vlgmr.msra.gmra.mrb[44].mxu0 %vm282_vm5, %v1359_v8  ;;  %v4801_v8 = vld [vmem:[%s5290_s5] sm:$0xff]  }
0x111c   :  { %3836 = vmatpush3.bf16.msra.mxu0 %v4453_v36  ;;  %3839 = vmatprep.mubr.msk.bf16.mxu0 %vm4324_vm1, %v4323_v1 }
0x111d   :  { %3830 = vmatpush3.bf16.msra.mxu1 %v4444_v35  ;;  %3837 = vmatprep.subr.bf16.mxu0 %v4323_v1 }
0x111e   :  { %3843 = vmatprep.subr.bf16.mxu1 %v4323_v1 }
0x1120   :  { %3838 = vmatpush3.bf16.msra.mxu0 %v4463_v38 }
0x1121   :  { %3851 = vmatprep.subr.bf16.mxu0 %v4323_v1 }
0x11e6   :  { %v1351_v34 = vpop.f32.mrb[40].mxu0 }
0x11e7   :  { %v3809_v28 = vpop.f32.mrb[41].mxu0 }
0x11e8   :  { %v1354_v29 = vpop.f32.mrb[42].mxu0  ;;  %v4820_v28 = vld [vmem:[%s5289_s4] sm:$0xff]  }
0x11e9   :  { %v3810_v30 = vpop.f32.mrb[43].mxu0  ;;  %v4829_v29 = vld [vmem:[%s5289_s4 + $0x8] sm:$0xff]  }
0x11eb   :  { %v1397_v31 = vpop.f32.mrb[40].mxu1 }
0x11ec   :  { %v1398_v32 = vadd.f32 %v1397_v31, %v1351_v34  ;;  %v3817_v36 = vpop.f32.mrb[41].mxu1  ;;  %v4812_v34 = vld [vmem:[%s5290_s5 + $0x8] sm:$0xff]  }
0x11ed   :  { %v1400_v37 = vpop.f32.mrb[42].mxu1 }
0x11ee   :  { %v1403_v35 = vadd.f32 %v4488_v47, %v1398_v32  ;;  %v1465_v39 = vpop.f32.mrb[44].mxu0  ;;  %v3818_v40 = vpop.f32.mrb[43].mxu1 }
0x11ef   :  { %v1471_v11 = vadd.f32 %v1465_v39, %v189_v33  ;;  %v3825_v41 = vpop.f32.mrb[45].mxu0 }
0x11f0   :  { %v3446_v38 = vmul.f32 -1.442695, %v1403_v35  ;;  %v1468_v42 = vpop.f32.mrb[46].mxu0 }
0x11f1   :  { %v3448_v43 = vmul.f32 -1.442695, %v1471_v11  ;;  %v3826_v45 = vpop.f32.mrb[47].mxu0 }
0x11f2   :  { %4157 = vpow2.f32 %v3446_v38  ;;  %v4837_v38 = vld [vmem:[%s5288_s3] ss:$0 sm:$0xff] }
0x11f3   :  { %4159 = vpow2.f32 %v3448_v43  ;;  %v192_v42 = vadd.f32 %v4837_v38, %v4542_v46 }
0x11fc   :  { %v4158_v59 = vpop.eup %4157 }
0x11fd   :  { %v4160_v60 = vpop.eup %4159  ;;  %v1407_v61 = vadd.f32 1.0, %v4158_v59 }
0x11fe   :  { %v1475_v20 = vadd.f32 1.0, %v4160_v60 }
0x11ff   :  { %4161 = vrcp.f32 %v1407_v61 }
0x1200   :  { %4163 = vrcp.f32 %v1475_v20 }
0x1209   :  { %v4162_v7 = vpop.eup %4161 }
0x120a   :  { %v4164_v44 = vpop.eup %4163  ;;  %v1410_v62 = vmul.f32 %v4162_v7, %v4423_v24 }
0x120b   :  { %v1478_v63 = vmul.f32 %v4164_v44, %v4423_v24 }
0x120c   :  { %v1411_v48 = vadd.f32 %v1410_v62, %v4426_v26 }
0x120d   :  { %v1479_v0 = vadd.f32 %v1478_v63, %v4426_v26 }
0x120e   :  { %1414 = vrot.lane.b32.xlu0 %v1411_v48, %s4327_s20  ;;  %v1412_v10 = vmul.f32 %v1411_v48, %v4727_v15 }
0x120f   :  { %1482 = vrot.lane.b32.xlu1 %v1479_v0, %s4327_s20  ;;  %v1480_v12 = vmul.f32 %v1479_v0, %v4731_v17 }
0x1280   :  { %v1415_v4 = vpop.permute.xlu0 %1414 }
0x1281   :  { %v1483_v6 = vpop.permute.xlu1 %1482  ;;  %v1417_v9 = vmul.f32 %v1415_v4, %v1411_v48 }
0x1282   :  { %v1485_v57 = vmul.f32 %v1483_v6, %v1479_v0 }
0x1283   :  { %1419 = vrot.lane.b32.xlu0 %v1417_v9, %s4328_s21 }
0x1284   :  { %1487 = vrot.lane.b32.xlu1 %v1485_v57, %s4328_s21 }
0x12f5   :  { %v1420_v58 = vpop.permute.xlu0 %1419 }
0x12f6   :  { %v1488_v16 = vpop.permute.xlu1 %1487  ;;  %v4782_v23 = vadd.f32 %v1420_v58, %v1412_v10 }
0x12f7   :  { %v4784_v3 = vadd.f32 %v1488_v16, %v1480_v12 }
0x12f8   :  { %4165 = vtanh.f32 %v4782_v23 }
0x12f9   :  { %4167 = vtanh.f32 %v4784_v3 }
0x1302   :  { %v4166_v18 = vpop.eup %4165 }
0x1303   :  { %v4168_v19 = vpop.eup %4167  ;;  %1425 = vrot.lane.b32.xlu0 %v4166_v18, %s4327_s20 }
0x1304   :  { %1493 = vrot.lane.b32.xlu1 %v4168_v19, %s4327_s20 }
0x1375   :  { %v1426_v13 = vpop.permute.xlu0 %1425 }
0x1376   :  { %v1494_v15 = vpop.permute.xlu1 %1493  ;;  %v1428_v21 = vmul.f32 %v1426_v13, %v1411_v48 }
0x1377   :  { %v1496_v17 = vmul.f32 %v1494_v15, %v1479_v0 }
0x1378   :  { %v1498_v22 = vpack.c.bf16 %v1428_v21, %v1428_v21 }
0x1379   :  { %v1497_v2 = vpack.c.bf16 %v1496_v17, %v1496_v17 }
0x137a   :  { %1500 = vrot.lane.b32.xlu0 %v1498_v22, %s4328_s21 }
0x137b   :  { %1546 = vrot.lane.b32.xlu1 %v1497_v2, %s4328_s21 }
0x13ec   :  { %v1501_v5 = vpop.permute.xlu0 %1500 }
0x13ed   :  { %v1547_v14 = vpop.permute.xlu1 %1546  ;;  %3832 = vmatmul.mubr.msk.bf16.vlgmr.msra.gmra.mrb[44].mxu1 %vm282_vm5, %v1501_v5 }
0x13ee   :  { %3840 = vmatmul.mubr.msk.bf16.vlgmr.msra.gmra.mrb[48].mxu0 %vm282_vm5, %v1547_v14  ;;  %3844 = vmatpush3.bf16.msra.mxu1 %v4742_v25 }
0x13ef   :  { %3845 = vmatprep.subr.bf16.mxu1 %v4323_v1  ;;  %3847 = vmatprep.mubr.msk.bf16.mxu1 %vm4324_vm1, %v4323_v1 }
0x13f0   :  { %3852 = vmatpush3.bf16.msra.mxu0 %v4801_v8  ;;  %3855 = vmatprep.mubr.msk.bf16.mxu0 %vm4324_vm1, %v4323_v1 }
0x13f1   :  { %3853 = vmatprep.subr.bf16.mxu0 %v4323_v1 }
0x13f2   :  { %3846 = vmatpush3.bf16.msra.mxu1 %v4751_v27 }
0x13f3   :  { %3859 = vmatprep.subr.bf16.mxu1 %v4323_v1 }
0x13f4   :  { %3854 = vmatpush3.bf16.msra.mxu0 %v4812_v34 }
0x13f5   :  { %3848 = vmatmul.mubr.msk.bf16.vlgmr.msra.gmra.mrb[48].mxu1 %vm282_vm5, %v1547_v14  ;;  %3867 = vmatprep.subr.bf16.mxu0 %v4323_v1 }
0x13f6   :  { %3860 = vmatpush3.bf16.msra.mxu1 %v4820_v28  ;;  %3863 = vmatprep.mubr.msk.bf16.mxu1 %vm4324_vm1, %v4323_v1 }
0x13f7   :  { %3861 = vmatprep.subr.bf16.mxu1 %v4323_v1 }
0x13fa   :  { %3862 = vmatpush3.bf16.msra.mxu1 %v4829_v29 }
0x13fb   :  { %3875 = vmatprep.subr.bf16.mxu1 %v4323_v1 }
0x14c0   :  { %v1539_v30 = vpop.f32.mrb[44].mxu1 }
0x14c1   :  { %v1585_v31 = vpop.f32.mrb[48].mxu0  ;;  %v3833_v32 = vpop.f32.mrb[45].mxu1 }
0x14c2   :  { %v1586_v36 = vadd.f32 %v1585_v31, %v1539_v30  ;;  %v3841_v33 = vpop.f32.mrb[49].mxu0  ;;  %v1542_v37 = vpop.f32.mrb[46].mxu1 }
0x14c3   :  { %v1588_v35 = vpop.f32.mrb[50].mxu0  ;;  %v3834_v39 = vpop.f32.mrb[47].mxu1 }
0x14c4   :  { %v1591_v40 = vadd.f32 %v4488_v47, %v1586_v36  ;;  %v3842_v11 = vpop.f32.mrb[51].mxu0 }
0x14c5   :  { %v197_v11 = vadd.f32 %v4837_v38, %v4548_v50 }
0x14c6   :  { %v3451_v41 = vmul.f32 -1.442695, %v1591_v40 }
0x14c8   :  { %4169 = vpow2.f32 %v3451_v41  ;;  %v1653_v43 = vpop.f32.mrb[48].mxu1 }
0x14c9   :  { %v1659_v45 = vadd.f32 %v1653_v43, %v192_v42  ;;  %v3849_v59 = vpop.f32.mrb[49].mxu1  ;;  %v4887_v42 = vld [vmem:[%s5291_s6] ss:$0 sm:$0xff] }
0x14ca   :  { %v1656_v60 = vpop.f32.mrb[50].mxu1 }
0x14cb   :  { %v3453_v61 = vmul.f32 -1.442695, %v1659_v45  ;;  %v3850_v20 = vpop.f32.mrb[51].mxu1 }
0x14cd   :  { %4171 = vpow2.f32 %v3453_v61 }
0x14d2   :  { %v4170_v7 = vpop.eup %4169 }
0x14d3   :  { %v1595_v47 = vadd.f32 1.0, %v4170_v7 }
0x14d5   :  { %4173 = vrcp.f32 %v1595_v47 }
0x14d7   :  { %v4172_v44 = vpop.eup %4171 }
0x14d8   :  { %v1663_v62 = vadd.f32 1.0, %v4172_v44 }
0x14da   :  { %4175 = vrcp.f32 %v1663_v62 }
0x14df   :  { %v4174_v63 = vpop.eup %4173 }
0x14e0   :  { %v1598_v48 = vmul.f32 %v4174_v63, %v4423_v24 }
0x14e2   :  { %v1599_v0 = vadd.f32 %v1598_v48, %v4426_v26 }
0x14e4   :  { %v4176_v46 = vpop.eup %4175  ;;  %1602 = vrot.lane.b32.xlu0 %v1599_v0, %s4327_s20  ;;  %v1600_v58 = vmul.f32 %v1599_v0, %v4782_v23 }
0x14e5   :  { %v1666_v4 = vmul.f32 %v4176_v46, %v4423_v24 }
0x14e7   :  { %v1667_v6 = vadd.f32 %v1666_v4, %v4426_v26 }
0x14e9   :  { %1670 = vrot.lane.b32.xlu1 %v1667_v6, %s4327_s20  ;;  %v1668_v19 = vmul.f32 %v1667_v6, %v4784_v3 }
0x1556   :  { %v1603_v9 = vpop.permute.xlu0 %1602 }
0x1557   :  { %v1605_v57 = vmul.f32 %v1603_v9, %v1599_v0 }
0x1559   :  { %1607 = vrot.lane.b32.xlu0 %v1605_v57, %s4328_s21 }
0x155b   :  { %v1671_v10 = vpop.permute.xlu1 %1670 }
0x155c   :  { %v1673_v12 = vmul.f32 %v1671_v10, %v1667_v6 }
0x155e   :  { %1675 = vrot.lane.b32.xlu1 %v1673_v12, %s4328_s21 }
0x15cb   :  { %v1608_v16 = vpop.permute.xlu0 %1607 }
0x15cc   :  { %v4850_v18 = vadd.f32 %v1608_v16, %v1600_v58 }
0x15ce   :  { %4177 = vtanh.f32 %v4850_v18 }
0x15d0   :  { %v1676_v13 = vpop.permute.xlu1 %1675 }
0x15d1   :  { %v4854_v15 = vadd.f32 %v1676_v13, %v1668_v19 }
0x15d3   :  { %4179 = vtanh.f32 %v4854_v15 }
0x15d8   :  { %v4178_v21 = vpop.eup %4177 }
0x15d9   :  { %1613 = vrot.lane.b32.xlu0 %v4178_v21, %s4327_s20 }
0x15dd   :  { %v4180_v17 = vpop.eup %4179 }
0x15de   :  { %1681 = vrot.lane.b32.xlu1 %v4180_v17, %s4327_s20 }
0x164b   :  { %v1614_v22 = vpop.permute.xlu0 %1613 }
0x164c   :  { %v1616_v23 = vmul.f32 %v1614_v22, %v1599_v0 }
0x164e   :  { %v1686_v2 = vpack.c.bf16 %v1616_v23, %v1616_v23 }
0x1650   :  { %1688 = vrot.lane.b32.xlu0 %v1686_v2, %s4328_s21  ;;  %v1682_v5 = vpop.permute.xlu1 %1681 }
0x1651   :  { %v1684_v14 = vmul.f32 %v1682_v5, %v1667_v6 }
0x1653   :  { %v1685_v30 = vpack.c.bf16 %v1684_v14, %v1684_v14 }
0x1655   :  { %1734 = vrot.lane.b32.xlu1 %v1685_v30, %s4328_s21 }
0x16c2   :  { %v1689_v3 = vpop.permute.xlu0 %1688 }
0x16c3   :  { %3856 = vmatmul.mubr.msk.bf16.vlgmr.msra.gmra.mrb[52].mxu0 %vm282_vm5, %v1689_v3 }
0x16c4   :  { %3868 = vmatpush3.bf16.msra.mxu0 %v4742_v25  ;;  %3871 = vmatprep.mubr.msk.bf16.mxu0 %vm4324_vm1, %v4323_v1 }
0x16c5   :  { %3869 = vmatprep.subr.bf16.mxu0 %v4323_v1 }
0x16c7   :  { %v1735_v31 = vpop.permute.xlu1 %1734 }
0x16c8   :  { %3870 = vmatpush3.bf16.msra.mxu0 %v4751_v27  ;;  %3864 = vmatmul.mubr.msk.bf16.vlgmr.msra.gmra.mrb[52].mxu1 %vm282_vm5, %v1735_v31 }
0x16c9   :  { %3876 = vmatpush3.bf16.msra.mxu1 %v4801_v8  ;;  %3883 = vmatprep.subr.bf16.mxu0 %v4323_v1 }
0x16ca   :  { %3877 = vmatprep.subr.bf16.mxu1 %v4323_v1  ;;  %3879 = vmatprep.mubr.msk.bf16.mxu1 %vm4324_vm1, %v4323_v1 }
0x16cb   :  { %3872 = vmatmul.mubr.msk.bf16.vlgmr.msra.gmra.mrb[56].mxu0 %vm282_vm5, %v1735_v31 }
0x16cc   :  { %3884 = vmatpush3.bf16.msra.mxu0 %v4820_v28  ;;  %3887 = vmatprep.mubr.msk.bf16.mxu0 %vm4324_vm1, %v4323_v1 }
0x16cd   :  { %3878 = vmatpush3.bf16.msra.mxu1 %v4812_v34  ;;  %3885 = vmatprep.subr.bf16.mxu0 %v4323_v1 }
0x16ce   :  { %3891 = vmatprep.subr.bf16.mxu1 %v4323_v1 }
0x16d0   :  { %3886 = vmatpush3.bf16.msra.mxu0 %v4829_v29 }
0x16d1   :  { %3899 = vmatprep.subr.bf16.mxu0 %v4323_v1 }
0x1796   :  { %v1727_v32 = vpop.f32.mrb[52].mxu0 }
0x1797   :  { %v3857_v36 = vpop.f32.mrb[53].mxu0 }
0x1798   :  { %v1730_v33 = vpop.f32.mrb[54].mxu0 }
0x1799   :  { %v3858_v37 = vpop.f32.mrb[55].mxu0 }
0x179b   :  { %v1773_v35 = vpop.f32.mrb[52].mxu1 }
0x179c   :  { %v1774_v39 = vadd.f32 %v1773_v35, %v1727_v32  ;;  %v3865_v40 = vpop.f32.mrb[53].mxu1 }
0x179d   :  { %v1776_v41 = vpop.f32.mrb[54].mxu1 }
0x179e   :  { %v1779_v43 = vadd.f32 %v4887_v42, %v1774_v39  ;;  %v1841_v45 = vpop.f32.mrb[56].mxu0  ;;  %v3866_v59 = vpop.f32.mrb[55].mxu1 }
0x179f   :  { %v1847_v60 = vadd.f32 %v1841_v45, %v197_v11  ;;  %v3873_v61 = vpop.f32.mrb[57].mxu0 }
0x17a0   :  { %v3456_v20 = vmul.f32 -1.442695, %v1779_v43  ;;  %v1844_v7 = vpop.f32.mrb[58].mxu0  ;;  %v200_v61 = vadd.f32 %v4837_v38, %v4552_v52 }
0x17a1   :  { %v3458_v47 = vmul.f32 -1.442695, %v1847_v60  ;;  %v3874_v44 = vpop.f32.mrb[59].mxu0 }
0x17a2   :  { %4181 = vpow2.f32 %v3456_v20 }
0x17a3   :  { %4183 = vpow2.f32 %v3458_v47 }
0x17ac   :  { %v4182_v62 = vpop.eup %4181 }
0x17ad   :  { %v4184_v50 = vpop.eup %4183  ;;  %v1783_v63 = vadd.f32 1.0, %v4182_v62 }
0x17ae   :  { %v1851_v48 = vadd.f32 1.0, %v4184_v50 }
0x17af   :  { %4185 = vrcp.f32 %v1783_v63 }
0x17b0   :  { %4187 = vrcp.f32 %v1851_v48 }
0x17b9   :  { %v4186_v0 = vpop.eup %4185 }
0x17ba   :  { %v4188_v46 = vpop.eup %4187  ;;  %v1786_v4 = vmul.f32 %v4186_v0, %v4423_v24 }
0x17bb   :  { %v1854_v6 = vmul.f32 %v4188_v46, %v4423_v24 }
0x17bc   :  { %v1787_v9 = vadd.f32 %v1786_v4, %v4426_v26 }
0x17bd   :  { %v1855_v57 = vadd.f32 %v1854_v6, %v4426_v26 }
0x17be   :  { %1790 = vrot.lane.b32.xlu0 %v1787_v9, %s4327_s20  ;;  %v1788_v19 = vmul.f32 %v1787_v9, %v4850_v18 }
0x17bf   :  { %1858 = vrot.lane.b32.xlu1 %v1855_v57, %s4327_s20  ;;  %v1856_v13 = vmul.f32 %v1855_v57, %v4854_v15 }
0x1830   :  { %v1791_v10 = vpop.permute.xlu0 %1790 }
0x1831   :  { %v1859_v12 = vpop.permute.xlu1 %1858  ;;  %v1793_v58 = vmul.f32 %v1791_v10, %v1787_v9 }
0x1832   :  { %v1861_v16 = vmul.f32 %v1859_v12, %v1855_v57 }
0x1833   :  { %1795 = vrot.lane.b32.xlu0 %v1793_v58, %s4328_s21 }
0x1834   :  { %1863 = vrot.lane.b32.xlu1 %v1861_v16, %s4328_s21 }
0x18a5   :  { %v1796_v21 = vpop.permute.xlu0 %1795 }
0x18a6   :  { %v1864_v17 = vpop.permute.xlu1 %1863  ;;  %v4900_v22 = vadd.f32 %v1796_v21, %v1788_v19 }
0x18a7   :  { %v4902_v23 = vadd.f32 %v1864_v17, %v1856_v13 }
0x18a8   :  { %4189 = vtanh.f32 %v4900_v22 }
0x18a9   :  { %4191 = vtanh.f32 %v4902_v23 }
0x18b2   :  { %v4190_v2 = vpop.eup %4189 }
0x18b3   :  { %v4192_v5 = vpop.eup %4191  ;;  %1801 = vrot.lane.b32.xlu0 %v4190_v2, %s4327_s20 }
0x18b4   :  { %1869 = vrot.lane.b32.xlu1 %v4192_v5, %s4327_s20 }
0x1925   :  { %v1802_v14 = vpop.permute.xlu0 %1801 }
0x1926   :  { %v1870_v18 = vpop.permute.xlu1 %1869  ;;  %v1804_v30 = vmul.f32 %v1802_v14, %v1787_v9 }
0x1927   :  { %v1872_v15 = vmul.f32 %v1870_v18, %v1855_v57 }
0x1928   :  { %v1874_v3 = vpack.c.bf16 %v1804_v30, %v1804_v30 }
0x1929   :  { %v1873_v31 = vpack.c.bf16 %v1872_v15, %v1872_v15 }
0x192a   :  { %1876 = vrot.lane.b32.xlu0 %v1874_v3, %s4328_s21 }
0x192b   :  { %1922 = vrot.lane.b32.xlu1 %v1873_v31, %s4328_s21 }
0x199c   :  { %v1877_v32 = vpop.permute.xlu0 %1876 }
0x199d   :  { %v1923_v36 = vpop.permute.xlu1 %1922  ;;  %3880 = vmatmul.mubr.msk.bf16.vlgmr.msra.gmra.mrb[56].mxu1 %vm282_vm5, %v1877_v32 }
0x199e   :  { %3888 = vmatmul.mubr.msk.bf16.vlgmr.msra.gmra.mrb[60].mxu0 %vm282_vm5, %v1923_v36  ;;  %3892 = vmatpush3.bf16.msra.mxu1 %v4742_v25 }
0x199f   :  { %3893 = vmatprep.subr.bf16.mxu1 %v4323_v1  ;;  %3895 = vmatprep.mubr.msk.bf16.mxu1 %vm4324_vm1, %v4323_v1 }
0x19a0   :  { %3900 = vmatpush3.bf16.msra.mxu0 %v4801_v8  ;;  %3903 = vmatprep.mubr.msk.bf16.mxu0 %vm4324_vm1, %v4323_v1 }
0x19a1   :  { %3901 = vmatprep.subr.bf16.mxu0 %v4323_v1 }
0x19a2   :  { %3894 = vmatpush3.bf16.msra.mxu1 %v4751_v27 }
0x19a3   :  { %3907 = vmatprep.subr.bf16.mxu1 %v4323_v1 }
0x19a4   :  { %3902 = vmatpush3.bf16.msra.mxu0 %v4812_v34 }
0x19a5   :  { %3896 = vmatmul.mubr.msk.bf16.vlgmr.msra.gmra.mrb[60].mxu1 %vm282_vm5, %v1923_v36  ;;  %3915 = vmatprep.subr.bf16.mxu0 %v4323_v1 }
0x19a6   :  { %3908 = vmatpush3.bf16.msra.mxu1 %v4820_v28  ;;  %3911 = vmatprep.mubr.msk.bf16.mxu1 %vm4324_vm1, %v4323_v1 }
0x19a7   :  { %3909 = vmatprep.subr.bf16.mxu1 %v4323_v1 }
0x19aa   :  { %3910 = vmatpush3.bf16.msra.mxu1 %v4829_v29 }
0x19ab   :  { %3923 = vmatprep.subr.bf16.mxu1 %v4323_v1 }
0x1a70   :  { %v1915_v33 = vpop.f32.mrb[56].mxu1 }
0x1a71   :  { %v1961_v37 = vpop.f32.mrb[60].mxu0  ;;  %v3881_v35 = vpop.f32.mrb[57].mxu1 }
0x1a72   :  { %v1962_v39 = vadd.f32 %v1961_v37, %v1915_v33  ;;  %v3889_v40 = vpop.f32.mrb[61].mxu0  ;;  %v1918_v11 = vpop.f32.mrb[58].mxu1 }
0x1a73   :  { %v1964_v41 = vpop.f32.mrb[62].mxu0  ;;  %v3882_v43 = vpop.f32.mrb[59].mxu1 }
0x1a74   :  { %v1967_v45 = vadd.f32 %v4887_v42, %v1962_v39  ;;  %v3890_v59 = vpop.f32.mrb[63].mxu0 }
0x1a76   :  { %v3461_v60 = vmul.f32 -1.442695, %v1967_v45  ;;  %v205_v45 = vadd.f32 %v4837_v38, %v4546_v49 }
0x1a78   :  { %4193 = vpow2.f32 %v3461_v60  ;;  %v2029_v20 = vpop.f32.mrb[60].mxu1 }
0x1a79   :  { %v2035_v7 = vadd.f32 %v2029_v20, %v200_v61  ;;  %v3897_v47 = vpop.f32.mrb[61].mxu1 }
0x1a7a   :  { %v2032_v44 = vpop.f32.mrb[62].mxu1 }
0x1a7b   :  { %v3463_v62 = vmul.f32 -1.442695, %v2035_v7  ;;  %v3898_v50 = vpop.f32.mrb[63].mxu1 }
0x1a7d   :  { %4195 = vpow2.f32 %v3463_v62 }
0x1a82   :  { %v4194_v63 = vpop.eup %4193 }
0x1a83   :  { %v1971_v48 = vadd.f32 1.0, %v4194_v63 }
0x1a85   :  { %4197 = vrcp.f32 %v1971_v48 }
0x1a87   :  { %v4196_v0 = vpop.eup %4195 }
0x1a88   :  { %v2039_v46 = vadd.f32 1.0, %v4196_v0 }
0x1a8a   :  { %4199 = vrcp.f32 %v2039_v46 }
0x1a8f   :  { %v4198_v4 = vpop.eup %4197 }
0x1a90   :  { %v1974_v6 = vmul.f32 %v4198_v4, %v4423_v24 }
0x1a92   :  { %v1975_v9 = vadd.f32 %v1974_v6, %v4426_v26 }
0x1a94   :  { %v4200_v52 = vpop.eup %4199  ;;  %1978 = vrot.lane.b32.xlu0 %v1975_v9, %s4327_s20  ;;  %v1976_v13 = vmul.f32 %v1975_v9, %v4900_v22 }
0x1a95   :  { %v2042_v57 = vmul.f32 %v4200_v52, %v4423_v24 }
0x1a97   :  { %v2043_v10 = vadd.f32 %v2042_v57, %v4426_v26 }
0x1a99   :  { %2046 = vrot.lane.b32.xlu1 %v2043_v10, %s4327_s20  ;;  %v2044_v2 = vmul.f32 %v2043_v10, %v4902_v23 }
0x1b06   :  { %v1979_v12 = vpop.permute.xlu0 %1978 }
0x1b07   :  { %v1981_v58 = vmul.f32 %v1979_v12, %v1975_v9 }
0x1b09   :  { %1983 = vrot.lane.b32.xlu0 %v1981_v58, %s4328_s21 }
0x1b0b   :  { %v2047_v16 = vpop.permute.xlu1 %2046 }
0x1b0c   :  { %v2049_v19 = vmul.f32 %v2047_v16, %v2043_v10 }
0x1b0e   :  { %2051 = vrot.lane.b32.xlu1 %v2049_v19, %s4328_s21 }
0x1b7b   :  { %v1984_v21 = vpop.permute.xlu0 %1983 }
0x1b7c   :  { %v4943_v17 = vadd.f32 %v1984_v21, %v1976_v13 }
0x1b7e   :  { %4201 = vtanh.f32 %v4943_v17 }
0x1b80   :  { %v2052_v5 = vpop.permute.xlu1 %2051 }
0x1b81   :  { %v4947_v14 = vadd.f32 %v2052_v5, %v2044_v2 }
0x1b83   :  { %4203 = vtanh.f32 %v4947_v14 }
0x1b88   :  { %v4202_v18 = vpop.eup %4201 }
0x1b89   :  { %1989 = vrot.lane.b32.xlu0 %v4202_v18, %s4327_s20 }
0x1b8d   :  { %v4204_v30 = vpop.eup %4203 }
0x1b8e   :  { %2057 = vrot.lane.b32.xlu1 %v4204_v30, %s4327_s20 }
0x1bfb   :  { %v1990_v15 = vpop.permute.xlu0 %1989 }
0x1bfc   :  { %v1992_v22 = vmul.f32 %v1990_v15, %v1975_v9 }
0x1bfe   :  { %v2062_v3 = vpack.c.bf16 %v1992_v22, %v1992_v22 }
0x1c00   :  { %2064 = vrot.lane.b32.xlu0 %v2062_v3, %s4328_s21  ;;  %v2058_v31 = vpop.permute.xlu1 %2057 }
0x1c01   :  { %v2060_v32 = vmul.f32 %v2058_v31, %v2043_v10 }
0x1c03   :  { %v2061_v36 = vpack.c.bf16 %v2060_v32, %v2060_v32 }
0x1c05   :  { %2110 = vrot.lane.b32.xlu1 %v2061_v36, %s4328_s21 }
0x1c72   :  { %v2065_v23 = vpop.permute.xlu0 %2064 }
0x1c73   :  { %3904 = vmatmul.mubr.msk.bf16.vlgmr.msra.gmra.mrb[64].mxu0 %vm282_vm5, %v2065_v23 }
0x1c74   :  { %3916 = vmatpush3.bf16.msra.mxu0 %v4742_v25  ;;  %3919 = vmatprep.mubr.msk.bf16.mxu0 %vm4324_vm1, %v4323_v1 }
0x1c75   :  { %3917 = vmatprep.subr.bf16.mxu0 %v4323_v1 }
0x1c77   :  { %v2111_v33 = vpop.permute.xlu1 %2110 }
0x1c78   :  { %3918 = vmatpush3.bf16.msra.mxu0 %v4751_v27  ;;  %3912 = vmatmul.mubr.msk.bf16.vlgmr.msra.gmra.mrb[64].mxu1 %vm282_vm5, %v2111_v33 }
0x1c79   :  { %3924 = vmatpush3.bf16.msra.mxu1 %v4801_v8  ;;  %3931 = vmatprep.subr.bf16.mxu0 %v4323_v1 }
0x1c7a   :  { %3925 = vmatprep.subr.bf16.mxu1 %v4323_v1  ;;  %3927 = vmatprep.mubr.msk.bf16.mxu1 %vm4324_vm1, %v4323_v1 }
0x1c7b   :  { %3920 = vmatmul.mubr.msk.bf16.vlgmr.msra.gmra.mrb[68].mxu0 %vm282_vm5, %v2111_v33 }
0x1c7c   :  { %3932 = vmatpush3.bf16.msra.mxu0 %v4820_v28  ;;  %3935 = vmatprep.mubr.msk.bf16.mxu0 %vm4324_vm1, %v4323_v1 }
0x1c7d   :  { %3926 = vmatpush3.bf16.msra.mxu1 %v4812_v34  ;;  %3933 = vmatprep.subr.bf16.mxu0 %v4323_v1 }
0x1c7e   :  { %3939 = vmatprep.subr.bf16.mxu1 %v4323_v1 }
0x1c80   :  { %3934 = vmatpush3.bf16.msra.mxu0 %v4829_v29 }
0x1c81   :  { %3947 = vmatprep.subr.bf16.mxu0 %v4323_v1 }
0x1d46   :  { %v2103_v37 = vpop.f32.mrb[64].mxu0 }
0x1d47   :  { %v3905_v35 = vpop.f32.mrb[65].mxu0 }
0x1d48   :  { %v2106_v39 = vpop.f32.mrb[66].mxu0 }
0x1d49   :  { %v3906_v40 = vpop.f32.mrb[67].mxu0 }
0x1d4b   :  { %v2149_v11 = vpop.f32.mrb[64].mxu1 }
0x1d4c   :  { %v2150_v41 = vadd.f32 %v2149_v11, %v2103_v37  ;;  %v3913_v43 = vpop.f32.mrb[65].mxu1 }
0x1d4d   :  { %v2152_v59 = vpop.f32.mrb[66].mxu1 }
0x1d4e   :  { %v2155_v60 = vadd.f32 %v4887_v42, %v2150_v41  ;;  %v2217_v61 = vpop.f32.mrb[68].mxu0  ;;  %v3914_v20 = vpop.f32.mrb[67].mxu1 }
0x1d4f   :  { %v2223_v7 = vadd.f32 %v2217_v61, %v205_v45  ;;  %v3921_v47 = vpop.f32.mrb[69].mxu0  ;;  %v208_v20 = vadd.f32 %v4837_v38, %v4550_v51 }
0x1d50   :  { %v3466_v44 = vmul.f32 -1.442695, %v2155_v60  ;;  %v2220_v62 = vpop.f32.mrb[70].mxu0 }
0x1d51   :  { %v3468_v50 = vmul.f32 -1.442695, %v2223_v7  ;;  %v3922_v63 = vpop.f32.mrb[71].mxu0 }
0x1d52   :  { %4205 = vpow2.f32 %v3466_v44 }
0x1d53   :  { %4207 = vpow2.f32 %v3468_v50 }
0x1d5c   :  { %v4206_v48 = vpop.eup %4205 }
0x1d5d   :  { %v4208_v0 = vpop.eup %4207  ;;  %v2159_v46 = vadd.f32 1.0, %v4206_v48 }
0x1d5e   :  { %v2227_v4 = vadd.f32 1.0, %v4208_v0 }
0x1d5f   :  { %4209 = vrcp.f32 %v2159_v46 }
0x1d60   :  { %4211 = vrcp.f32 %v2227_v4 }
0x1d69   :  { %v4210_v49 = vpop.eup %4209 }
0x1d6a   :  { %v4212_v6 = vpop.eup %4211  ;;  %v2162_v9 = vmul.f32 %v4210_v49, %v4423_v24 }
0x1d6b   :  { %v2230_v52 = vmul.f32 %v4212_v6, %v4423_v24 }
0x1d6c   :  { %v2163_v57 = vadd.f32 %v2162_v9, %v4426_v26 }
0x1d6d   :  { %v2231_v10 = vadd.f32 %v2230_v52, %v4426_v26 }
0x1d6e   :  { %2166 = vrot.lane.b32.xlu0 %v2163_v57, %s4327_s20  ;;  %v2164_v13 = vmul.f32 %v2163_v57, %v4943_v17 }
0x1d6f   :  { %2234 = vrot.lane.b32.xlu1 %v2231_v10, %s4327_s20  ;;  %v2232_v21 = vmul.f32 %v2231_v10, %v4947_v14 }
0x1de0   :  { %v2167_v12 = vpop.permute.xlu0 %2166 }
0x1de1   :  { %v2235_v58 = vpop.permute.xlu1 %2234  ;;  %v2169_v16 = vmul.f32 %v2167_v12, %v2163_v57 }
0x1de2   :  { %v2237_v19 = vmul.f32 %v2235_v58, %v2231_v10 }
0x1de3   :  { %2171 = vrot.lane.b32.xlu0 %v2169_v16, %s4328_s21 }
0x1de4   :  { %2239 = vrot.lane.b32.xlu1 %v2237_v19, %s4328_s21 }
0x1e55   :  { %v2172_v2 = vpop.permute.xlu0 %2171 }
0x1e56   :  { %v2240_v5 = vpop.permute.xlu1 %2239  ;;  %v4988_v18 = vadd.f32 %v2172_v2, %v2164_v13 }
0x1e57   :  { %v4990_v30 = vadd.f32 %v2240_v5, %v2232_v21 }
0x1e58   :  { %4213 = vtanh.f32 %v4988_v18 }
0x1e59   :  { %4215 = vtanh.f32 %v4990_v30 }
0x1e62   :  { %v4214_v15 = vpop.eup %4213 }
0x1e63   :  { %v4216_v22 = vpop.eup %4215  ;;  %2177 = vrot.lane.b32.xlu0 %v4214_v15, %s4327_s20 }
0x1e64   :  { %2245 = vrot.lane.b32.xlu1 %v4216_v22, %s4327_s20 }
0x1ed5   :  { %v2178_v3 = vpop.permute.xlu0 %2177 }
0x1ed6   :  { %v2246_v17 = vpop.permute.xlu1 %2245  ;;  %v2180_v31 = vmul.f32 %v2178_v3, %v2163_v57 }
0x1ed7   :  { %v2248_v14 = vmul.f32 %v2246_v17, %v2231_v10 }
0x1ed8   :  { %v2250_v32 = vpack.c.bf16 %v2180_v31, %v2180_v31 }
0x1ed9   :  { %v2249_v36 = vpack.c.bf16 %v2248_v14, %v2248_v14 }
0x1eda   :  { %2252 = vrot.lane.b32.xlu0 %v2250_v32, %s4328_s21 }
0x1edb   :  { %2298 = vrot.lane.b32.xlu1 %v2249_v36, %s4328_s21 }
0x1f4c   :  { %v2253_v23 = vpop.permute.xlu0 %2252 }
0x1f4d   :  { %v2299_v33 = vpop.permute.xlu1 %2298  ;;  %3928 = vmatmul.mubr.msk.bf16.vlgmr.msra.gmra.mrb[68].mxu1 %vm282_vm5, %v2253_v23 }
0x1f4e   :  { %3936 = vmatmul.mubr.msk.bf16.vlgmr.msra.gmra.mrb[72].mxu0 %vm282_vm5, %v2299_v33  ;;  %3940 = vmatpush3.bf16.msra.mxu1 %v4742_v25 }
0x1f4f   :  { %3941 = vmatprep.subr.bf16.mxu1 %v4323_v1  ;;  %3943 = vmatprep.mubr.msk.bf16.mxu1 %vm4324_vm1, %v4323_v1 }
0x1f50   :  { %3948 = vmatpush3.bf16.msra.mxu0 %v4801_v8  ;;  %3951 = vmatprep.mubr.msk.bf16.mxu0 %vm4324_vm1, %v4323_v1 }
0x1f51   :  { %3949 = vmatprep.subr.bf16.mxu0 %v4323_v1 }
0x1f52   :  { %3942 = vmatpush3.bf16.msra.mxu1 %v4751_v27 }
0x1f53   :  { %3955 = vmatprep.subr.bf16.mxu1 %v4323_v1 }
0x1f54   :  { %3950 = vmatpush3.bf16.msra.mxu0 %v4812_v34 }
0x1f55   :  { %3944 = vmatmul.mubr.msk.bf16.vlgmr.msra.gmra.mrb[72].mxu1 %vm282_vm5, %v2299_v33  ;;  %3963 = vmatprep.subr.bf16.mxu0 %v4323_v1 }
0x1f56   :  { %3956 = vmatpush3.bf16.msra.mxu1 %v4820_v28  ;;  %3959 = vmatprep.mubr.msk.bf16.mxu1 %vm4324_vm1, %v4323_v1 }
0x1f57   :  { %3957 = vmatprep.subr.bf16.mxu1 %v4323_v1 }
0x1f5a   :  { %3958 = vmatpush3.bf16.msra.mxu1 %v4829_v29 }
0x1f5b   :  { %3971 = vmatprep.subr.bf16.mxu1 %v4323_v1 }
0x2020   :  { %v2291_v37 = vpop.f32.mrb[68].mxu1 }
0x2021   :  { %v2337_v35 = vpop.f32.mrb[72].mxu0  ;;  %v3929_v39 = vpop.f32.mrb[69].mxu1 }
0x2022   :  { %v2338_v40 = vadd.f32 %v2337_v35, %v2291_v37  ;;  %v3937_v11 = vpop.f32.mrb[73].mxu0  ;;  %v2294_v41 = vpop.f32.mrb[70].mxu1 }
0x2023   :  { %v2340_v43 = vpop.f32.mrb[74].mxu0  ;;  %v3930_v45 = vpop.f32.mrb[71].mxu1  ;;  %v213_v11 = vadd.f32 %v4837_v38, %v4556_v54 }
0x2024   :  { %v2343_v59 = vadd.f32 %v4887_v42, %v2338_v40  ;;  %v3938_v60 = vpop.f32.mrb[75].mxu0 }
0x2026   :  { %v3471_v61 = vmul.f32 -1.442695, %v2343_v59 }
0x2028   :  { %4217 = vpow2.f32 %v3471_v61  ;;  %v2405_v7 = vpop.f32.mrb[72].mxu1 }
0x2029   :  { %v2411_v47 = vadd.f32 %v2405_v7, %v208_v20  ;;  %v3945_v44 = vpop.f32.mrb[73].mxu1 }
0x202a   :  { %v2408_v62 = vpop.f32.mrb[74].mxu1 }
0x202b   :  { %v3473_v50 = vmul.f32 -1.442695, %v2411_v47  ;;  %v3946_v63 = vpop.f32.mrb[75].mxu1 }
0x202d   :  { %4219 = vpow2.f32 %v3473_v50 }
0x2032   :  { %v4218_v48 = vpop.eup %4217 }
0x2033   :  { %v2347_v0 = vadd.f32 1.0, %v4218_v48 }
0x2035   :  { %4221 = vrcp.f32 %v2347_v0 }
0x2037   :  { %v4220_v46 = vpop.eup %4219 }
0x2038   :  { %v2415_v4 = vadd.f32 1.0, %v4220_v46 }
0x203a   :  { %4223 = vrcp.f32 %v2415_v4 }
0x203f   :  { %v4222_v49 = vpop.eup %4221 }
0x2040   :  { %v2350_v6 = vmul.f32 %v4222_v49, %v4423_v24 }
0x2042   :  { %v2351_v9 = vadd.f32 %v2350_v6, %v4426_v26 }
0x2044   :  { %v4224_v51 = vpop.eup %4223  ;;  %2354 = vrot.lane.b32.xlu0 %v2351_v9, %s4327_s20  ;;  %v2352_v19 = vmul.f32 %v2351_v9, %v4988_v18 }
0x2045   :  { %v2418_v52 = vmul.f32 %v4224_v51, %v4423_v24 }
0x2047   :  { %v2419_v57 = vadd.f32 %v2418_v52, %v4426_v26 }
0x2049   :  { %2422 = vrot.lane.b32.xlu1 %v2419_v57, %s4327_s20  ;;  %v2420_v2 = vmul.f32 %v2419_v57, %v4990_v30 }
0x20b6   :  { %v2355_v10 = vpop.permute.xlu0 %2354 }
0x20b7   :  { %v2357_v12 = vmul.f32 %v2355_v10, %v2351_v9 }
0x20b9   :  { %2359 = vrot.lane.b32.xlu0 %v2357_v12, %s4328_s21 }
0x20bb   :  { %v2423_v58 = vpop.permute.xlu1 %2422 }
0x20bc   :  { %v2425_v16 = vmul.f32 %v2423_v58, %v2419_v57 }
0x20be   :  { %2427 = vrot.lane.b32.xlu1 %v2425_v16, %s4328_s21 }
0x212b   :  { %v2360_v13 = vpop.permute.xlu0 %2359 }
0x212c   :  { %v5031_v21 = vadd.f32 %v2360_v13, %v2352_v19 }
0x212e   :  { %4225 = vtanh.f32 %v5031_v21 }
0x2130   :  { %v2428_v5 = vpop.permute.xlu1 %2427 }
0x2131   :  { %v5035_v15 = vadd.f32 %v2428_v5, %v2420_v2 }
0x2133   :  { %4227 = vtanh.f32 %v5035_v15 }
0x2138   :  { %v4226_v22 = vpop.eup %4225 }
0x2139   :  { %2365 = vrot.lane.b32.xlu0 %v4226_v22, %s4327_s20 }
0x213d   :  { %v4228_v3 = vpop.eup %4227 }
0x213e   :  { %2433 = vrot.lane.b32.xlu1 %v4228_v3, %s4327_s20 }
0x21ab   :  { %v2366_v17 = vpop.permute.xlu0 %2365 }
0x21ac   :  { %v2368_v18 = vmul.f32 %v2366_v17, %v2351_v9 }
0x21ae   :  { %v2438_v31 = vpack.c.bf16 %v2368_v18, %v2368_v18 }
0x21b0   :  { %2440 = vrot.lane.b32.xlu0 %v2438_v31, %s4328_s21  ;;  %v2434_v14 = vpop.permute.xlu1 %2433 }
0x21b1   :  { %v2436_v32 = vmul.f32 %v2434_v14, %v2419_v57 }
0x21b3   :  { %v2437_v36 = vpack.c.bf16 %v2436_v32, %v2436_v32  ;;  %v5091_v32 = vld [vmem:[%s5287_s2] sm:$0xff]  }
0x21b5   :  { %2486 = vrot.lane.b32.xlu1 %v2437_v36, %s4328_s21  ;;  %v5104_v36 = vld [vmem:[%s5287_s2 + $0x8] sm:$0xff]  }
0x2222   :  { %v2441_v30 = vpop.permute.xlu0 %2440 }
0x2223   :  { %3952 = vmatmul.mubr.msk.bf16.vlgmr.msra.gmra.mrb[76].mxu0 %vm282_vm5, %v2441_v30 }
0x2224   :  { %3964 = vmatpush3.bf16.msra.mxu0 %v4742_v25  ;;  %3967 = vmatprep.mubr.msk.bf16.mxu0 %vm4324_vm1, %v4323_v1 }
0x2225   :  { %3965 = vmatprep.subr.bf16.mxu0 %v4323_v1 }
0x2227   :  { %v2487_v23 = vpop.permute.xlu1 %2486 }
0x2228   :  { %3966 = vmatpush3.bf16.msra.mxu0 %v4751_v27  ;;  %3960 = vmatmul.mubr.msk.bf16.vlgmr.msra.gmra.mrb[76].mxu1 %vm282_vm5, %v2487_v23 }
0x2229   :  { %3972 = vmatpush3.bf16.msra.mxu1 %v4801_v8  ;;  %3979 = vmatprep.subr.bf16.mxu0 %v4323_v1 }
0x222a   :  { %3973 = vmatprep.subr.bf16.mxu1 %v4323_v1  ;;  %3975 = vmatprep.mubr.msk.bf16.mxu1 %vm4324_vm1, %v4323_v1 }
0x222b   :  { %3968 = vmatmul.mubr.msk.bf16.vlgmr.msra.gmra.mrb[80].mxu0 %vm282_vm5, %v2487_v23 }
0x222c   :  { %3980 = vmatpush3.bf16.msra.mxu0 %v4820_v28  ;;  %3983 = vmatprep.mubr.msk.bf16.mxu0 %vm4324_vm1, %v4323_v1 }
0x222d   :  { %3974 = vmatpush3.bf16.msra.mxu1 %v4812_v34  ;;  %3981 = vmatprep.subr.bf16.mxu0 %v4323_v1 }
0x222e   :  { %3987 = vmatprep.subr.bf16.mxu1 %v4323_v1 }
0x2230   :  { %3982 = vmatpush3.bf16.msra.mxu0 %v4829_v29 }
0x2231   :  { %3995 = vmatprep.subr.bf16.mxu0 %v4323_v1 }
0x22f6   :  { %v2479_v25 = vpop.f32.mrb[76].mxu0 }
0x22f7   :  { %v3953_v27 = vpop.f32.mrb[77].mxu0 }
0x22f8   :  { %v2482_v33 = vpop.f32.mrb[78].mxu0 }
0x22f9   :  { %v3954_v37 = vpop.f32.mrb[79].mxu0 }
0x22fb   :  { %v2525_v35 = vpop.f32.mrb[76].mxu1 }
0x22fc   :  { %v2526_v39 = vadd.f32 %v2525_v35, %v2479_v25  ;;  %v3961_v40 = vpop.f32.mrb[77].mxu1 }
0x22fd   :  { %v2528_v41 = vpop.f32.mrb[78].mxu1  ;;  %v216_v40 = vadd.f32 %v4837_v38, %v4560_v56 }
0x22fe   :  { %v2531_v43 = vadd.f32 %v4887_v42, %v2526_v39  ;;  %v2593_v45 = vpop.f32.mrb[80].mxu0  ;;  %v3962_v59 = vpop.f32.mrb[79].mxu1 }
0x22ff   :  { %v2599_v60 = vadd.f32 %v2593_v45, %v213_v11  ;;  %v3969_v61 = vpop.f32.mrb[81].mxu0 }
0x2300   :  { %v3476_v20 = vmul.f32 -1.442695, %v2531_v43  ;;  %v2596_v7 = vpop.f32.mrb[82].mxu0 }
0x2301   :  { %v3478_v47 = vmul.f32 -1.442695, %v2599_v60  ;;  %v3970_v44 = vpop.f32.mrb[83].mxu0 }
0x2302   :  { %4229 = vpow2.f32 %v3476_v20 }
0x2303   :  { %4231 = vpow2.f32 %v3478_v47 }
0x230c   :  { %v4230_v62 = vpop.eup %4229 }
0x230d   :  { %v4232_v50 = vpop.eup %4231  ;;  %v2535_v63 = vadd.f32 1.0, %v4230_v62 }
0x230e   :  { %v2603_v48 = vadd.f32 1.0, %v4232_v50 }
0x230f   :  { %4233 = vrcp.f32 %v2535_v63 }
0x2310   :  { %4235 = vrcp.f32 %v2603_v48 }
0x2319   :  { %v4234_v54 = vpop.eup %4233 }
0x231a   :  { %v4236_v0 = vpop.eup %4235  ;;  %v2538_v46 = vmul.f32 %v4234_v54, %v4423_v24 }
0x231b   :  { %v2606_v4 = vmul.f32 %v4236_v0, %v4423_v24 }
0x231c   :  { %v2539_v49 = vadd.f32 %v2538_v46, %v4426_v26 }
0x231d   :  { %v2607_v6 = vadd.f32 %v2606_v4, %v4426_v26 }
0x231e   :  { %2542 = vrot.lane.b32.xlu0 %v2539_v49, %s4327_s20  ;;  %v2540_v10 = vmul.f32 %v2539_v49, %v5031_v21 }
0x231f   :  { %2610 = vrot.lane.b32.xlu1 %v2607_v6, %s4327_s20  ;;  %v2608_v12 = vmul.f32 %v2607_v6, %v5035_v15 }
0x2390   :  { %v2543_v9 = vpop.permute.xlu0 %2542 }
0x2391   :  { %v2611_v51 = vpop.permute.xlu1 %2610  ;;  %v2545_v52 = vmul.f32 %v2543_v9, %v2539_v49 }
0x2392   :  { %v2613_v57 = vmul.f32 %v2611_v51, %v2607_v6 }
0x2393   :  { %2547 = vrot.lane.b32.xlu0 %v2545_v52, %s4328_s21 }
0x2394   :  { %2615 = vrot.lane.b32.xlu1 %v2613_v57, %s4328_s21 }
0x2405   :  { %v2548_v58 = vpop.permute.xlu0 %2547 }
0x2406   :  { %v2616_v16 = vpop.permute.xlu1 %2615  ;;  %v5076_v19 = vadd.f32 %v2548_v58, %v2540_v10 }
0x2407   :  { %v5078_v13 = vadd.f32 %v2616_v16, %v2608_v12 }
0x2408   :  { %4237 = vtanh.f32 %v5076_v19 }
0x2409   :  { %4239 = vtanh.f32 %v5078_v13 }
0x2412   :  { %v4238_v2 = vpop.eup %4237 }
0x2413   :  { %v4240_v5 = vpop.eup %4239  ;;  %2553 = vrot.lane.b32.xlu0 %v4238_v2, %s4327_s20 }
0x2414   :  { %2621 = vrot.lane.b32.xlu1 %v4240_v5, %s4327_s20 }
0x2485   :  { %v2554_v22 = vpop.permute.xlu0 %2553 }
0x2486   :  { %v2622_v21 = vpop.permute.xlu1 %2621  ;;  %v2556_v3 = vmul.f32 %v2554_v22, %v2539_v49  ;;  %v5150_v22 = vld [vmem:[%s5290_s5] sm:$0xff]  }
0x2487   :  { %v2624_v15 = vmul.f32 %v2622_v21, %v2607_v6  ;;  %v5161_v21 = vld [vmem:[%s5289_s4] sm:$0xff]  }
0x2488   :  { %v2626_v17 = vpack.c.bf16 %v2556_v3, %v2556_v3  ;;  %v5169_v3 = vld [vmem:[%s5290_s5 + $0x8] sm:$0xff]  }
0x2489   :  { %v2625_v18 = vpack.c.bf16 %v2624_v15, %v2624_v15  ;;  %v5177_v15 = vld [vmem:[%s5289_s4 + $0x8] sm:$0xff]  }
0x248a   :  { %2628 = vrot.lane.b32.xlu0 %v2626_v17, %s4328_s21 }
0x248b   :  { %2674 = vrot.lane.b32.xlu1 %v2625_v18, %s4328_s21 }
0x24fc   :  { %v2629_v31 = vpop.permute.xlu0 %2628 }
0x24fd   :  { %v2675_v14 = vpop.permute.xlu1 %2674  ;;  %3976 = vmatmul.mubr.msk.bf16.vlgmr.msra.gmra.mrb[80].mxu1 %vm282_vm5, %v2629_v31 }
0x24fe   :  { %3984 = vmatmul.mubr.msk.bf16.vlgmr.msra.gmra.mrb[84].mxu0 %vm282_vm5, %v2675_v14  ;;  %3988 = vmatpush3.bf16.msra.mxu1 %v5091_v32 }
0x24ff   :  { %3989 = vmatprep.subr.bf16.mxu1 %v4323_v1  ;;  %3991 = vmatprep.mubr.msk.bf16.mxu1 %vm4324_vm1, %v4323_v1 }
0x2500   :  { %3996 = vmatpush3.bf16.msra.mxu0 %v4801_v8  ;;  %3999 = vmatprep.mubr.msk.bf16.mxu0 %vm4324_vm1, %v4323_v1 }
0x2501   :  { %3997 = vmatprep.subr.bf16.mxu0 %v4323_v1 }
0x2502   :  { %3990 = vmatpush3.bf16.msra.mxu1 %v5104_v36 }
0x2503   :  { %4003 = vmatprep.subr.bf16.mxu1 %v4323_v1 }
0x2504   :  { %3998 = vmatpush3.bf16.msra.mxu0 %v4812_v34 }
0x2505   :  { %3992 = vmatmul.mubr.msk.bf16.vlgmr.msra.gmra.mrb[84].mxu1 %vm282_vm5, %v2675_v14  ;;  %4011 = vmatprep.subr.bf16.mxu0 %v4323_v1 }
0x2506   :  { %4004 = vmatpush3.bf16.msra.mxu1 %v4820_v28  ;;  %4007 = vmatprep.mubr.msk.bf16.mxu1 %vm4324_vm1, %v4323_v1 }
0x2507   :  { %4005 = vmatprep.subr.bf16.mxu1 %v4323_v1 }
0x250a   :  { %4006 = vmatpush3.bf16.msra.mxu1 %v4829_v29 }
0x250b   :  { %4019 = vmatprep.subr.bf16.mxu1 %v4323_v1 }
0x25d0   :  { %v2667_v8 = vpop.f32.mrb[80].mxu1 }
0x25d1   :  { %v2713_v30 = vpop.f32.mrb[84].mxu0  ;;  %v3977_v23 = vpop.f32.mrb[81].mxu1 }
0x25d2   :  { %v2714_v25 = vadd.f32 %v2713_v30, %v2667_v8  ;;  %v3985_v34 = vpop.f32.mrb[85].mxu0  ;;  %v2670_v27 = vpop.f32.mrb[82].mxu1 }
0x25d3   :  { %v2716_v33 = vpop.f32.mrb[86].mxu0  ;;  %v3978_v37 = vpop.f32.mrb[83].mxu1 }
0x25d4   :  { %v2719_v35 = vadd.f32 %v4887_v42, %v2714_v25  ;;  %v3986_v28 = vpop.f32.mrb[87].mxu0  ;;  %v5184_v25 = vld [vmem:[%s5288_s3] ss:$0 sm:$0xff] }
0x25d5   :  { %v221_v34 = vadd.f32 %v5184_v25, %v4554_v53 }
0x25d6   :  { %v3481_v39 = vmul.f32 -1.442695, %v2719_v35 }
0x25d8   :  { %4241 = vpow2.f32 %v3481_v39  ;;  %v2781_v11 = vpop.f32.mrb[84].mxu1 }
0x25d9   :  { %v2787_v29 = vadd.f32 %v2781_v11, %v216_v40  ;;  %v3993_v41 = vpop.f32.mrb[85].mxu1 }
0x25da   :  { %v2784_v43 = vpop.f32.mrb[86].mxu1 }
0x25db   :  { %v3483_v45 = vmul.f32 -1.442695, %v2787_v29  ;;  %v3994_v59 = vpop.f32.mrb[87].mxu1 }
0x25dd   :  { %4243 = vpow2.f32 %v3483_v45 }
0x25e2   :  { %v4242_v60 = vpop.eup %4241 }
0x25e3   :  { %v2723_v61 = vadd.f32 1.0, %v4242_v60 }
0x25e5   :  { %4245 = vrcp.f32 %v2723_v61 }
0x25e7   :  { %v4244_v20 = vpop.eup %4243 }
0x25e8   :  { %v2791_v7 = vadd.f32 1.0, %v4244_v20 }
0x25ea   :  { %4247 = vrcp.f32 %v2791_v7 }
0x25ef   :  { %v4246_v47 = vpop.eup %4245 }
0x25f0   :  { %v2726_v44 = vmul.f32 %v4246_v47, %v4423_v24 }
0x25f2   :  { %v2727_v62 = vadd.f32 %v2726_v44, %v4426_v26 }
0x25f4   :  { %v4248_v56 = vpop.eup %4247  ;;  %2730 = vrot.lane.b32.xlu0 %v2727_v62, %s4327_s20  ;;  %v2728_v46 = vmul.f32 %v2727_v62, %v5076_v19 }
0x25f5   :  { %v2794_v38 = vmul.f32 %v4248_v56, %v4423_v24 }
0x25f7   :  { %v2795_v50 = vadd.f32 %v2794_v38, %v4426_v26 }
0x25f9   :  { %2798 = vrot.lane.b32.xlu1 %v2795_v50, %s4327_s20  ;;  %v2796_v6 = vmul.f32 %v2795_v50, %v5078_v13 }
0x2666   :  { %v2731_v63 = vpop.permute.xlu0 %2730 }
0x2667   :  { %v2733_v48 = vmul.f32 %v2731_v63, %v2727_v62 }
0x2669   :  { %2735 = vrot.lane.b32.xlu0 %v2733_v48, %s4328_s21 }
0x266b   :  { %v2799_v54 = vpop.permute.xlu1 %2798 }
0x266c   :  { %v2801_v0 = vmul.f32 %v2799_v54, %v2795_v50 }
0x266e   :  { %2803 = vrot.lane.b32.xlu1 %v2801_v0, %s4328_s21 }
0x26db   :  { %v2736_v4 = vpop.permute.xlu0 %2735 }
0x26dc   :  { %v5129_v49 = vadd.f32 %v2736_v4, %v2728_v46 }
0x26de   :  { %4249 = vtanh.f32 %v5129_v49 }
0x26e0   :  { %v2804_v9 = vpop.permute.xlu1 %2803 }
0x26e1   :  { %v5133_v51 = vadd.f32 %v2804_v9, %v2796_v6 }
0x26e3   :  { %4251 = vtanh.f32 %v5133_v51 }
0x26e8   :  { %v4250_v52 = vpop.eup %4249 }
0x26e9   :  { %2741 = vrot.lane.b32.xlu0 %v4250_v52, %s4327_s20 }
0x26ed   :  { %v4252_v57 = vpop.eup %4251 }
0x26ee   :  { %2809 = vrot.lane.b32.xlu1 %v4252_v57, %s4327_s20 }
0x275b   :  { %v2742_v10 = vpop.permute.xlu0 %2741 }
0x275c   :  { %v2744_v12 = vmul.f32 %v2742_v10, %v2727_v62 }
0x275e   :  { %v2814_v58 = vpack.c.bf16 %v2744_v12, %v2744_v12 }
0x2760   :  { %2816 = vrot.lane.b32.xlu0 %v2814_v58, %s4328_s21  ;;  %v2810_v16 = vpop.permute.xlu1 %2809 }
0x2761   :  { %v2812_v19 = vmul.f32 %v2810_v16, %v2795_v50 }
0x2763   :  { %v2813_v2 = vpack.c.bf16 %v2812_v19, %v2812_v19 }
0x2765   :  { %2862 = vrot.lane.b32.xlu1 %v2813_v2, %s4328_s21 }
0x27d2   :  { %v2817_v13 = vpop.permute.xlu0 %2816 }
0x27d3   :  { %4000 = vmatmul.mubr.msk.bf16.vlgmr.msra.gmra.mrb[88].mxu0 %vm282_vm5, %v2817_v13 }
0x27d4   :  { %4012 = vmatpush3.bf16.msra.mxu0 %v5091_v32  ;;  %4015 = vmatprep.mubr.msk.bf16.mxu0 %vm4324_vm1, %v4323_v1 }
0x27d5   :  { %4013 = vmatprep.subr.bf16.mxu0 %v4323_v1 }
0x27d7   :  { %v2863_v5 = vpop.permute.xlu1 %2862 }
0x27d8   :  { %4014 = vmatpush3.bf16.msra.mxu0 %v5104_v36  ;;  %4008 = vmatmul.mubr.msk.bf16.vlgmr.msra.gmra.mrb[88].mxu1 %vm282_vm5, %v2863_v5 }
0x27d9   :  { %4020 = vmatpush3.bf16.msra.mxu1 %v5150_v22  ;;  %4027 = vmatprep.subr.bf16.mxu0 %v4323_v1 }
0x27da   :  { %4021 = vmatprep.subr.bf16.mxu1 %v4323_v1  ;;  %4023 = vmatprep.mubr.msk.bf16.mxu1 %vm4324_vm1, %v4323_v1 }
0x27db   :  { %4016 = vmatmul.mubr.msk.bf16.vlgmr.msra.gmra.mrb[92].mxu0 %vm282_vm5, %v2863_v5 }
0x27dc   :  { %4028 = vmatpush3.bf16.msra.mxu0 %v5161_v21  ;;  %4031 = vmatprep.mubr.msk.bf16.mxu0 %vm4324_vm1, %v4323_v1 }
0x27dd   :  { %4022 = vmatpush3.bf16.msra.mxu1 %v5169_v3  ;;  %4029 = vmatprep.subr.bf16.mxu0 %v4323_v1 }
0x27de   :  { %4035 = vmatprep.subr.bf16.mxu1 %v4323_v1 }
0x27e0   :  { %4030 = vmatpush3.bf16.msra.mxu0 %v5177_v15 }
0x27e1   :  { %4043 = vmatprep.subr.bf16.mxu0 %v4323_v1 }
0x28a6   :  { %v2855_v17 = vpop.f32.mrb[88].mxu0 }
0x28a7   :  { %v4001_v18 = vpop.f32.mrb[89].mxu0 }
0x28a8   :  { %v2858_v31 = vpop.f32.mrb[90].mxu0 }
0x28a9   :  { %v4002_v14 = vpop.f32.mrb[91].mxu0 }
0x28ab   :  { %v2901_v8 = vpop.f32.mrb[88].mxu1 }
0x28ac   :  { %v2902_v30 = vadd.f32 %v2901_v8, %v2855_v17  ;;  %v4009_v23 = vpop.f32.mrb[89].mxu1 }
0x28ad   :  { %v2904_v27 = vpop.f32.mrb[90].mxu1 }
0x28ae   :  { %v2907_v33 = vadd.f32 %v4887_v42, %v2902_v30  ;;  %v2969_v37 = vpop.f32.mrb[92].mxu0  ;;  %v4010_v35 = vpop.f32.mrb[91].mxu1 }
0x28af   :  { %v2975_v28 = vadd.f32 %v2969_v37, %v221_v34  ;;  %v4017_v39 = vpop.f32.mrb[93].mxu0 }
0x28b0   :  { %v3486_v40 = vmul.f32 -1.442695, %v2907_v33  ;;  %v2972_v11 = vpop.f32.mrb[94].mxu0 }
0x28b1   :  { %v3488_v29 = vmul.f32 -1.442695, %v2975_v28  ;;  %v4018_v41 = vpop.f32.mrb[95].mxu0 }
0x28b2   :  { %4253 = vpow2.f32 %v3486_v40 }
0x28b3   :  { %4255 = vpow2.f32 %v3488_v29 }
0x28bc   :  { %v4254_v43 = vpop.eup %4253 }
0x28bd   :  { %v4256_v45 = vpop.eup %4255  ;;  %v2911_v59 = vadd.f32 1.0, %v4254_v43 }
0x28be   :  { %v2979_v60 = vadd.f32 1.0, %v4256_v45 }
0x28bf   :  { %4257 = vrcp.f32 %v2911_v59 }
0x28c0   :  { %4259 = vrcp.f32 %v2979_v60 }
0x28c9   :  { %v4258_v53 = vpop.eup %4257 }
0x28ca   :  { %v4260_v61 = vpop.eup %4259  ;;  %v2914_v42 = vmul.f32 %v4258_v53, %v4423_v24 }
0x28cb   :  { %v2982_v20 = vmul.f32 %v4260_v61, %v4423_v24 }
0x28cc   :  { %v2915_v7 = vadd.f32 %v2914_v42, %v4426_v26 }
0x28cd   :  { %v2983_v47 = vadd.f32 %v2982_v20, %v4426_v26 }
0x28ce   :  { %2918 = vrot.lane.b32.xlu0 %v2915_v7, %s4327_s20  ;;  %v2916_v50 = vmul.f32 %v2915_v7, %v5129_v49 }
0x28cf   :  { %2986 = vrot.lane.b32.xlu1 %v2983_v47, %s4327_s20  ;;  %v2984_v63 = vmul.f32 %v2983_v47, %v5133_v51 }
0x2940   :  { %v2919_v44 = vpop.permute.xlu0 %2918 }
0x2941   :  { %v2987_v62 = vpop.permute.xlu1 %2986  ;;  %v2921_v56 = vmul.f32 %v2919_v44, %v2915_v7 }
0x2942   :  { %v2989_v38 = vmul.f32 %v2987_v62, %v2983_v47 }
0x2943   :  { %2923 = vrot.lane.b32.xlu0 %v2921_v56, %s4328_s21 }
0x2944   :  { %2991 = vrot.lane.b32.xlu1 %v2989_v38, %s4328_s21 }
0x29b5   :  { %v2924_v48 = vpop.permute.xlu0 %2923 }
0x29b6   :  { %v2992_v54 = vpop.permute.xlu1 %2991  ;;  %v5199_v0 = vadd.f32 %v2924_v48, %v2916_v50 }
0x29b7   :  { %v5201_v46 = vadd.f32 %v2992_v54, %v2984_v63 }
0x29b8   :  { %4261 = vtanh.f32 %v5199_v0 }
0x29b9   :  { %4263 = vtanh.f32 %v5201_v46 }
0x29c2   :  { %v4262_v4 = vpop.eup %4261 }
0x29c3   :  { %v4264_v6 = vpop.eup %4263  ;;  %2929 = vrot.lane.b32.xlu0 %v4262_v4, %s4327_s20 }
0x29c4   :  { %2997 = vrot.lane.b32.xlu1 %v4264_v6, %s4327_s20 }
0x2a35   :  { %v2930_v9 = vpop.permute.xlu0 %2929 }
0x2a36   :  { %v2998_v49 = vpop.permute.xlu1 %2997  ;;  %v2932_v52 = vmul.f32 %v2930_v9, %v2915_v7 }
0x2a37   :  { %v3000_v51 = vmul.f32 %v2998_v49, %v2983_v47 }
0x2a38   :  { %v3002_v57 = vpack.c.bf16 %v2932_v52, %v2932_v52 }
0x2a39   :  { %v3001_v10 = vpack.c.bf16 %v3000_v51, %v3000_v51 }
0x2a3a   :  { %3004 = vrot.lane.b32.xlu0 %v3002_v57, %s4328_s21 }
0x2a3b   :  { %3050 = vrot.lane.b32.xlu1 %v3001_v10, %s4328_s21 }
0x2aac   :  { %v3005_v12 = vpop.permute.xlu0 %3004 }
0x2aad   :  { %v3051_v58 = vpop.permute.xlu1 %3050  ;;  %4024 = vmatmul.mubr.msk.bf16.vlgmr.msra.gmra.mrb[92].mxu1 %vm282_vm5, %v3005_v12 }
0x2aae   :  { %4032 = vmatmul.mubr.msk.bf16.vlgmr.msra.gmra.mrb[96].mxu0 %vm282_vm5, %v3051_v58  ;;  %4036 = vmatpush3.bf16.msra.mxu1 %v5091_v32 }
0x2aaf   :  { %4037 = vmatprep.subr.bf16.mxu1 %v4323_v1  ;;  %4039 = vmatprep.mubr.msk.bf16.mxu1 %vm4324_vm1, %v4323_v1 }
0x2ab0   :  { %4044 = vmatpush3.bf16.msra.mxu0 %v5150_v22  ;;  %4047 = vmatprep.mubr.msk.bf16.mxu0 %vm4324_vm1, %v4323_v1 }
0x2ab1   :  { %4045 = vmatprep.subr.bf16.mxu0 %v4323_v1 }
0x2ab2   :  { %4038 = vmatpush3.bf16.msra.mxu1 %v5104_v36 }
0x2ab3   :  { %4051 = vmatprep.subr.bf16.mxu1 %v4323_v1 }
0x2ab4   :  { %4046 = vmatpush3.bf16.msra.mxu0 %v5169_v3  ;;  %v5232_v3 = vld [vmem:[%s5291_s6] ss:$0 sm:$0xff] }
0x2ab5   :  { %4040 = vmatmul.mubr.msk.bf16.vlgmr.msra.gmra.mrb[96].mxu1 %vm282_vm5, %v3051_v58  ;;  %4059 = vmatprep.subr.bf16.mxu0 %v4323_v1 }
0x2ab6   :  { %4052 = vmatpush3.bf16.msra.mxu1 %v5161_v21  ;;  %4055 = vmatprep.mubr.msk.bf16.mxu1 %vm4324_vm1, %v4323_v1 }
0x2ab7   :  { %4053 = vmatprep.subr.bf16.mxu1 %v4323_v1 }
0x2aba   :  { %4054 = vmatpush3.bf16.msra.mxu1 %v5177_v15  ;;  %v224_v15 = vadd.f32 %v5184_v25, %v4558_v55 }
0x2b80   :  { %v3043_v32 = vpop.f32.mrb[92].mxu1 }
0x2b81   :  { %v3089_v16 = vpop.f32.mrb[96].mxu0  ;;  %v4025_v36 = vpop.f32.mrb[93].mxu1 }
0x2b82   :  { %v3090_v19 = vadd.f32 %v3089_v16, %v3043_v32  ;;  %v4033_v2 = vpop.f32.mrb[97].mxu0  ;;  %v3046_v13 = vpop.f32.mrb[94].mxu1 }
0x2b83   :  { %v3092_v5 = vpop.f32.mrb[98].mxu0  ;;  %v4026_v22 = vpop.f32.mrb[95].mxu1 }
0x2b84   :  { %v3095_v21 = vadd.f32 %v5232_v3, %v3090_v19  ;;  %v4034_v17 = vpop.f32.mrb[99].mxu0 }
0x2b86   :  { %v3491_v18 = vmul.f32 -1.442695, %v3095_v21  ;;  %v4089_v21 = vld [vmem:[%s5292_s7] sm:$0xff]  }
0x2b88   :  { %4265 = vpow2.f32 %v3491_v18  ;;  %v3157_v31 = vpop.f32.mrb[96].mxu1 }
0x2b89   :  { %v3163_v14 = vadd.f32 %v3157_v31, %v224_v15  ;;  %v4041_v8 = vpop.f32.mrb[97].mxu1 }
0x2b8a   :  { %v3160_v30 = vpop.f32.mrb[98].mxu1 }
0x2b8b   :  { %v3493_v23 = vmul.f32 -1.442695, %v3163_v14  ;;  %v4042_v34 = vpop.f32.mrb[99].mxu1  ;;  %v3497_v14 = vld [vmem:[%s5293_s8] ss:$0 sm:$0xff] }
0x2b8d   :  { %4267 = vpow2.f32 %v3493_v23 }
0x2b92   :  { %v4266_v27 = vpop.eup %4265 }
0x2b93   :  { %v3099_v33 = vadd.f32 1.0, %v4266_v27 }
0x2b95   :  { %4269 = vrcp.f32 %v3099_v33 }
0x2b97   :  { %v4268_v37 = vpop.eup %4267 }
0x2b98   :  { %v3167_v35 = vadd.f32 1.0, %v4268_v37 }
0x2b9a   :  { %4271 = vrcp.f32 %v3167_v35 }
0x2b9f   :  { %v4270_v28 = vpop.eup %4269 }
0x2ba0   :  { %v3102_v39 = vmul.f32 %v4270_v28, %v4423_v24 }
0x2ba2   :  { %v3103_v40 = vadd.f32 %v3102_v39, %v4426_v26 }
0x2ba4   :  { %v4272_v55 = vpop.eup %4271  ;;  %3106 = vrot.lane.b32.xlu0 %v3103_v40, %s4327_s20  ;;  %v3104_v59 = vmul.f32 %v3103_v40, %v5199_v0 }
0x2ba5   :  { %v3170_v25 = vmul.f32 %v4272_v55, %v4423_v24 }
0x2ba7   :  { %v3171_v11 = vadd.f32 %v3170_v25, %v4426_v26 }
0x2ba9   :  { %3174 = vrot.lane.b32.xlu1 %v3171_v11, %s4327_s20  ;;  %v3172_v61 = vmul.f32 %v3171_v11, %v5201_v46 }
0x2c16   :  { %v3107_v29 = vpop.permute.xlu0 %3106 }
0x2c17   :  { %v3109_v41 = vmul.f32 %v3107_v29, %v3103_v40 }
0x2c19   :  { %3111 = vrot.lane.b32.xlu0 %v3109_v41, %s4328_s21 }
0x2c1b   :  { %v3175_v43 = vpop.permute.xlu1 %3174 }
0x2c1c   :  { %v3177_v45 = vmul.f32 %v3175_v43, %v3171_v11 }
0x2c1e   :  { %3179 = vrot.lane.b32.xlu1 %v3177_v45, %s4328_s21 }
0x2c8b   :  { %v3112_v60 = vpop.permute.xlu0 %3111 }
0x2c8c   :  { %v3114_v53 = vadd.f32 %v3112_v60, %v3104_v59 }
0x2c8e   :  { %4273 = vtanh.f32 %v3114_v53 }
0x2c90   :  { %v3180_v42 = vpop.permute.xlu1 %3179 }
0x2c91   :  { %v3182_v20 = vadd.f32 %v3180_v42, %v3172_v61 }
0x2c93   :  { %4275 = vtanh.f32 %v3182_v20 }
0x2c98   :  { %v4274_v7 = vpop.eup %4273 }
0x2c99   :  { %3117 = vrot.lane.b32.xlu0 %v4274_v7, %s4327_s20 }
0x2c9d   :  { %v4276_v47 = vpop.eup %4275 }
0x2c9e   :  { %3185 = vrot.lane.b32.xlu1 %v4276_v47, %s4327_s20 }
0x2d0b   :  { %v3118_v44 = vpop.permute.xlu0 %3117 }
0x2d0c   :  { %v3120_v62 = vmul.f32 %v3118_v44, %v3103_v40 }
0x2d0e   :  { %v3190_v56 = vpack.c.bf16 %v3120_v62, %v3120_v62 }
0x2d10   :  { %3192 = vrot.lane.b32.xlu0 %v3190_v56, %s4328_s21  ;;  %v3186_v38 = vpop.permute.xlu1 %3185 }
0x2d11   :  { %v3188_v50 = vmul.f32 %v3186_v38, %v3171_v11 }
0x2d13   :  { %v3189_v63 = vpack.c.bf16 %v3188_v50, %v3188_v50 }
0x2d15   :  { %3238 = vrot.lane.b32.xlu1 %v3189_v63, %s4328_s21 }
0x2d82   :  { %v3193_v48 = vpop.permute.xlu0 %3192 }
0x2d83   :  { %4048 = vmatmul.mubr.msk.bf16.vlgmr.msra.gmra.mrb[100].mxu0 %vm282_vm5, %v3193_v48 }
0x2d84   :  { %4063 = vmatprep.mubr.msk.bf16.mxu0 %vm4324_vm1, %v4323_v1  ;;  %4060 = vmatpush3.bf16.msra.mxu0 %v4089_v21 }
0x2d85   :  { %4061 = vmatprep.subr.bf16.mxu0 %v4323_v1 }
0x2d87   :  { %v3239_v54 = vpop.permute.xlu1 %3238 }
0x2d88   :  { %4056 = vmatmul.mubr.msk.bf16.vlgmr.msra.gmra.mrb[100].mxu1 %vm282_vm5, %v3239_v54 }
0x2e56   :  { %v3231_v0 = vpop.f32.mrb[100].mxu0 }
0x2e57   :  { %v4049_v46 = vpop.f32.mrb[101].mxu0 }
0x2e58   :  { %v3234_v4 = vpop.f32.mrb[102].mxu0 }
0x2e59   :  { %v4050_v6 = vpop.f32.mrb[103].mxu0 }
0x2e5b   :  { %v3277_v9 = vpop.f32.mrb[100].mxu1 }
0x2e5c   :  { %v3278_v49 = vadd.f32 %v3277_v9, %v3231_v0  ;;  %v4057_v52 = vpop.f32.mrb[101].mxu1 }
0x2e5d   :  { %v3280_v51 = vpop.f32.mrb[102].mxu1 }
0x2e5e   :  { %v3283_v57 = vadd.f32 %v5232_v3, %v3278_v49  ;;  %v4058_v10 = vpop.f32.mrb[103].mxu1 }
0x2e60   :  { %v3496_v12 = vmul.f32 -1.442695, %v3283_v57 }
0x2e62   :  { %4277 = vpow2.f32 %v3496_v12 }
0x2e6c   :  { %v4278_v58 = vpop.eup %4277 }
0x2e6d   :  { %v3287_v32 = vadd.f32 1.0, %v4278_v58 }
0x2e6f   :  { %4279 = vrcp.f32 %v3287_v32 }
0x2e79   :  { %v4280_v16 = vpop.eup %4279 }
0x2e7a   :  { %v3290_v36 = vmul.f32 %v4280_v16, %v4423_v24  ;;  %v4090_v24 = vld [vmem:[%s5292_s7 + $0x8] sm:$0xff]   ;;  %s3386_s7 = sshll.u32 %s4329_s14, 4  ;;  %s3387_s7 = int_to_ptr.vmem [resolvable:$true] %s3386_s7 }
0x2e7b   :  { %4062 = vmatpush3.bf16.msra.mxu0 %v4090_v24  ;;  %p4304_p1 = scmp.lt.s32.totalorder %s3387_s7, %s3387_s7 }
0x2e7c   :  { %v3291_v19 = vadd.f32 %v3290_v36, %v4426_v26 }
0x2e7e   :  { %3294 = vrot.lane.b32.xlu0 %v3291_v19, %s4327_s20  ;;  %v3292_v5 = vmul.f32 %v3291_v19, %v3114_v53 }
0x2ef0   :  { %v3295_v2 = vpop.permute.xlu0 %3294 }
0x2ef1   :  { %v3297_v13 = vmul.f32 %v3295_v2, %v3291_v19 }
0x2ef3   :  { %3299 = vrot.lane.b32.xlu1 %v3297_v13, %s4328_s21 }
0x2f65   :  { %v3300_v22 = vpop.permute.xlu1 %3299 }
0x2f66   :  { %v3302_v3 = vadd.f32 %v3300_v22, %v3292_v5 }
0x2f68   :  { %4281 = vtanh.f32 %v3302_v3 }
0x2f72   :  { %v4282_v26 = vpop.eup %4281 }
0x2f73   :  { %3305 = vrot.lane.b32.xlu0 %v4282_v26, %s4327_s20  ;;  %s4299_s20 = scalar_lea.vmem %s3387_s7, 128 }
0x2f74   :  { %p4300_p0 = scmp.ne.s32.totalorder %s3387_s7, %s4299_s20  ;;  %p4305_p2 = scmp.lt.s32.totalorder %s4299_s20, %s4299_s20 }
0x2f76   :  { %p4306_p3 = por %p4305_p2, %p4304_p1 }
0x2f78   :  { %p4307_p4 = pnand %p4306_p3, %p4300_p0 }
0x2fe5   :  { %v3306_v17 = vpop.permute.xlu0 %3305 }
0x2fe6   :  { %v3308_v18 = vmul.f32 %v3306_v17, %v3291_v19 }
0x2fe8   :  { %v3309_v15 = vpack.c.bf16 %v3308_v18, %v3308_v18 }
0x2fea   :  { %3322 = vrot.lane.b32.xlu1 %v3309_v15, %s4328_s21 }
0x305c   :  { %v3323_v31 = vpop.permute.xlu1 %3322 }
0x305d   :  { %4064 = vmatmul.mubr.msk.bf16.vlgmr.msra.gmra.mrb[104].mxu0 %vm282_vm5, %v3323_v31 }
0x3130   :  { %v3373_v8 = vpop.f32.mrb[104].mxu0 }
0x3131   :  { %v3374_v1 = vadd.f32 %v3497_v14, %v3373_v8  ;;  %v4065_v30 = vpop.f32.mrb[105].mxu0 }
0x3132   :  { %v3376_v23 = vpop.f32.mrb[106].mxu0 }
0x3133   :  { %3379 = vst [vmem:[#allocation3] sm:$0xff] %v3374_v1  ;;  %v4066_v34 = vpop.f32.mrb[107].mxu0 }
0x3134   :  { %4310 = shalt.err (!%p4307_p4)
}
0x3135   :  { %s4311_s8 = scalar_lea.hbm %s5294_s9, 128 }
0x3136   :  { %p4312_p5 = scmp.ne.s32.totalorder %s5294_s9, %s4311_s8  ;;  %p4315_p6 = scmp.lt.u32.totalorder %s4311_s8, %s5294_s9 }
0x3138   :  { %p4317_p7 = pnand %p4315_p6, %p4312_p5 }
0x313a   :  { %4320 = shalt.err (!%p4317_p7)
}
0x313b   :  { %3389 = dma.vmem_to_hbm [thread:$0]  %s3387_s7, 128, %s5294_s9, [#allocation4]  }
0x313c   :  { %4321 = dma.done.wait [#allocation4], 128  }
0x313d   :  { %4322 = vsyncadd [#allocation4], 4294967168 }
0x313e   :  { %3393 = vsyncpa [#allocation4], 1 }

</bundles_post_ra>
